<compile_context>
chip_gen: v6e
topology: v6e:2x2x1
jax: 0.10.0
libtpu: 0.0.40
codegen_flags: <defaults>
</compile_context>

<pallas_src>
import functools

import jax
import jax.numpy as jnp
from jax.experimental import pallas as pl
from jax.experimental.pallas import tpu as pltpu

LANE = 128
_MIB = 1024 * 1024
# Per-call VMEM working-set budget (double-buffered blocks + accumulator).
# Conservative for v7x's 64 MiB physical VMEM; v5e/v6e have 128 MiB.
_VMEM_BUDGET = 40 * _MIB


def _round_up(x, m):
    return ((x + m - 1) // m) * m


# ----------------------------------------------------------------------------
# Pallas kernel: fused (pre-activation -> tiled matmul w/ f32 acc -> +shift ->
# optional tanh).  Operands bf16, accumulation f32, lane-dense 128-padded Cout.
# ----------------------------------------------------------------------------
def _fused_conv_mm_kernel(p_ref, w_ref, shift_ref, o_ref, acc_ref,
                          *, pre_act, post_act, tk, slice_k):
    k = pl.program_id(2)

    @pl.when(k == 0)
    def _init():
        acc_ref[...] = jnp.zeros_like(acc_ref)

    p = p_ref[0]                                    # [tm, tk] bf16
    if pre_act == "leaky_relu":                     # LeakyReLU(0.2) on conv input
        p = jnp.where(p > 0, p, jnp.asarray(0.2, p.dtype) * p)
    elif pre_act == "relu":                         # ReLU on conv input
        p = jnp.maximum(p, jnp.asarray(0, p.dtype))

    if slice_k:
        # Weights are fully VMEM-resident; take the current K slice in-kernel.
        koff = pl.multiple_of(k * tk, tk)
        w = w_ref[0, pl.ds(koff, tk), :]
    else:
        w = w_ref[0]                                # (K, Coutp) or (tk, Coutp)

    acc_ref[...] += jnp.dot(p, w, preferred_element_type=jnp.float32)

    @pl.when(k == pl.num_programs(2) - 1)
    def _finish():
        # BN scale is already folded into the weight columns; only shift left.
        y = acc_ref[...] + shift_ref[...]
        if post_act == "tanh":
            y = jnp.tanh(y)
        o_ref[0] = y.astype(o_ref.dtype)


def _plan_tiles(M, K, Coutp, out_itemsize, want_split):
    """Pick (tm, tk, Mp, n_k, w_resident, working_set_bytes).

    - Weights stay fully VMEM-resident whenever they fit (fetched once/group).
    - tm chosen padding-aware (minimize zero-row MXU work + grid-step
      overhead); up to 1024 when the working set allows.
    - For single-group calls (down convs, G == 1) prefer >= 2 steps on the
      parallel M axis so v7x's two TensorCores both get work.
    - tk = K (single reduction step) unless the LHS block would blow the
      VMEM budget; then fall back to a K-tiled reduction.
    """
    m8 = _round_up(M, 8)
    w_resident = 2 * K * Coutp * 2 <= 24 * _MIB

    def working_set(tm, tk):
        lhs = 2 * tm * tk * 2                               # bf16, dbl-buffered
        rhs = 2 * K * Coutp * 2 if w_resident else 2 * tk * Coutp * 2
        out = 2 * tm * Coutp * out_itemsize
        acc = tm * Coutp * 4
        return lhs + rhs + out + acc

    def pick_tk(tm):
        for tk in range(K, 0, -LANE):                       # K is a 128-multiple
            if K % tk == 0 and working_set(tm, tk) <= _VMEM_BUDGET:
                return tk
        return None

    cands = {t for t in (8, 16, 32, 64, 128, 256, 512, 1024) if t <= m8}
    if m8 <= 1024:
        cands.add(m8)

    best_key, best = None, None
    for tm in sorted(cands):
        tk = pick_tk(tm)
        if tk is None:
            continue
        Mp = _round_up(m8, tm)
        n_m, n_k = Mp // tm, K // tk
        split_ok = (not want_split) or n_m >= 2 or m8 <= 8
        # Cost proxy: padded MXU rows + per-grid-step overhead.
        cost = Mp + 32 * n_m * n_k
        key = (0 if split_ok else 1, cost, -tm)
        if best_key is None or key < best_key:
            best_key = key
            best = (tm, tk, Mp, n_k, w_resident, working_set(tm, tk))
    assert best is not None, "no VMEM-feasible tiling"
    return best


def fused_conv_matmul(patches, w, shift, *, pre_act=None, post_act=None,
                      out_dtype=jnp.bfloat16):
    """patches: [G, M, K] bf16, w: [G, K, Coutp] bf16 (BN scale folded),
    shift: [1, Coutp] f32  ->  [G, M, Coutp] out_dtype.
    K is the compact per-layer patch width (multiple of 128); Coutp is the
    lane-padded output channel count (multiple of 128)."""
    G, M, K = patches.shape
    Gw, Kw, Coutp = w.shape
    assert G == Gw and K == Kw
    assert K % LANE == 0 and Coutp % LANE == 0
    assert shift.shape == (1, Coutp)

    out_itemsize = jnp.dtype(out_dtype).itemsize
    tm, tk, Mp, n_k, w_resident, ws_bytes = _plan_tiles(
        M, K, Coutp, out_itemsize, want_split=(G == 1))
    if Mp != M:
        patches = jnp.pad(patches, ((0, 0), (0, Mp - M), (0, 0)))
    n_m = Mp // tm

    if w_resident:
        # Constant (g, 0, 0) index map: the whole per-group weight is DMA'd
        # once per group and stays resident across all (i, k) steps.
        w_spec = pl.BlockSpec((1, K, Coutp), lambda g, i, k: (g, 0, 0))
    else:
        w_spec = pl.BlockSpec((1, tk, Coutp), lambda g, i, k: (g, k, 0))
    slice_k = w_resident and n_k > 1

    kern = functools.partial(_fused_conv_mm_kernel, pre_act=pre_act,
                             post_act=post_act, tk=tk, slice_k=slice_k)
    # TODO(synk): for the largest first/last layers on v7x, a deeper LHS
    # pipeline (pipeline_mode=pl.Buffered(3)) would further hide DMA latency.
    out = pl.pallas_call(
        kern,
        out_shape=jax.ShapeDtypeStruct((G, Mp, Coutp), out_dtype),
        grid=(G, n_m, n_k),
        in_specs=[
            pl.BlockSpec((1, tm, tk), lambda g, i, k: (g, i, k)),
            w_spec,
            pl.BlockSpec((1, Coutp), lambda g, i, k: (0, 0)),
        ],
        out_specs=pl.BlockSpec((1, tm, Coutp), lambda g, i, k: (g, i, 0)),
        scratch_shapes=[pltpu.VMEM((tm, Coutp), jnp.float32)],
        compiler_params=pltpu.CompilerParams(
            dimension_semantics=("parallel", "parallel", "arbitrary"),
            vmem_limit_bytes=int(min(64 * _MIB, max(32 * _MIB, 2 * ws_bytes)))),
    )(patches, w, shift)

    if Mp != M:
        out = out[:, :M, :]
    return out


# ----------------------------------------------------------------------------
# Convolution lowerings (im2col glue stays in plain JAX, matmul in Pallas)
# ----------------------------------------------------------------------------
# TODO(synk): the patch matrices are still materialized in HBM (~4x activation
# bytes); reading the NHWC activation directly inside the kernel (implicit
# GEMM via manual DMA / element-offset index_map) would remove that traffic.
def _im2col_s2(x):
    """Conv2d(k=4, s=2, p=1) patches.  x: [N,H,W,C8] -> [N*Ho*Wo, 16*C8]."""
    N, H, W, C = x.shape
    xp = jnp.pad(x, ((0, 0), (1, 1), (1, 1), (0, 0)))
    Ho, Wo = H // 2, W // 2
    cols = []
    for kh in range(4):
        for kw in range(4):
            cols.append(xp[:, kh:kh + 2 * Ho - 1:2, kw:kw + 2 * Wo - 1:2, :])
    p = jnp.stack(cols, axis=3)                       # [N,Ho,Wo,16,C8]
    return p.reshape(N * Ho * Wo, 16 * C), (N, Ho, Wo)


def conv_down(x, params, *, pre_act):
    """Conv2d(k=4,s=2,p=1) + folded bias/eval-BN (+ optional pre-activation).
    x: [N,H,W,Cin] (real channels)  ->  [N,H/2,W/2,Cout] bf16."""
    N, H, W, C = x.shape
    c8 = _round_up(C, 8)                              # 16*c8 is a 128-multiple
    if c8 != C:
        x = jnp.pad(x, ((0, 0), (0, 0), (0, 0), (0, c8 - C)))
    patches, (N, Ho, Wo) = _im2col_s2(x.astype(jnp.bfloat16))
    out = fused_conv_matmul(patches[None], params["w"], params["shift"],
                            pre_act=pre_act)
    cout = params["cout"]
    return out[0, :, :cout].reshape(N, Ho, Wo, cout)


def conv_up(x, params, *, pre_act, post_act=None, out_dtype=jnp.bfloat16):
    """ConvTranspose2d(k=4,s=2,p=1) via 4 output-phase 2x2/stride-1 sub-convs.

    Phase (py,px): out[2m+py, 2n+px] = sum_{a,b in {0,1}}
        W_t[py+2a, px+2b] . x[m+py-1+a, n+px-1+b]
    (only the 4 non-zero taps of the zero-dilated formulation per phase).
    x: [N,H,W,Cin] (real channels)  ->  [N,2H,2W,Cout].
    """
    # TODO(synk): loading real PyTorch ConvTranspose2d weights requires the
    # spatial flip + [Cin,Cout,kH,kW]->per-phase-K remap matching this layout.
    N, H, W, C = x.shape
    c32 = _round_up(C, 32)                            # 4*c32 is a 128-multiple
    if c32 != C:
        x = jnp.pad(x, ((0, 0), (0, 0), (0, 0), (0, c32 - C)))
    x = x.astype(jnp.bfloat16)
    xp = jnp.pad(x, ((0, 0), (1, 1), (1, 1), (0, 0)))
    phase_patches = []
    for py in range(2):
        for px in range(2):
            cols = []
            for a in range(2):
                for b in range(2):
                    cols.append(xp[:, py + a:py + a + H, px + b:px + b + W, :])
            p = jnp.stack(cols, axis=3).reshape(N * H * W, 4 * c32)
            phase_patches.append(p)
    patches = jnp.stack(phase_patches, axis=0)        # [4, M, 4*c32]

    out = fused_conv_matmul(patches, params["w"], params["shift"],
                            pre_act=pre_act, post_act=post_act,
                            out_dtype=out_dtype)
    cout = params["cout"]
    # TODO(synk): write the 4 phases straight into an (N,H,2,W,2*Coutp) buffer
    # via the out_spec (phase g -> dim-2 index g//2, last-dim block g%2) so
    # this transpose (a full HBM round-trip of the activation) disappears.
    out = out[:, :, :cout].reshape(2, 2, N, H, W, cout)
    out = jnp.transpose(out, (2, 3, 0, 4, 1, 5))      # [N, H, py, W, px, C]
    return out.reshape(N, 2 * H, 2 * W, cout)


# ----------------------------------------------------------------------------
# Deterministic synthetic parameters (Conv weight + bias + eval-BN folded)
# ----------------------------------------------------------------------------
def _make_conv_params(key, n_groups, ntaps, cin, cin_pad, cout,
                      *, bias, bn, eps=1e-5):
    """Weight: [n_groups, ntaps*cin_pad, cout_p] bf16 with BN scale folded into
    the columns; shift: [1, cout_p] f32.  K layout is tap-major; rows of
    padded input channels and columns of padded output channels are zero.
    TODO(synk): loading real PyTorch Conv2d weights requires a matching
    (kH,kW,Cin)->K reshape of [Cout,Cin,4,4]."""
    cout_p = _round_up(cout, LANE)
    kp = ntaps * cin_pad
    assert kp % LANE == 0
    k1, k2, k3, k4, k5, k6 = jax.random.split(key, 6)
    w = 0.05 * jax.random.normal(k1, (n_groups, kp, cout_p), jnp.float32)
    b = (0.05 * jax.random.normal(k2, (cout_p,), jnp.float32)
         if bias else jnp.zeros((cout_p,), jnp.float32))
    if bn:
        gamma = 1.0 + 0.1 * jax.random.normal(k3, (cout_p,), jnp.float32)
        beta = 0.1 * jax.random.normal(k4, (cout_p,), jnp.float32)
        mean = 0.1 * jax.random.normal(k5, (cout_p,), jnp.float32)
        var = jnp.abs(jax.random.normal(k6, (cout_p,), jnp.float32)) + 0.5
        scale = gamma / jnp.sqrt(var + eps)
        shift = beta - mean * scale + b * scale
    else:
        scale = jnp.ones((cout_p,), jnp.float32)
        shift = b
    row_live = ((jnp.arange(kp) % cin_pad) < cin).astype(jnp.float32)
    col_live = (jnp.arange(cout_p) < cout).astype(jnp.float32)
    w = w * row_live[None, :, None] * (scale * col_live)[None, None, :]
    shift = (shift * col_live).reshape(1, cout_p)
    return {"w": w.astype(jnp.bfloat16), "shift": shift, "cout": cout}


def make_unet_params(key, input_nc, output_nc, num_downs, ngf):
    keys = iter(jax.random.split(key, 2 * num_downs + 2))

    def block(outer_nc, inner_nc, in_nc, sub, outermost=False, innermost=False):
        if in_nc is None:
            in_nc = outer_nc
        up_in = inner_nc if innermost else 2 * inner_nc
        down_cinp = _round_up(in_nc, 8)     # compact K for the k=4 down conv
        up_cinp = _round_up(up_in, 32)      # compact K for the 2x2 phase conv
        if outermost:
            # down = [Conv(no bias, no norm)], up = [ReLU, ConvT(bias), Tanh]
            down = _make_conv_params(next(keys), 1, 16, in_nc, down_cinp,
                                     inner_nc, bias=False, bn=False)
            up = _make_conv_params(next(keys), 4, 4, up_in, up_cinp,
                                   outer_nc, bias=True, bn=False)
        elif innermost:
            # down = [LReLU, Conv(no bias)], up = [ReLU, ConvT(no bias), BN]
            down = _make_conv_params(next(keys), 1, 16, in_nc, down_cinp,
                                     inner_nc, bias=False, bn=False)
            up = _make_conv_params(next(keys), 4, 4, up_in, up_cinp,
                                   outer_nc, bias=False, bn=True)
        else:
            # down = [LReLU, Conv(no bias), BN], up = [ReLU, ConvT(no bias), BN]
            down = _make_conv_params(next(keys), 1, 16, in_nc, down_cinp,
                                     inner_nc, bias=False, bn=True)
            up = _make_conv_params(next(keys), 4, 4, up_in, up_cinp,
                                   outer_nc, bias=False, bn=True)
        return {"down": down, "up": up, "sub": sub,
                "outermost": outermost, "innermost": innermost}

    b = block(ngf * 8, ngf * 8, None, None, innermost=True)
    for _ in range(num_downs - 5):
        b = block(ngf * 8, ngf * 8, None, b)
    b = block(ngf * 4, ngf * 8, None, b)
    b = block(ngf * 2, ngf * 4, None, b)
    b = block(ngf, ngf * 2, None, b)
    b = block(output_nc, ngf, input_nc, b, outermost=True)
    return b


# ----------------------------------------------------------------------------
# UNet forward (recursion + skip concat in plain JAX, conv hot path in Pallas)
# ----------------------------------------------------------------------------
def unet_block_forward(params, x):
    # TODO(synk): fuse the skip concat (write the up-conv output at a channel
    # offset of a pre-allocated buffer via input_output_aliases) to remove a
    # full HBM round-trip of x and u at every UNet level.
    if params["outermost"]:
        d = conv_down(x, params["down"], pre_act=None)
        s = unet_block_forward(params["sub"], d)
        return conv_up(s, params["up"], pre_act="relu", post_act="tanh",
                       out_dtype=jnp.float32)
    elif params["innermost"]:
        d = conv_down(x, params["down"], pre_act="leaky_relu")
        u = conv_up(d, params["up"], pre_act="relu")
        return jnp.concatenate([x, u], axis=-1)
    else:
        d = conv_down(x, params["down"], pre_act="leaky_relu")
        s = unet_block_forward(params["sub"], d)
        u = conv_up(s, params["up"], pre_act="relu")
        return jnp.concatenate([x, u], axis=-1)


def unet_generator_forward(params, x_nchw, output_nc):
    x = jnp.transpose(x_nchw, (0, 2, 3, 1)).astype(jnp.bfloat16)  # NCHW -> NHWC
    y = unet_block_forward(params, x)
    y = y[..., :output_nc].astype(jnp.float32)
    return jnp.transpose(y, (0, 3, 1, 2))                         # NHWC -> NCHW


# ----------------------------------------------------------------------------
if __name__ == "__main__":
    # Small configuration consistent with the module's constructor:
    # num_downs=5 is the minimum the recursion supports -> spatial must be >= 32.
    INPUT_NC, OUTPUT_NC, NUM_DOWNS, NGF = 3, 1, 5, 8
    N, H, W = 2, 32, 32

    key = jax.random.PRNGKey(0)
    kparams, kx = jax.random.split(key)
    params = make_unet_params(kparams, INPUT_NC, OUTPUT_NC, NUM_DOWNS, NGF)
    x = jax.random.normal(kx, (N, INPUT_NC, H, W), jnp.float32)

    fwd = jax.jit(lambda inp: unet_generator_forward(params, inp, OUTPUT_NC))
    out = jax.block_until_ready(fwd(x))

    assert out.shape == (N, OUTPUT_NC, H, W), out.shape
    assert bool(jnp.all(jnp.isfinite(out)))
    # outermost block ends in Tanh -> values in [-1, 1]
    assert bool(jnp.all(jnp.abs(out) <= 1.0 + 1e-6))
    print("KERNEL_OK")
</pallas_src>

<mosaic_0001>
module attributes {stable_mosaic.version = 11 : i64} {
  func.func @_fused_conv_mm_kernel(%arg0: i32, %arg1: i32, %arg2: i32, %arg3: memref<1x256x128xbf16, #tpu.memory_space<vmem>>, %arg4: memref<1x128x128xbf16, #tpu.memory_space<vmem>>, %arg5: memref<1x128xf32, #tpu.memory_space<vmem>>, %arg6: memref<1x256x128xbf16, #tpu.memory_space<vmem>>, %arg7: memref<256x128xf32, #tpu.memory_space<vmem>>) attributes {dimension_semantics = [#tpu.dimension_semantics<parallel>, #tpu.dimension_semantics<parallel>, #tpu.dimension_semantics<arbitrary>], iteration_bounds = array<i64: 1, 2, 1>, scalar_prefetch = 0 : i64, scratch_operands = 1 : i64, tpu.core_type = #tpu.core_type<tc>, window_params = [{transform_indices = @transform_0, window_bounds = array<i64: 1, 256, 128>}, {transform_indices = @transform_1, window_bounds = array<i64: 1, 128, 128>}, {pipeline_mode = #tpu.pipeline_mode<synchronous>, transform_indices = @transform_2, window_bounds = array<i64: 1, 128>}, {transform_indices = @transform_3, window_bounds = array<i64: 1, 256, 128>}]} {
    %c0_i32 = arith.constant 0 : i32
    %0 = arith.cmpi eq, %arg2, %c0_i32 : i32
    %1 = arith.extui %0 : i1 to i32
    %c0_i32_0 = arith.constant 0 : i32
    %2 = arith.cmpi ne, %1, %c0_i32_0 : i32
    scf.if %2 {
      %cst_12 = arith.constant 0.000000e+00 : f32
      %14 = vector.broadcast %cst_12 : f32 to vector<256x128xf32>
      %c0_13 = arith.constant 0 : index
      %c0_14 = arith.constant 0 : index
      %15 = vector.load %arg7[%c0_13, %c0_14] : memref<256x128xf32, #tpu.memory_space<vmem>>, vector<256x128xf32>
      tpu.vector_store %arg7[%c0_13, %c0_14], %14 {strides = array<i32>} : memref<256x128xf32, #tpu.memory_space<vmem>>, vector<256x128xf32>,
    } else {
    }
    %c0 = arith.constant 0 : index
    %c0_1 = arith.constant 0 : index
    %c0_2 = arith.constant 0 : index
    %3 = vector.load %arg3[%c0, %c0_1, %c0_2] : memref<1x256x128xbf16, #tpu.memory_space<vmem>>, vector<1x256x128xbf16>
    %4 = vector.shape_cast %3 : vector<1x256x128xbf16> to vector<256x128xbf16>
    %c0_3 = arith.constant 0 : index
    %c0_4 = arith.constant 0 : index
    %c0_5 = arith.constant 0 : index
    %5 = vector.load %arg4[%c0_3, %c0_4, %c0_5] : memref<1x128x128xbf16, #tpu.memory_space<vmem>>, vector<1x128x128xbf16>
    %6 = vector.shape_cast %5 : vector<1x128x128xbf16> to vector<128x128xbf16>
    %c0_6 = arith.constant 0 : index
    %c0_7 = arith.constant 0 : index
    %7 = vector.load %arg7[%c0_6, %c0_7] : memref<256x128xf32, #tpu.memory_space<vmem>>, vector<256x128xf32>
    %cst = arith.constant dense<0.000000e+00> : vector<256x128xf32>
    %8 = tpu.matmul %4, %6, %cst {dimension_numbers = #tpu.dot_dimension_numbers<[1], [0], [0], [1], [0, 0, 1, 1], [], []>} : vector<256x128xbf16>, vector<128x128xbf16>, vector<256x128xf32> -> vector<256x128xf32>
    %9 = arith.addf %7, %8 : vector<256x128xf32>
    %c0_8 = arith.constant 0 : index
    %c0_9 = arith.constant 0 : index
    %10 = vector.load %arg7[%c0_8, %c0_9] : memref<256x128xf32, #tpu.memory_space<vmem>>, vector<256x128xf32>
    tpu.vector_store %arg7[%c0_8, %c0_9], %9 {strides = array<i32>} : memref<256x128xf32, #tpu.memory_space<vmem>>, vector<256x128xf32>,
    %c0_i32_10 = arith.constant 0 : i32
    %11 = arith.cmpi eq, %arg2, %c0_i32_10 : i32
    %12 = arith.extui %11 : i1 to i32
    %c0_i32_11 = arith.constant 0 : i32
    %13 = arith.cmpi ne, %12, %c0_i32_11 : i32
    scf.if %13 {
      %c0_12 = arith.constant 0 : index
      %c0_13 = arith.constant 0 : index
      %14 = vector.load %arg7[%c0_12, %c0_13] : memref<256x128xf32, #tpu.memory_space<vmem>>, vector<256x128xf32>
      %c0_14 = arith.constant 0 : index
      %c0_15 = arith.constant 0 : index
      %15 = vector.load %arg5[%c0_14, %c0_15] : memref<1x128xf32, #tpu.memory_space<vmem>>, vector<1x128xf32>
      %16 = vector.broadcast %15 : vector<1x128xf32> to vector<256x128xf32>
      %17 = arith.addf %14, %16 : vector<256x128xf32>
      %18 = arith.truncf %17 : vector<256x128xf32> to vector<256x128xbf16>
      %c0_16 = arith.constant 0 : index
      %c0_17 = arith.constant 0 : index
      %c0_18 = arith.constant 0 : index
      %19 = vector.load %arg6[%c0_16, %c0_17, %c0_18] : memref<1x256x128xbf16, #tpu.memory_space<vmem>>, vector<1x256x128xbf16>
      %20 = vector.shape_cast %19 : vector<1x256x128xbf16> to vector<256x128xbf16>
      %21 = vector.shape_cast %18 : vector<256x128xbf16> to vector<1x256x128xbf16>
      tpu.vector_store %arg6[%c0_16, %c0_17, %c0_18], %21 {strides = array<i32>} : memref<1x256x128xbf16, #tpu.memory_space<vmem>>, vector<1x256x128xbf16>,
    } else {
    }
    return
  }
  func.func @transform_0(%arg0: i32, %arg1: i32, %arg2: i32) -> (i32, i32, i32) {
    %c0_i32 = arith.constant 0 : i32
    return %arg0, %arg1, %arg2 : i32, i32, i32
  }
  func.func @transform_1(%arg0: i32, %arg1: i32, %arg2: i32) -> (i32, i32, i32) {
    %c0_i32 = arith.constant 0 : i32
    %c0_i32_0 = arith.constant 0 : i32
    %c0_i32_1 = arith.constant 0 : i32
    return %arg0, %c0_i32, %c0_i32_0 : i32, i32, i32
  }
  func.func @transform_2(%arg0: i32, %arg1: i32, %arg2: i32) -> (i32, i32) {
    %c0_i32 = arith.constant 0 : i32
    %c0_i32_0 = arith.constant 0 : i32
    %c0_i32_1 = arith.constant 0 : i32
    return %c0_i32, %c0_i32_0 : i32, i32
  }
  func.func @transform_3(%arg0: i32, %arg1: i32, %arg2: i32) -> (i32, i32, i32) {
    %c0_i32 = arith.constant 0 : i32
    %c0_i32_0 = arith.constant 0 : i32
    return %arg0, %arg1, %c0_i32 : i32, i32, i32
  }
}

module attributes {stable_mosaic.version = 11 : i64} {
  func.func @_fused_conv_mm_kernel(%arg0: i32, %arg1: i32, %arg2: i32, %arg3: memref<1x64x128xbf16, #tpu.memory_space<vmem>>, %arg4: memref<1x128x128xbf16, #tpu.memory_space<vmem>>, %arg5: memref<1x128xf32, #tpu.memory_space<vmem>>, %arg6: memref<1x64x128xbf16, #tpu.memory_space<vmem>>, %arg7: memref<64x128xf32, #tpu.memory_space<vmem>>) attributes {dimension_semantics = [#tpu.dimension_semantics<parallel>, #tpu.dimension_semantics<parallel>, #tpu.dimension_semantics<arbitrary>], iteration_bounds = array<i64: 1, 2, 1>, scalar_prefetch = 0 : i64, scratch_operands = 1 : i64, tpu.core_type = #tpu.core_type<tc>, window_params = [{transform_indices = @transform_0, window_bounds = array<i64: 1, 64, 128>}, {transform_indices = @transform_1, window_bounds = array<i64: 1, 128, 128>}, {pipeline_mode = #tpu.pipeline_mode<synchronous>, transform_indices = @transform_2, window_bounds = array<i64: 1, 128>}, {transform_indices = @transform_3, window_bounds = array<i64: 1, 64, 128>}]} {
    %c0_i32 = arith.constant 0 : i32
    %0 = arith.cmpi eq, %arg2, %c0_i32 : i32
    %1 = arith.extui %0 : i1 to i32
    %c0_i32_0 = arith.constant 0 : i32
    %2 = arith.cmpi ne, %1, %c0_i32_0 : i32
    scf.if %2 {
      %cst_14 = arith.constant 0.000000e+00 : f32
      %19 = vector.broadcast %cst_14 : f32 to vector<64x128xf32>
      %c0_15 = arith.constant 0 : index
      %c0_16 = arith.constant 0 : index
      %20 = vector.load %arg7[%c0_15, %c0_16] : memref<64x128xf32, #tpu.memory_space<vmem>>, vector<64x128xf32>
      tpu.vector_store %arg7[%c0_15, %c0_16], %19 {strides = array<i32>} : memref<64x128xf32, #tpu.memory_space<vmem>>, vector<64x128xf32>,
    } else {
    }
    %c0 = arith.constant 0 : index
    %c0_1 = arith.constant 0 : index
    %c0_2 = arith.constant 0 : index
    %3 = vector.load %arg3[%c0, %c0_1, %c0_2] : memref<1x64x128xbf16, #tpu.memory_space<vmem>>, vector<1x64x128xbf16>
    %4 = vector.shape_cast %3 : vector<1x64x128xbf16> to vector<64x128xbf16>
    %cst = arith.constant 0.000000e+00 : bf16
    %5 = vector.broadcast %cst : bf16 to vector<64x128xbf16>
    %6 = arith.cmpf ogt, %4, %5 : vector<64x128xbf16>
    %cst_3 = arith.constant 2.001950e-01 : bf16
    %7 = vector.broadcast %cst_3 : bf16 to vector<64x128xbf16>
    %8 = arith.mulf %7, %4 : vector<64x128xbf16>
    %9 = arith.select %6, %4, %8 : vector<64x128xi1>, vector<64x128xbf16>
    %c0_4 = arith.constant 0 : index
    %c0_5 = arith.constant 0 : index
    %c0_6 = arith.constant 0 : index
    %10 = vector.load %arg4[%c0_4, %c0_5, %c0_6] : memref<1x128x128xbf16, #tpu.memory_space<vmem>>, vector<1x128x128xbf16>
    %11 = vector.shape_cast %10 : vector<1x128x128xbf16> to vector<128x128xbf16>
    %c0_7 = arith.constant 0 : index
    %c0_8 = arith.constant 0 : index
    %12 = vector.load %arg7[%c0_7, %c0_8] : memref<64x128xf32, #tpu.memory_space<vmem>>, vector<64x128xf32>
    %cst_9 = arith.constant dense<0.000000e+00> : vector<64x128xf32>
    %13 = tpu.matmul %9, %11, %cst_9 {dimension_numbers = #tpu.dot_dimension_numbers<[1], [0], [0], [1], [0, 0, 1, 1], [], []>} : vector<64x128xbf16>, vector<128x128xbf16>, vector<64x128xf32> -> vector<64x128xf32>
    %14 = arith.addf %12, %13 : vector<64x128xf32>
    %c0_10 = arith.constant 0 : index
    %c0_11 = arith.constant 0 : index
    %15 = vector.load %arg7[%c0_10, %c0_11] : memref<64x128xf32, #tpu.memory_space<vmem>>, vector<64x128xf32>
    tpu.vector_store %arg7[%c0_10, %c0_11], %14 {strides = array<i32>} : memref<64x128xf32, #tpu.memory_space<vmem>>, vector<64x128xf32>,
    %c0_i32_12 = arith.constant 0 : i32
    %16 = arith.cmpi eq, %arg2, %c0_i32_12 : i32
    %17 = arith.extui %16 : i1 to i32
    %c0_i32_13 = arith.constant 0 : i32
    %18 = arith.cmpi ne, %17, %c0_i32_13 : i32
    scf.if %18 {
      %c0_14 = arith.constant 0 : index
      %c0_15 = arith.constant 0 : index
      %19 = vector.load %arg7[%c0_14, %c0_15] : memref<64x128xf32, #tpu.memory_space<vmem>>, vector<64x128xf32>
      %c0_16 = arith.constant 0 : index
      %c0_17 = arith.constant 0 : index
      %20 = vector.load %arg5[%c0_16, %c0_17] : memref<1x128xf32, #tpu.memory_space<vmem>>, vector<1x128xf32>
      %21 = vector.broadcast %20 : vector<1x128xf32> to vector<64x128xf32>
      %22 = arith.addf %19, %21 : vector<64x128xf32>
      %23 = arith.truncf %22 : vector<64x128xf32> to vector<64x128xbf16>
      %c0_18 = arith.constant 0 : index
      %c0_19 = arith.constant 0 : index
      %c0_20 = arith.constant 0 : index
      %24 = vector.load %arg6[%c0_18, %c0_19, %c0_20] : memref<1x64x128xbf16, #tpu.memory_space<vmem>>, vector<1x64x128xbf16>
      %25 = vector.shape_cast %24 : vector<1x64x128xbf16> to vector<64x128xbf16>
      %26 = vector.shape_cast %23 : vector<64x128xbf16> to vector<1x64x128xbf16>
      tpu.vector_store %arg6[%c0_18, %c0_19, %c0_20], %26 {strides = array<i32>} : memref<1x64x128xbf16, #tpu.memory_space<vmem>>, vector<1x64x128xbf16>,
    } else {
    }
    return
  }
  func.func @transform_0(%arg0: i32, %arg1: i32, %arg2: i32) -> (i32, i32, i32) {
    %c0_i32 = arith.constant 0 : i32
    return %arg0, %arg1, %arg2 : i32, i32, i32
  }
  func.func @transform_1(%arg0: i32, %arg1: i32, %arg2: i32) -> (i32, i32, i32) {
    %c0_i32 = arith.constant 0 : i32
    %c0_i32_0 = arith.constant 0 : i32
    %c0_i32_1 = arith.constant 0 : i32
    return %arg0, %c0_i32, %c0_i32_0 : i32, i32, i32
  }
  func.func @transform_2(%arg0: i32, %arg1: i32, %arg2: i32) -> (i32, i32) {
    %c0_i32 = arith.constant 0 : i32
    %c0_i32_0 = arith.constant 0 : i32
    %c0_i32_1 = arith.constant 0 : i32
    return %c0_i32, %c0_i32_0 : i32, i32
  }
  func.func @transform_3(%arg0: i32, %arg1: i32, %arg2: i32) -> (i32, i32, i32) {
    %c0_i32 = arith.constant 0 : i32
    %c0_i32_0 = arith.constant 0 : i32
    return %arg0, %arg1, %c0_i32 : i32, i32, i32
  }
}

module attributes {stable_mosaic.version = 11 : i64} {
  func.func @_fused_conv_mm_kernel(%arg0: i32, %arg1: i32, %arg2: i32, %arg3: memref<1x16x256xbf16, #tpu.memory_space<vmem>>, %arg4: memref<1x256x128xbf16, #tpu.memory_space<vmem>>, %arg5: memref<1x128xf32, #tpu.memory_space<vmem>>, %arg6: memref<1x16x128xbf16, #tpu.memory_space<vmem>>, %arg7: memref<16x128xf32, #tpu.memory_space<vmem>>) attributes {dimension_semantics = [#tpu.dimension_semantics<parallel>, #tpu.dimension_semantics<parallel>, #tpu.dimension_semantics<arbitrary>], iteration_bounds = array<i64: 1, 2, 1>, scalar_prefetch = 0 : i64, scratch_operands = 1 : i64, tpu.core_type = #tpu.core_type<tc>, window_params = [{transform_indices = @transform_0, window_bounds = array<i64: 1, 16, 256>}, {transform_indices = @transform_1, window_bounds = array<i64: 1, 256, 128>}, {pipeline_mode = #tpu.pipeline_mode<synchronous>, transform_indices = @transform_2, window_bounds = array<i64: 1, 128>}, {transform_indices = @transform_3, window_bounds = array<i64: 1, 16, 128>}]} {
    %c0_i32 = arith.constant 0 : i32
    %0 = arith.cmpi eq, %arg2, %c0_i32 : i32
    %1 = arith.extui %0 : i1 to i32
    %c0_i32_0 = arith.constant 0 : i32
    %2 = arith.cmpi ne, %1, %c0_i32_0 : i32
    scf.if %2 {
      %cst_14 = arith.constant 0.000000e+00 : f32
      %19 = vector.broadcast %cst_14 : f32 to vector<16x128xf32>
      %c0_15 = arith.constant 0 : index
      %c0_16 = arith.constant 0 : index
      %20 = vector.load %arg7[%c0_15, %c0_16] : memref<16x128xf32, #tpu.memory_space<vmem>>, vector<16x128xf32>
      tpu.vector_store %arg7[%c0_15, %c0_16], %19 {strides = array<i32>} : memref<16x128xf32, #tpu.memory_space<vmem>>, vector<16x128xf32>,
    } else {
    }
    %c0 = arith.constant 0 : index
    %c0_1 = arith.constant 0 : index
    %c0_2 = arith.constant 0 : index
    %3 = vector.load %arg3[%c0, %c0_1, %c0_2] : memref<1x16x256xbf16, #tpu.memory_space<vmem>>, vector<1x16x256xbf16>
    %4 = vector.shape_cast %3 : vector<1x16x256xbf16> to vector<16x256xbf16>
    %cst = arith.constant 0.000000e+00 : bf16
    %5 = vector.broadcast %cst : bf16 to vector<16x256xbf16>
    %6 = arith.cmpf ogt, %4, %5 : vector<16x256xbf16>
    %cst_3 = arith.constant 2.001950e-01 : bf16
    %7 = vector.broadcast %cst_3 : bf16 to vector<16x256xbf16>
    %8 = arith.mulf %7, %4 : vector<16x256xbf16>
    %9 = arith.select %6, %4, %8 : vector<16x256xi1>, vector<16x256xbf16>
    %c0_4 = arith.constant 0 : index
    %c0_5 = arith.constant 0 : index
    %c0_6 = arith.constant 0 : index
    %10 = vector.load %arg4[%c0_4, %c0_5, %c0_6] : memref<1x256x128xbf16, #tpu.memory_space<vmem>>, vector<1x256x128xbf16>
    %11 = vector.shape_cast %10 : vector<1x256x128xbf16> to vector<256x128xbf16>
    %c0_7 = arith.constant 0 : index
    %c0_8 = arith.constant 0 : index
    %12 = vector.load %arg7[%c0_7, %c0_8] : memref<16x128xf32, #tpu.memory_space<vmem>>, vector<16x128xf32>
    %cst_9 = arith.constant dense<0.000000e+00> : vector<16x128xf32>
    %13 = tpu.matmul %9, %11, %cst_9 {dimension_numbers = #tpu.dot_dimension_numbers<[1], [0], [0], [1], [0, 0, 1, 1], [], []>} : vector<16x256xbf16>, vector<256x128xbf16>, vector<16x128xf32> -> vector<16x128xf32>
    %14 = arith.addf %12, %13 : vector<16x128xf32>
    %c0_10 = arith.constant 0 : index
    %c0_11 = arith.constant 0 : index
    %15 = vector.load %arg7[%c0_10, %c0_11] : memref<16x128xf32, #tpu.memory_space<vmem>>, vector<16x128xf32>
    tpu.vector_store %arg7[%c0_10, %c0_11], %14 {strides = array<i32>} : memref<16x128xf32, #tpu.memory_space<vmem>>, vector<16x128xf32>,
    %c0_i32_12 = arith.constant 0 : i32
    %16 = arith.cmpi eq, %arg2, %c0_i32_12 : i32
    %17 = arith.extui %16 : i1 to i32
    %c0_i32_13 = arith.constant 0 : i32
    %18 = arith.cmpi ne, %17, %c0_i32_13 : i32
    scf.if %18 {
      %c0_14 = arith.constant 0 : index
      %c0_15 = arith.constant 0 : index
      %19 = vector.load %arg7[%c0_14, %c0_15] : memref<16x128xf32, #tpu.memory_space<vmem>>, vector<16x128xf32>
      %c0_16 = arith.constant 0 : index
      %c0_17 = arith.constant 0 : index
      %20 = vector.load %arg5[%c0_16, %c0_17] : memref<1x128xf32, #tpu.memory_space<vmem>>, vector<1x128xf32>
      %21 = vector.broadcast %20 : vector<1x128xf32> to vector<16x128xf32>
      %22 = arith.addf %19, %21 : vector<16x128xf32>
      %23 = arith.truncf %22 : vector<16x128xf32> to vector<16x128xbf16>
      %c0_18 = arith.constant 0 : index
      %c0_19 = arith.constant 0 : index
      %c0_20 = arith.constant 0 : index
      %24 = vector.load %arg6[%c0_18, %c0_19, %c0_20] : memref<1x16x128xbf16, #tpu.memory_space<vmem>>, vector<1x16x128xbf16>
      %25 = vector.shape_cast %24 : vector<1x16x128xbf16> to vector<16x128xbf16>
      %26 = vector.shape_cast %23 : vector<16x128xbf16> to vector<1x16x128xbf16>
      tpu.vector_store %arg6[%c0_18, %c0_19, %c0_20], %26 {strides = array<i32>} : memref<1x16x128xbf16, #tpu.memory_space<vmem>>, vector<1x16x128xbf16>,
    } else {
    }
    return
  }
  func.func @transform_0(%arg0: i32, %arg1: i32, %arg2: i32) -> (i32, i32, i32) {
    %c0_i32 = arith.constant 0 : i32
    return %arg0, %arg1, %arg2 : i32, i32, i32
  }
  func.func @transform_1(%arg0: i32, %arg1: i32, %arg2: i32) -> (i32, i32, i32) {
    %c0_i32 = arith.constant 0 : i32
    %c0_i32_0 = arith.constant 0 : i32
    %c0_i32_1 = arith.constant 0 : i32
    return %arg0, %c0_i32, %c0_i32_0 : i32, i32, i32
  }
  func.func @transform_2(%arg0: i32, %arg1: i32, %arg2: i32) -> (i32, i32) {
    %c0_i32 = arith.constant 0 : i32
    %c0_i32_0 = arith.constant 0 : i32
    %c0_i32_1 = arith.constant 0 : i32
    return %c0_i32, %c0_i32_0 : i32, i32
  }
  func.func @transform_3(%arg0: i32, %arg1: i32, %arg2: i32) -> (i32, i32, i32) {
    %c0_i32 = arith.constant 0 : i32
    %c0_i32_0 = arith.constant 0 : i32
    return %arg0, %arg1, %c0_i32 : i32, i32, i32
  }
}

module attributes {stable_mosaic.version = 11 : i64} {
  func.func @_fused_conv_mm_kernel(%arg0: i32, %arg1: i32, %arg2: i32, %arg3: memref<1x8x512xbf16, #tpu.memory_space<vmem>>, %arg4: memref<1x512x128xbf16, #tpu.memory_space<vmem>>, %arg5: memref<1x128xf32, #tpu.memory_space<vmem>>, %arg6: memref<1x8x128xbf16, #tpu.memory_space<vmem>>, %arg7: memref<8x128xf32, #tpu.memory_space<vmem>>) attributes {dimension_semantics = [#tpu.dimension_semantics<parallel>, #tpu.dimension_semantics<parallel>, #tpu.dimension_semantics<arbitrary>], iteration_bounds = array<i64: 1, 1, 1>, scalar_prefetch = 0 : i64, scratch_operands = 1 : i64, tpu.core_type = #tpu.core_type<tc>, window_params = [{transform_indices = @transform_0, window_bounds = array<i64: 1, 8, 512>}, {transform_indices = @transform_1, window_bounds = array<i64: 1, 512, 128>}, {pipeline_mode = #tpu.pipeline_mode<synchronous>, transform_indices = @transform_2, window_bounds = array<i64: 1, 128>}, {transform_indices = @transform_3, window_bounds = array<i64: 1, 8, 128>}]} {
    %c0_i32 = arith.constant 0 : i32
    %0 = arith.cmpi eq, %arg2, %c0_i32 : i32
    %1 = arith.extui %0 : i1 to i32
    %c0_i32_0 = arith.constant 0 : i32
    %2 = arith.cmpi ne, %1, %c0_i32_0 : i32
    scf.if %2 {
      %cst_14 = arith.constant 0.000000e+00 : f32
      %19 = vector.broadcast %cst_14 : f32 to vector<8x128xf32>
      %c0_15 = arith.constant 0 : index
      %c0_16 = arith.constant 0 : index
      %20 = vector.load %arg7[%c0_15, %c0_16] : memref<8x128xf32, #tpu.memory_space<vmem>>, vector<8x128xf32>
      tpu.vector_store %arg7[%c0_15, %c0_16], %19 {strides = array<i32>} : memref<8x128xf32, #tpu.memory_space<vmem>>, vector<8x128xf32>,
    } else {
    }
    %c0 = arith.constant 0 : index
    %c0_1 = arith.constant 0 : index
    %c0_2 = arith.constant 0 : index
    %3 = vector.load %arg3[%c0, %c0_1, %c0_2] : memref<1x8x512xbf16, #tpu.memory_space<vmem>>, vector<1x8x512xbf16>
    %4 = vector.shape_cast %3 : vector<1x8x512xbf16> to vector<8x512xbf16>
    %cst = arith.constant 0.000000e+00 : bf16
    %5 = vector.broadcast %cst : bf16 to vector<8x512xbf16>
    %6 = arith.cmpf ogt, %4, %5 : vector<8x512xbf16>
    %cst_3 = arith.constant 2.001950e-01 : bf16
    %7 = vector.broadcast %cst_3 : bf16 to vector<8x512xbf16>
    %8 = arith.mulf %7, %4 : vector<8x512xbf16>
    %9 = arith.select %6, %4, %8 : vector<8x512xi1>, vector<8x512xbf16>
    %c0_4 = arith.constant 0 : index
    %c0_5 = arith.constant 0 : index
    %c0_6 = arith.constant 0 : index
    %10 = vector.load %arg4[%c0_4, %c0_5, %c0_6] : memref<1x512x128xbf16, #tpu.memory_space<vmem>>, vector<1x512x128xbf16>
    %11 = vector.shape_cast %10 : vector<1x512x128xbf16> to vector<512x128xbf16>
    %c0_7 = arith.constant 0 : index
    %c0_8 = arith.constant 0 : index
    %12 = vector.load %arg7[%c0_7, %c0_8] : memref<8x128xf32, #tpu.memory_space<vmem>>, vector<8x128xf32>
    %cst_9 = arith.constant dense<0.000000e+00> : vector<8x128xf32>
    %13 = tpu.matmul %9, %11, %cst_9 {dimension_numbers = #tpu.dot_dimension_numbers<[1], [0], [0], [1], [0, 0, 1, 1], [], []>} : vector<8x512xbf16>, vector<512x128xbf16>, vector<8x128xf32> -> vector<8x128xf32>
    %14 = arith.addf %12, %13 : vector<8x128xf32>
    %c0_10 = arith.constant 0 : index
    %c0_11 = arith.constant 0 : index
    %15 = vector.load %arg7[%c0_10, %c0_11] : memref<8x128xf32, #tpu.memory_space<vmem>>, vector<8x128xf32>
    tpu.vector_store %arg7[%c0_10, %c0_11], %14 {strides = array<i32>} : memref<8x128xf32, #tpu.memory_space<vmem>>, vector<8x128xf32>,
    %c0_i32_12 = arith.constant 0 : i32
    %16 = arith.cmpi eq, %arg2, %c0_i32_12 : i32
    %17 = arith.extui %16 : i1 to i32
    %c0_i32_13 = arith.constant 0 : i32
    %18 = arith.cmpi ne, %17, %c0_i32_13 : i32
    scf.if %18 {
      %c0_14 = arith.constant 0 : index
      %c0_15 = arith.constant 0 : index
      %19 = vector.load %arg7[%c0_14, %c0_15] : memref<8x128xf32, #tpu.memory_space<vmem>>, vector<8x128xf32>
      %c0_16 = arith.constant 0 : index
      %c0_17 = arith.constant 0 : index
      %20 = vector.load %arg5[%c0_16, %c0_17] : memref<1x128xf32, #tpu.memory_space<vmem>>, vector<1x128xf32>
      %21 = vector.broadcast %20 : vector<1x128xf32> to vector<8x128xf32>
      %22 = arith.addf %19, %21 : vector<8x128xf32>
      %23 = arith.truncf %22 : vector<8x128xf32> to vector<8x128xbf16>
      %c0_18 = arith.constant 0 : index
      %c0_19 = arith.constant 0 : index
      %c0_20 = arith.constant 0 : index
      %24 = vector.load %arg6[%c0_18, %c0_19, %c0_20] : memref<1x8x128xbf16, #tpu.memory_space<vmem>>, vector<1x8x128xbf16>
      %25 = vector.shape_cast %24 : vector<1x8x128xbf16> to vector<8x128xbf16>
      %26 = vector.shape_cast %23 : vector<8x128xbf16> to vector<1x8x128xbf16>
      tpu.vector_store %arg6[%c0_18, %c0_19, %c0_20], %26 {strides = array<i32>} : memref<1x8x128xbf16, #tpu.memory_space<vmem>>, vector<1x8x128xbf16>,
    } else {
    }
    return
  }
  func.func @transform_0(%arg0: i32, %arg1: i32, %arg2: i32) -> (i32, i32, i32) {
    %c0_i32 = arith.constant 0 : i32
    return %arg0, %arg1, %arg2 : i32, i32, i32
  }
  func.func @transform_1(%arg0: i32, %arg1: i32, %arg2: i32) -> (i32, i32, i32) {
    %c0_i32 = arith.constant 0 : i32
    %c0_i32_0 = arith.constant 0 : i32
    %c0_i32_1 = arith.constant 0 : i32
    return %arg0, %c0_i32, %c0_i32_0 : i32, i32, i32
  }
  func.func @transform_2(%arg0: i32, %arg1: i32, %arg2: i32) -> (i32, i32) {
    %c0_i32 = arith.constant 0 : i32
    %c0_i32_0 = arith.constant 0 : i32
    %c0_i32_1 = arith.constant 0 : i32
    return %c0_i32, %c0_i32_0 : i32, i32
  }
  func.func @transform_3(%arg0: i32, %arg1: i32, %arg2: i32) -> (i32, i32, i32) {
    %c0_i32 = arith.constant 0 : i32
    %c0_i32_0 = arith.constant 0 : i32
    return %arg0, %arg1, %c0_i32 : i32, i32, i32
  }
}

module attributes {stable_mosaic.version = 11 : i64} {
  func.func @_fused_conv_mm_kernel(%arg0: i32, %arg1: i32, %arg2: i32, %arg3: memref<1x8x1024xbf16, #tpu.memory_space<vmem>>, %arg4: memref<1x1024x128xbf16, #tpu.memory_space<vmem>>, %arg5: memref<1x128xf32, #tpu.memory_space<vmem>>, %arg6: memref<1x8x128xbf16, #tpu.memory_space<vmem>>, %arg7: memref<8x128xf32, #tpu.memory_space<vmem>>) attributes {dimension_semantics = [#tpu.dimension_semantics<parallel>, #tpu.dimension_semantics<parallel>, #tpu.dimension_semantics<arbitrary>], iteration_bounds = array<i64: 1, 1, 1>, scalar_prefetch = 0 : i64, scratch_operands = 1 : i64, tpu.core_type = #tpu.core_type<tc>, window_params = [{transform_indices = @transform_0, window_bounds = array<i64: 1, 8, 1024>}, {transform_indices = @transform_1, window_bounds = array<i64: 1, 1024, 128>}, {pipeline_mode = #tpu.pipeline_mode<synchronous>, transform_indices = @transform_2, window_bounds = array<i64: 1, 128>}, {transform_indices = @transform_3, window_bounds = array<i64: 1, 8, 128>}]} {
    %c0_i32 = arith.constant 0 : i32
    %0 = arith.cmpi eq, %arg2, %c0_i32 : i32
    %1 = arith.extui %0 : i1 to i32
    %c0_i32_0 = arith.constant 0 : i32
    %2 = arith.cmpi ne, %1, %c0_i32_0 : i32
    scf.if %2 {
      %cst_14 = arith.constant 0.000000e+00 : f32
      %19 = vector.broadcast %cst_14 : f32 to vector<8x128xf32>
      %c0_15 = arith.constant 0 : index
      %c0_16 = arith.constant 0 : index
      %20 = vector.load %arg7[%c0_15, %c0_16] : memref<8x128xf32, #tpu.memory_space<vmem>>, vector<8x128xf32>
      tpu.vector_store %arg7[%c0_15, %c0_16], %19 {strides = array<i32>} : memref<8x128xf32, #tpu.memory_space<vmem>>, vector<8x128xf32>,
    } else {
    }
    %c0 = arith.constant 0 : index
    %c0_1 = arith.constant 0 : index
    %c0_2 = arith.constant 0 : index
    %3 = vector.load %arg3[%c0, %c0_1, %c0_2] : memref<1x8x1024xbf16, #tpu.memory_space<vmem>>, vector<1x8x1024xbf16>
    %4 = vector.shape_cast %3 : vector<1x8x1024xbf16> to vector<8x1024xbf16>
    %cst = arith.constant 0.000000e+00 : bf16
    %5 = vector.broadcast %cst : bf16 to vector<8x1024xbf16>
    %6 = arith.cmpf ogt, %4, %5 : vector<8x1024xbf16>
    %cst_3 = arith.constant 2.001950e-01 : bf16
    %7 = vector.broadcast %cst_3 : bf16 to vector<8x1024xbf16>
    %8 = arith.mulf %7, %4 : vector<8x1024xbf16>
    %9 = arith.select %6, %4, %8 : vector<8x1024xi1>, vector<8x1024xbf16>
    %c0_4 = arith.constant 0 : index
    %c0_5 = arith.constant 0 : index
    %c0_6 = arith.constant 0 : index
    %10 = vector.load %arg4[%c0_4, %c0_5, %c0_6] : memref<1x1024x128xbf16, #tpu.memory_space<vmem>>, vector<1x1024x128xbf16>
    %11 = vector.shape_cast %10 : vector<1x1024x128xbf16> to vector<1024x128xbf16>
    %c0_7 = arith.constant 0 : index
    %c0_8 = arith.constant 0 : index
    %12 = vector.load %arg7[%c0_7, %c0_8] : memref<8x128xf32, #tpu.memory_space<vmem>>, vector<8x128xf32>
    %cst_9 = arith.constant dense<0.000000e+00> : vector<8x128xf32>
    %13 = tpu.matmul %9, %11, %cst_9 {dimension_numbers = #tpu.dot_dimension_numbers<[1], [0], [0], [1], [0, 0, 1, 1], [], []>} : vector<8x1024xbf16>, vector<1024x128xbf16>, vector<8x128xf32> -> vector<8x128xf32>
    %14 = arith.addf %12, %13 : vector<8x128xf32>
    %c0_10 = arith.constant 0 : index
    %c0_11 = arith.constant 0 : index
    %15 = vector.load %arg7[%c0_10, %c0_11] : memref<8x128xf32, #tpu.memory_space<vmem>>, vector<8x128xf32>
    tpu.vector_store %arg7[%c0_10, %c0_11], %14 {strides = array<i32>} : memref<8x128xf32, #tpu.memory_space<vmem>>, vector<8x128xf32>,
    %c0_i32_12 = arith.constant 0 : i32
    %16 = arith.cmpi eq, %arg2, %c0_i32_12 : i32
    %17 = arith.extui %16 : i1 to i32
    %c0_i32_13 = arith.constant 0 : i32
    %18 = arith.cmpi ne, %17, %c0_i32_13 : i32
    scf.if %18 {
      %c0_14 = arith.constant 0 : index
      %c0_15 = arith.constant 0 : index
      %19 = vector.load %arg7[%c0_14, %c0_15] : memref<8x128xf32, #tpu.memory_space<vmem>>, vector<8x128xf32>
      %c0_16 = arith.constant 0 : index
      %c0_17 = arith.constant 0 : index
      %20 = vector.load %arg5[%c0_16, %c0_17] : memref<1x128xf32, #tpu.memory_space<vmem>>, vector<1x128xf32>
      %21 = vector.broadcast %20 : vector<1x128xf32> to vector<8x128xf32>
      %22 = arith.addf %19, %21 : vector<8x128xf32>
      %23 = arith.truncf %22 : vector<8x128xf32> to vector<8x128xbf16>
      %c0_18 = arith.constant 0 : index
      %c0_19 = arith.constant 0 : index
      %c0_20 = arith.constant 0 : index
      %24 = vector.load %arg6[%c0_18, %c0_19, %c0_20] : memref<1x8x128xbf16, #tpu.memory_space<vmem>>, vector<1x8x128xbf16>
      %25 = vector.shape_cast %24 : vector<1x8x128xbf16> to vector<8x128xbf16>
      %26 = vector.shape_cast %23 : vector<8x128xbf16> to vector<1x8x128xbf16>
      tpu.vector_store %arg6[%c0_18, %c0_19, %c0_20], %26 {strides = array<i32>} : memref<1x8x128xbf16, #tpu.memory_space<vmem>>, vector<1x8x128xbf16>,
    } else {
    }
    return
  }
  func.func @transform_0(%arg0: i32, %arg1: i32, %arg2: i32) -> (i32, i32, i32) {
    %c0_i32 = arith.constant 0 : i32
    return %arg0, %arg1, %arg2 : i32, i32, i32
  }
  func.func @transform_1(%arg0: i32, %arg1: i32, %arg2: i32) -> (i32, i32, i32) {
    %c0_i32 = arith.constant 0 : i32
    %c0_i32_0 = arith.constant 0 : i32
    %c0_i32_1 = arith.constant 0 : i32
    return %arg0, %c0_i32, %c0_i32_0 : i32, i32, i32
  }
  func.func @transform_2(%arg0: i32, %arg1: i32, %arg2: i32) -> (i32, i32) {
    %c0_i32 = arith.constant 0 : i32
    %c0_i32_0 = arith.constant 0 : i32
    %c0_i32_1 = arith.constant 0 : i32
    return %c0_i32, %c0_i32_0 : i32, i32
  }
  func.func @transform_3(%arg0: i32, %arg1: i32, %arg2: i32) -> (i32, i32, i32) {
    %c0_i32 = arith.constant 0 : i32
    %c0_i32_0 = arith.constant 0 : i32
    return %arg0, %arg1, %c0_i32 : i32, i32, i32
  }
}

module attributes {stable_mosaic.version = 11 : i64} {
  func.func @_fused_conv_mm_kernel(%arg0: i32, %arg1: i32, %arg2: i32, %arg3: memref<1x8x256xbf16, #tpu.memory_space<vmem>>, %arg4: memref<1x256x128xbf16, #tpu.memory_space<vmem>>, %arg5: memref<1x128xf32, #tpu.memory_space<vmem>>, %arg6: memref<1x8x128xbf16, #tpu.memory_space<vmem>>, %arg7: memref<8x128xf32, #tpu.memory_space<vmem>>) attributes {dimension_semantics = [#tpu.dimension_semantics<parallel>, #tpu.dimension_semantics<parallel>, #tpu.dimension_semantics<arbitrary>], iteration_bounds = array<i64: 4, 1, 1>, scalar_prefetch = 0 : i64, scratch_operands = 1 : i64, tpu.core_type = #tpu.core_type<tc>, window_params = [{transform_indices = @transform_0, window_bounds = array<i64: 1, 8, 256>}, {transform_indices = @transform_1, window_bounds = array<i64: 1, 256, 128>}, {pipeline_mode = #tpu.pipeline_mode<synchronous>, transform_indices = @transform_2, window_bounds = array<i64: 1, 128>}, {transform_indices = @transform_3, window_bounds = array<i64: 1, 8, 128>}]} {
    %c0_i32 = arith.constant 0 : i32
    %0 = arith.cmpi eq, %arg2, %c0_i32 : i32
    %1 = arith.extui %0 : i1 to i32
    %c0_i32_0 = arith.constant 0 : i32
    %2 = arith.cmpi ne, %1, %c0_i32_0 : i32
    scf.if %2 {
      %cst_13 = arith.constant 0.000000e+00 : f32
      %16 = vector.broadcast %cst_13 : f32 to vector<8x128xf32>
      %c0_14 = arith.constant 0 : index
      %c0_15 = arith.constant 0 : index
      %17 = vector.load %arg7[%c0_14, %c0_15] : memref<8x128xf32, #tpu.memory_space<vmem>>, vector<8x128xf32>
      tpu.vector_store %arg7[%c0_14, %c0_15], %16 {strides = array<i32>} : memref<8x128xf32, #tpu.memory_space<vmem>>, vector<8x128xf32>,
    } else {
    }
    %c0 = arith.constant 0 : index
    %c0_1 = arith.constant 0 : index
    %c0_2 = arith.constant 0 : index
    %3 = vector.load %arg3[%c0, %c0_1, %c0_2] : memref<1x8x256xbf16, #tpu.memory_space<vmem>>, vector<1x8x256xbf16>
    %4 = vector.shape_cast %3 : vector<1x8x256xbf16> to vector<8x256xbf16>
    %cst = arith.constant 0.000000e+00 : bf16
    %5 = vector.broadcast %cst : bf16 to vector<8x256xbf16>
    %6 = arith.maximumf %4, %5 : vector<8x256xbf16>
    %c0_3 = arith.constant 0 : index
    %c0_4 = arith.constant 0 : index
    %c0_5 = arith.constant 0 : index
    %7 = vector.load %arg4[%c0_3, %c0_4, %c0_5] : memref<1x256x128xbf16, #tpu.memory_space<vmem>>, vector<1x256x128xbf16>
    %8 = vector.shape_cast %7 : vector<1x256x128xbf16> to vector<256x128xbf16>
    %c0_6 = arith.constant 0 : index
    %c0_7 = arith.constant 0 : index
    %9 = vector.load %arg7[%c0_6, %c0_7] : memref<8x128xf32, #tpu.memory_space<vmem>>, vector<8x128xf32>
    %cst_8 = arith.constant dense<0.000000e+00> : vector<8x128xf32>
    %10 = tpu.matmul %6, %8, %cst_8 {dimension_numbers = #tpu.dot_dimension_numbers<[1], [0], [0], [1], [0, 0, 1, 1], [], []>} : vector<8x256xbf16>, vector<256x128xbf16>, vector<8x128xf32> -> vector<8x128xf32>
    %11 = arith.addf %9, %10 : vector<8x128xf32>
    %c0_9 = arith.constant 0 : index
    %c0_10 = arith.constant 0 : index
    %12 = vector.load %arg7[%c0_9, %c0_10] : memref<8x128xf32, #tpu.memory_space<vmem>>, vector<8x128xf32>
    tpu.vector_store %arg7[%c0_9, %c0_10], %11 {strides = array<i32>} : memref<8x128xf32, #tpu.memory_space<vmem>>, vector<8x128xf32>,
    %c0_i32_11 = arith.constant 0 : i32
    %13 = arith.cmpi eq, %arg2, %c0_i32_11 : i32
    %14 = arith.extui %13 : i1 to i32
    %c0_i32_12 = arith.constant 0 : i32
    %15 = arith.cmpi ne, %14, %c0_i32_12 : i32
    scf.if %15 {
      %c0_13 = arith.constant 0 : index
      %c0_14 = arith.constant 0 : index
      %16 = vector.load %arg7[%c0_13, %c0_14] : memref<8x128xf32, #tpu.memory_space<vmem>>, vector<8x128xf32>
      %c0_15 = arith.constant 0 : index
      %c0_16 = arith.constant 0 : index
      %17 = vector.load %arg5[%c0_15, %c0_16] : memref<1x128xf32, #tpu.memory_space<vmem>>, vector<1x128xf32>
      %18 = vector.broadcast %17 : vector<1x128xf32> to vector<8x128xf32>
      %19 = arith.addf %16, %18 : vector<8x128xf32>
      %20 = arith.truncf %19 : vector<8x128xf32> to vector<8x128xbf16>
      %c0_17 = arith.constant 0 : index
      %c0_18 = arith.constant 0 : index
      %c0_19 = arith.constant 0 : index
      %21 = vector.load %arg6[%c0_17, %c0_18, %c0_19] : memref<1x8x128xbf16, #tpu.memory_space<vmem>>, vector<1x8x128xbf16>
      %22 = vector.shape_cast %21 : vector<1x8x128xbf16> to vector<8x128xbf16>
      %23 = vector.shape_cast %20 : vector<8x128xbf16> to vector<1x8x128xbf16>
      tpu.vector_store %arg6[%c0_17, %c0_18, %c0_19], %23 {strides = array<i32>} : memref<1x8x128xbf16, #tpu.memory_space<vmem>>, vector<1x8x128xbf16>,
    } else {
    }
    return
  }
  func.func @transform_0(%arg0: i32, %arg1: i32, %arg2: i32) -> (i32, i32, i32) {
    %c0_i32 = arith.constant 0 : i32
    return %arg0, %arg1, %arg2 : i32, i32, i32
  }
  func.func @transform_1(%arg0: i32, %arg1: i32, %arg2: i32) -> (i32, i32, i32) {
    %c0_i32 = arith.constant 0 : i32
    %c0_i32_0 = arith.constant 0 : i32
    %c0_i32_1 = arith.constant 0 : i32
    return %arg0, %c0_i32, %c0_i32_0 : i32, i32, i32
  }
  func.func @transform_2(%arg0: i32, %arg1: i32, %arg2: i32) -> (i32, i32) {
    %c0_i32 = arith.constant 0 : i32
    %c0_i32_0 = arith.constant 0 : i32
    %c0_i32_1 = arith.constant 0 : i32
    return %c0_i32, %c0_i32_0 : i32, i32
  }
  func.func @transform_3(%arg0: i32, %arg1: i32, %arg2: i32) -> (i32, i32, i32) {
    %c0_i32 = arith.constant 0 : i32
    %c0_i32_0 = arith.constant 0 : i32
    return %arg0, %arg1, %c0_i32 : i32, i32, i32
  }
}

module attributes {stable_mosaic.version = 11 : i64} {
  func.func @_fused_conv_mm_kernel(%arg0: i32, %arg1: i32, %arg2: i32, %arg3: memref<1x8x512xbf16, #tpu.memory_space<vmem>>, %arg4: memref<1x512x128xbf16, #tpu.memory_space<vmem>>, %arg5: memref<1x128xf32, #tpu.memory_space<vmem>>, %arg6: memref<1x8x128xbf16, #tpu.memory_space<vmem>>, %arg7: memref<8x128xf32, #tpu.memory_space<vmem>>) attributes {dimension_semantics = [#tpu.dimension_semantics<parallel>, #tpu.dimension_semantics<parallel>, #tpu.dimension_semantics<arbitrary>], iteration_bounds = array<i64: 4, 1, 1>, scalar_prefetch = 0 : i64, scratch_operands = 1 : i64, tpu.core_type = #tpu.core_type<tc>, window_params = [{transform_indices = @transform_0, window_bounds = array<i64: 1, 8, 512>}, {transform_indices = @transform_1, window_bounds = array<i64: 1, 512, 128>}, {pipeline_mode = #tpu.pipeline_mode<synchronous>, transform_indices = @transform_2, window_bounds = array<i64: 1, 128>}, {transform_indices = @transform_3, window_bounds = array<i64: 1, 8, 128>}]} {
    %c0_i32 = arith.constant 0 : i32
    %0 = arith.cmpi eq, %arg2, %c0_i32 : i32
    %1 = arith.extui %0 : i1 to i32
    %c0_i32_0 = arith.constant 0 : i32
    %2 = arith.cmpi ne, %1, %c0_i32_0 : i32
    scf.if %2 {
      %cst_13 = arith.constant 0.000000e+00 : f32
      %16 = vector.broadcast %cst_13 : f32 to vector<8x128xf32>
      %c0_14 = arith.constant 0 : index
      %c0_15 = arith.constant 0 : index
      %17 = vector.load %arg7[%c0_14, %c0_15] : memref<8x128xf32, #tpu.memory_space<vmem>>, vector<8x128xf32>
      tpu.vector_store %arg7[%c0_14, %c0_15], %16 {strides = array<i32>} : memref<8x128xf32, #tpu.memory_space<vmem>>, vector<8x128xf32>,
    } else {
    }
    %c0 = arith.constant 0 : index
    %c0_1 = arith.constant 0 : index
    %c0_2 = arith.constant 0 : index
    %3 = vector.load %arg3[%c0, %c0_1, %c0_2] : memref<1x8x512xbf16, #tpu.memory_space<vmem>>, vector<1x8x512xbf16>
    %4 = vector.shape_cast %3 : vector<1x8x512xbf16> to vector<8x512xbf16>
    %cst = arith.constant 0.000000e+00 : bf16
    %5 = vector.broadcast %cst : bf16 to vector<8x512xbf16>
    %6 = arith.maximumf %4, %5 : vector<8x512xbf16>
    %c0_3 = arith.constant 0 : index
    %c0_4 = arith.constant 0 : index
    %c0_5 = arith.constant 0 : index
    %7 = vector.load %arg4[%c0_3, %c0_4, %c0_5] : memref<1x512x128xbf16, #tpu.memory_space<vmem>>, vector<1x512x128xbf16>
    %8 = vector.shape_cast %7 : vector<1x512x128xbf16> to vector<512x128xbf16>
    %c0_6 = arith.constant 0 : index
    %c0_7 = arith.constant 0 : index
    %9 = vector.load %arg7[%c0_6, %c0_7] : memref<8x128xf32, #tpu.memory_space<vmem>>, vector<8x128xf32>
    %cst_8 = arith.constant dense<0.000000e+00> : vector<8x128xf32>
    %10 = tpu.matmul %6, %8, %cst_8 {dimension_numbers = #tpu.dot_dimension_numbers<[1], [0], [0], [1], [0, 0, 1, 1], [], []>} : vector<8x512xbf16>, vector<512x128xbf16>, vector<8x128xf32> -> vector<8x128xf32>
    %11 = arith.addf %9, %10 : vector<8x128xf32>
    %c0_9 = arith.constant 0 : index
    %c0_10 = arith.constant 0 : index
    %12 = vector.load %arg7[%c0_9, %c0_10] : memref<8x128xf32, #tpu.memory_space<vmem>>, vector<8x128xf32>
    tpu.vector_store %arg7[%c0_9, %c0_10], %11 {strides = array<i32>} : memref<8x128xf32, #tpu.memory_space<vmem>>, vector<8x128xf32>,
    %c0_i32_11 = arith.constant 0 : i32
    %13 = arith.cmpi eq, %arg2, %c0_i32_11 : i32
    %14 = arith.extui %13 : i1 to i32
    %c0_i32_12 = arith.constant 0 : i32
    %15 = arith.cmpi ne, %14, %c0_i32_12 : i32
    scf.if %15 {
      %c0_13 = arith.constant 0 : index
      %c0_14 = arith.constant 0 : index
      %16 = vector.load %arg7[%c0_13, %c0_14] : memref<8x128xf32, #tpu.memory_space<vmem>>, vector<8x128xf32>
      %c0_15 = arith.constant 0 : index
      %c0_16 = arith.constant 0 : index
      %17 = vector.load %arg5[%c0_15, %c0_16] : memref<1x128xf32, #tpu.memory_space<vmem>>, vector<1x128xf32>
      %18 = vector.broadcast %17 : vector<1x128xf32> to vector<8x128xf32>
      %19 = arith.addf %16, %18 : vector<8x128xf32>
      %20 = arith.truncf %19 : vector<8x128xf32> to vector<8x128xbf16>
      %c0_17 = arith.constant 0 : index
      %c0_18 = arith.constant 0 : index
      %c0_19 = arith.constant 0 : index
      %21 = vector.load %arg6[%c0_17, %c0_18, %c0_19] : memref<1x8x128xbf16, #tpu.memory_space<vmem>>, vector<1x8x128xbf16>
      %22 = vector.shape_cast %21 : vector<1x8x128xbf16> to vector<8x128xbf16>
      %23 = vector.shape_cast %20 : vector<8x128xbf16> to vector<1x8x128xbf16>
      tpu.vector_store %arg6[%c0_17, %c0_18, %c0_19], %23 {strides = array<i32>} : memref<1x8x128xbf16, #tpu.memory_space<vmem>>, vector<1x8x128xbf16>,
    } else {
    }
    return
  }
  func.func @transform_0(%arg0: i32, %arg1: i32, %arg2: i32) -> (i32, i32, i32) {
    %c0_i32 = arith.constant 0 : i32
    return %arg0, %arg1, %arg2 : i32, i32, i32
  }
  func.func @transform_1(%arg0: i32, %arg1: i32, %arg2: i32) -> (i32, i32, i32) {
    %c0_i32 = arith.constant 0 : i32
    %c0_i32_0 = arith.constant 0 : i32
    %c0_i32_1 = arith.constant 0 : i32
    return %arg0, %c0_i32, %c0_i32_0 : i32, i32, i32
  }
  func.func @transform_2(%arg0: i32, %arg1: i32, %arg2: i32) -> (i32, i32) {
    %c0_i32 = arith.constant 0 : i32
    %c0_i32_0 = arith.constant 0 : i32
    %c0_i32_1 = arith.constant 0 : i32
    return %c0_i32, %c0_i32_0 : i32, i32
  }
  func.func @transform_3(%arg0: i32, %arg1: i32, %arg2: i32) -> (i32, i32, i32) {
    %c0_i32 = arith.constant 0 : i32
    %c0_i32_0 = arith.constant 0 : i32
    return %arg0, %arg1, %c0_i32 : i32, i32, i32
  }
}

module attributes {stable_mosaic.version = 11 : i64} {
  func.func @_fused_conv_mm_kernel(%arg0: i32, %arg1: i32, %arg2: i32, %arg3: memref<1x32x256xbf16, #tpu.memory_space<vmem>>, %arg4: memref<1x256x128xbf16, #tpu.memory_space<vmem>>, %arg5: memref<1x128xf32, #tpu.memory_space<vmem>>, %arg6: memref<1x32x128xbf16, #tpu.memory_space<vmem>>, %arg7: memref<32x128xf32, #tpu.memory_space<vmem>>) attributes {dimension_semantics = [#tpu.dimension_semantics<parallel>, #tpu.dimension_semantics<parallel>, #tpu.dimension_semantics<arbitrary>], iteration_bounds = array<i64: 4, 1, 1>, scalar_prefetch = 0 : i64, scratch_operands = 1 : i64, tpu.core_type = #tpu.core_type<tc>, window_params = [{transform_indices = @transform_0, window_bounds = array<i64: 1, 32, 256>}, {transform_indices = @transform_1, window_bounds = array<i64: 1, 256, 128>}, {pipeline_mode = #tpu.pipeline_mode<synchronous>, transform_indices = @transform_2, window_bounds = array<i64: 1, 128>}, {transform_indices = @transform_3, window_bounds = array<i64: 1, 32, 128>}]} {
    %c0_i32 = arith.constant 0 : i32
    %0 = arith.cmpi eq, %arg2, %c0_i32 : i32
    %1 = arith.extui %0 : i1 to i32
    %c0_i32_0 = arith.constant 0 : i32
    %2 = arith.cmpi ne, %1, %c0_i32_0 : i32
    scf.if %2 {
      %cst_13 = arith.constant 0.000000e+00 : f32
      %16 = vector.broadcast %cst_13 : f32 to vector<32x128xf32>
      %c0_14 = arith.constant 0 : index
      %c0_15 = arith.constant 0 : index
      %17 = vector.load %arg7[%c0_14, %c0_15] : memref<32x128xf32, #tpu.memory_space<vmem>>, vector<32x128xf32>
      tpu.vector_store %arg7[%c0_14, %c0_15], %16 {strides = array<i32>} : memref<32x128xf32, #tpu.memory_space<vmem>>, vector<32x128xf32>,
    } else {
    }
    %c0 = arith.constant 0 : index
    %c0_1 = arith.constant 0 : index
    %c0_2 = arith.constant 0 : index
    %3 = vector.load %arg3[%c0, %c0_1, %c0_2] : memref<1x32x256xbf16, #tpu.memory_space<vmem>>, vector<1x32x256xbf16>
    %4 = vector.shape_cast %3 : vector<1x32x256xbf16> to vector<32x256xbf16>
    %cst = arith.constant 0.000000e+00 : bf16
    %5 = vector.broadcast %cst : bf16 to vector<32x256xbf16>
    %6 = arith.maximumf %4, %5 : vector<32x256xbf16>
    %c0_3 = arith.constant 0 : index
    %c0_4 = arith.constant 0 : index
    %c0_5 = arith.constant 0 : index
    %7 = vector.load %arg4[%c0_3, %c0_4, %c0_5] : memref<1x256x128xbf16, #tpu.memory_space<vmem>>, vector<1x256x128xbf16>
    %8 = vector.shape_cast %7 : vector<1x256x128xbf16> to vector<256x128xbf16>
    %c0_6 = arith.constant 0 : index
    %c0_7 = arith.constant 0 : index
    %9 = vector.load %arg7[%c0_6, %c0_7] : memref<32x128xf32, #tpu.memory_space<vmem>>, vector<32x128xf32>
    %cst_8 = arith.constant dense<0.000000e+00> : vector<32x128xf32>
    %10 = tpu.matmul %6, %8, %cst_8 {dimension_numbers = #tpu.dot_dimension_numbers<[1], [0], [0], [1], [0, 0, 1, 1], [], []>} : vector<32x256xbf16>, vector<256x128xbf16>, vector<32x128xf32> -> vector<32x128xf32>
    %11 = arith.addf %9, %10 : vector<32x128xf32>
    %c0_9 = arith.constant 0 : index
    %c0_10 = arith.constant 0 : index
    %12 = vector.load %arg7[%c0_9, %c0_10] : memref<32x128xf32, #tpu.memory_space<vmem>>, vector<32x128xf32>
    tpu.vector_store %arg7[%c0_9, %c0_10], %11 {strides = array<i32>} : memref<32x128xf32, #tpu.memory_space<vmem>>, vector<32x128xf32>,
    %c0_i32_11 = arith.constant 0 : i32
    %13 = arith.cmpi eq, %arg2, %c0_i32_11 : i32
    %14 = arith.extui %13 : i1 to i32
    %c0_i32_12 = arith.constant 0 : i32
    %15 = arith.cmpi ne, %14, %c0_i32_12 : i32
    scf.if %15 {
      %c0_13 = arith.constant 0 : index
      %c0_14 = arith.constant 0 : index
      %16 = vector.load %arg7[%c0_13, %c0_14] : memref<32x128xf32, #tpu.memory_space<vmem>>, vector<32x128xf32>
      %c0_15 = arith.constant 0 : index
      %c0_16 = arith.constant 0 : index
      %17 = vector.load %arg5[%c0_15, %c0_16] : memref<1x128xf32, #tpu.memory_space<vmem>>, vector<1x128xf32>
      %18 = vector.broadcast %17 : vector<1x128xf32> to vector<32x128xf32>
      %19 = arith.addf %16, %18 : vector<32x128xf32>
      %20 = arith.truncf %19 : vector<32x128xf32> to vector<32x128xbf16>
      %c0_17 = arith.constant 0 : index
      %c0_18 = arith.constant 0 : index
      %c0_19 = arith.constant 0 : index
      %21 = vector.load %arg6[%c0_17, %c0_18, %c0_19] : memref<1x32x128xbf16, #tpu.memory_space<vmem>>, vector<1x32x128xbf16>
      %22 = vector.shape_cast %21 : vector<1x32x128xbf16> to vector<32x128xbf16>
      %23 = vector.shape_cast %20 : vector<32x128xbf16> to vector<1x32x128xbf16>
      tpu.vector_store %arg6[%c0_17, %c0_18, %c0_19], %23 {strides = array<i32>} : memref<1x32x128xbf16, #tpu.memory_space<vmem>>, vector<1x32x128xbf16>,
    } else {
    }
    return
  }
  func.func @transform_0(%arg0: i32, %arg1: i32, %arg2: i32) -> (i32, i32, i32) {
    %c0_i32 = arith.constant 0 : i32
    return %arg0, %arg1, %arg2 : i32, i32, i32
  }
  func.func @transform_1(%arg0: i32, %arg1: i32, %arg2: i32) -> (i32, i32, i32) {
    %c0_i32 = arith.constant 0 : i32
    %c0_i32_0 = arith.constant 0 : i32
    %c0_i32_1 = arith.constant 0 : i32
    return %arg0, %c0_i32, %c0_i32_0 : i32, i32, i32
  }
  func.func @transform_2(%arg0: i32, %arg1: i32, %arg2: i32) -> (i32, i32) {
    %c0_i32 = arith.constant 0 : i32
    %c0_i32_0 = arith.constant 0 : i32
    %c0_i32_1 = arith.constant 0 : i32
    return %c0_i32, %c0_i32_0 : i32, i32
  }
  func.func @transform_3(%arg0: i32, %arg1: i32, %arg2: i32) -> (i32, i32, i32) {
    %c0_i32 = arith.constant 0 : i32
    %c0_i32_0 = arith.constant 0 : i32
    return %arg0, %arg1, %c0_i32 : i32, i32, i32
  }
}

module attributes {stable_mosaic.version = 11 : i64} {
  func.func @_fused_conv_mm_kernel(%arg0: i32, %arg1: i32, %arg2: i32, %arg3: memref<1x128x128xbf16, #tpu.memory_space<vmem>>, %arg4: memref<1x128x128xbf16, #tpu.memory_space<vmem>>, %arg5: memref<1x128xf32, #tpu.memory_space<vmem>>, %arg6: memref<1x128x128xbf16, #tpu.memory_space<vmem>>, %arg7: memref<128x128xf32, #tpu.memory_space<vmem>>) attributes {dimension_semantics = [#tpu.dimension_semantics<parallel>, #tpu.dimension_semantics<parallel>, #tpu.dimension_semantics<arbitrary>], iteration_bounds = array<i64: 4, 1, 1>, scalar_prefetch = 0 : i64, scratch_operands = 1 : i64, tpu.core_type = #tpu.core_type<tc>, window_params = [{transform_indices = @transform_0, window_bounds = array<i64: 1, 128, 128>}, {transform_indices = @transform_1, window_bounds = array<i64: 1, 128, 128>}, {pipeline_mode = #tpu.pipeline_mode<synchronous>, transform_indices = @transform_2, window_bounds = array<i64: 1, 128>}, {transform_indices = @transform_3, window_bounds = array<i64: 1, 128, 128>}]} {
    %c0_i32 = arith.constant 0 : i32
    %0 = arith.cmpi eq, %arg2, %c0_i32 : i32
    %1 = arith.extui %0 : i1 to i32
    %c0_i32_0 = arith.constant 0 : i32
    %2 = arith.cmpi ne, %1, %c0_i32_0 : i32
    scf.if %2 {
      %cst_13 = arith.constant 0.000000e+00 : f32
      %16 = vector.broadcast %cst_13 : f32 to vector<128x128xf32>
      %c0_14 = arith.constant 0 : index
      %c0_15 = arith.constant 0 : index
      %17 = vector.load %arg7[%c0_14, %c0_15] : memref<128x128xf32, #tpu.memory_space<vmem>>, vector<128x128xf32>
      tpu.vector_store %arg7[%c0_14, %c0_15], %16 {strides = array<i32>} : memref<128x128xf32, #tpu.memory_space<vmem>>, vector<128x128xf32>,
    } else {
    }
    %c0 = arith.constant 0 : index
    %c0_1 = arith.constant 0 : index
    %c0_2 = arith.constant 0 : index
    %3 = vector.load %arg3[%c0, %c0_1, %c0_2] : memref<1x128x128xbf16, #tpu.memory_space<vmem>>, vector<1x128x128xbf16>
    %4 = vector.shape_cast %3 : vector<1x128x128xbf16> to vector<128x128xbf16>
    %cst = arith.constant 0.000000e+00 : bf16
    %5 = vector.broadcast %cst : bf16 to vector<128x128xbf16>
    %6 = arith.maximumf %4, %5 : vector<128x128xbf16>
    %c0_3 = arith.constant 0 : index
    %c0_4 = arith.constant 0 : index
    %c0_5 = arith.constant 0 : index
    %7 = vector.load %arg4[%c0_3, %c0_4, %c0_5] : memref<1x128x128xbf16, #tpu.memory_space<vmem>>, vector<1x128x128xbf16>
    %8 = vector.shape_cast %7 : vector<1x128x128xbf16> to vector<128x128xbf16>
    %c0_6 = arith.constant 0 : index
    %c0_7 = arith.constant 0 : index
    %9 = vector.load %arg7[%c0_6, %c0_7] : memref<128x128xf32, #tpu.memory_space<vmem>>, vector<128x128xf32>
    %cst_8 = arith.constant dense<0.000000e+00> : vector<128x128xf32>
    %10 = tpu.matmul %6, %8, %cst_8 {dimension_numbers = #tpu.dot_dimension_numbers<[1], [0], [0], [1], [0, 0, 1, 1], [], []>} : vector<128x128xbf16>, vector<128x128xbf16>, vector<128x128xf32> -> vector<128x128xf32>
    %11 = arith.addf %9, %10 : vector<128x128xf32>
    %c0_9 = arith.constant 0 : index
    %c0_10 = arith.constant 0 : index
    %12 = vector.load %arg7[%c0_9, %c0_10] : memref<128x128xf32, #tpu.memory_space<vmem>>, vector<128x128xf32>
    tpu.vector_store %arg7[%c0_9, %c0_10], %11 {strides = array<i32>} : memref<128x128xf32, #tpu.memory_space<vmem>>, vector<128x128xf32>,
    %c0_i32_11 = arith.constant 0 : i32
    %13 = arith.cmpi eq, %arg2, %c0_i32_11 : i32
    %14 = arith.extui %13 : i1 to i32
    %c0_i32_12 = arith.constant 0 : i32
    %15 = arith.cmpi ne, %14, %c0_i32_12 : i32
    scf.if %15 {
      %c0_13 = arith.constant 0 : index
      %c0_14 = arith.constant 0 : index
      %16 = vector.load %arg7[%c0_13, %c0_14] : memref<128x128xf32, #tpu.memory_space<vmem>>, vector<128x128xf32>
      %c0_15 = arith.constant 0 : index
      %c0_16 = arith.constant 0 : index
      %17 = vector.load %arg5[%c0_15, %c0_16] : memref<1x128xf32, #tpu.memory_space<vmem>>, vector<1x128xf32>
      %18 = vector.broadcast %17 : vector<1x128xf32> to vector<128x128xf32>
      %19 = arith.addf %16, %18 : vector<128x128xf32>
      %20 = arith.truncf %19 : vector<128x128xf32> to vector<128x128xbf16>
      %c0_17 = arith.constant 0 : index
      %c0_18 = arith.constant 0 : index
      %c0_19 = arith.constant 0 : index
      %21 = vector.load %arg6[%c0_17, %c0_18, %c0_19] : memref<1x128x128xbf16, #tpu.memory_space<vmem>>, vector<1x128x128xbf16>
      %22 = vector.shape_cast %21 : vector<1x128x128xbf16> to vector<128x128xbf16>
      %23 = vector.shape_cast %20 : vector<128x128xbf16> to vector<1x128x128xbf16>
      tpu.vector_store %arg6[%c0_17, %c0_18, %c0_19], %23 {strides = array<i32>} : memref<1x128x128xbf16, #tpu.memory_space<vmem>>, vector<1x128x128xbf16>,
    } else {
    }
    return
  }
  func.func @transform_0(%arg0: i32, %arg1: i32, %arg2: i32) -> (i32, i32, i32) {
    %c0_i32 = arith.constant 0 : i32
    return %arg0, %arg1, %arg2 : i32, i32, i32
  }
  func.func @transform_1(%arg0: i32, %arg1: i32, %arg2: i32) -> (i32, i32, i32) {
    %c0_i32 = arith.constant 0 : i32
    %c0_i32_0 = arith.constant 0 : i32
    %c0_i32_1 = arith.constant 0 : i32
    return %arg0, %c0_i32, %c0_i32_0 : i32, i32, i32
  }
  func.func @transform_2(%arg0: i32, %arg1: i32, %arg2: i32) -> (i32, i32) {
    %c0_i32 = arith.constant 0 : i32
    %c0_i32_0 = arith.constant 0 : i32
    %c0_i32_1 = arith.constant 0 : i32
    return %c0_i32, %c0_i32_0 : i32, i32
  }
  func.func @transform_3(%arg0: i32, %arg1: i32, %arg2: i32) -> (i32, i32, i32) {
    %c0_i32 = arith.constant 0 : i32
    %c0_i32_0 = arith.constant 0 : i32
    return %arg0, %arg1, %c0_i32 : i32, i32, i32
  }
}

module attributes {stable_mosaic.version = 11 : i64} {
  func.func @_fused_conv_mm_kernel(%arg0: i32, %arg1: i32, %arg2: i32, %arg3: memref<1x512x128xbf16, #tpu.memory_space<vmem>>, %arg4: memref<1x128x128xbf16, #tpu.memory_space<vmem>>, %arg5: memref<1x128xf32, #tpu.memory_space<vmem>>, %arg6: memref<1x512x128xf32, #tpu.memory_space<vmem>>, %arg7: memref<512x128xf32, #tpu.memory_space<vmem>>) attributes {dimension_semantics = [#tpu.dimension_semantics<parallel>, #tpu.dimension_semantics<parallel>, #tpu.dimension_semantics<arbitrary>], iteration_bounds = array<i64: 4, 1, 1>, scalar_prefetch = 0 : i64, scratch_operands = 1 : i64, tpu.core_type = #tpu.core_type<tc>, window_params = [{transform_indices = @transform_0, window_bounds = array<i64: 1, 512, 128>}, {transform_indices = @transform_1, window_bounds = array<i64: 1, 128, 128>}, {pipeline_mode = #tpu.pipeline_mode<synchronous>, transform_indices = @transform_2, window_bounds = array<i64: 1, 128>}, {transform_indices = @transform_3, window_bounds = array<i64: 1, 512, 128>}]} {
    %c0_i32 = arith.constant 0 : i32
    %0 = arith.cmpi eq, %arg2, %c0_i32 : i32
    %1 = arith.extui %0 : i1 to i32
    %c0_i32_0 = arith.constant 0 : i32
    %2 = arith.cmpi ne, %1, %c0_i32_0 : i32
    scf.if %2 {
      %cst_13 = arith.constant 0.000000e+00 : f32
      %16 = vector.broadcast %cst_13 : f32 to vector<512x128xf32>
      %c0_14 = arith.constant 0 : index
      %c0_15 = arith.constant 0 : index
      %17 = vector.load %arg7[%c0_14, %c0_15] : memref<512x128xf32, #tpu.memory_space<vmem>>, vector<512x128xf32>
      tpu.vector_store %arg7[%c0_14, %c0_15], %16 {strides = array<i32>} : memref<512x128xf32, #tpu.memory_space<vmem>>, vector<512x128xf32>,
    } else {
    }
    %c0 = arith.constant 0 : index
    %c0_1 = arith.constant 0 : index
    %c0_2 = arith.constant 0 : index
    %3 = vector.load %arg3[%c0, %c0_1, %c0_2] : memref<1x512x128xbf16, #tpu.memory_space<vmem>>, vector<1x512x128xbf16>
    %4 = vector.shape_cast %3 : vector<1x512x128xbf16> to vector<512x128xbf16>
    %cst = arith.constant 0.000000e+00 : bf16
    %5 = vector.broadcast %cst : bf16 to vector<512x128xbf16>
    %6 = arith.maximumf %4, %5 : vector<512x128xbf16>
    %c0_3 = arith.constant 0 : index
    %c0_4 = arith.constant 0 : index
    %c0_5 = arith.constant 0 : index
    %7 = vector.load %arg4[%c0_3, %c0_4, %c0_5] : memref<1x128x128xbf16, #tpu.memory_space<vmem>>, vector<1x128x128xbf16>
    %8 = vector.shape_cast %7 : vector<1x128x128xbf16> to vector<128x128xbf16>
    %c0_6 = arith.constant 0 : index
    %c0_7 = arith.constant 0 : index
    %9 = vector.load %arg7[%c0_6, %c0_7] : memref<512x128xf32, #tpu.memory_space<vmem>>, vector<512x128xf32>
    %cst_8 = arith.constant dense<0.000000e+00> : vector<512x128xf32>
    %10 = tpu.matmul %6, %8, %cst_8 {dimension_numbers = #tpu.dot_dimension_numbers<[1], [0], [0], [1], [0, 0, 1, 1], [], []>} : vector<512x128xbf16>, vector<128x128xbf16>, vector<512x128xf32> -> vector<512x128xf32>
    %11 = arith.addf %9, %10 : vector<512x128xf32>
    %c0_9 = arith.constant 0 : index
    %c0_10 = arith.constant 0 : index
    %12 = vector.load %arg7[%c0_9, %c0_10] : memref<512x128xf32, #tpu.memory_space<vmem>>, vector<512x128xf32>
    tpu.vector_store %arg7[%c0_9, %c0_10], %11 {strides = array<i32>} : memref<512x128xf32, #tpu.memory_space<vmem>>, vector<512x128xf32>,
    %c0_i32_11 = arith.constant 0 : i32
    %13 = arith.cmpi eq, %arg2, %c0_i32_11 : i32
    %14 = arith.extui %13 : i1 to i32
    %c0_i32_12 = arith.constant 0 : i32
    %15 = arith.cmpi ne, %14, %c0_i32_12 : i32
    scf.if %15 {
      %c0_13 = arith.constant 0 : index
      %c0_14 = arith.constant 0 : index
      %16 = vector.load %arg7[%c0_13, %c0_14] : memref<512x128xf32, #tpu.memory_space<vmem>>, vector<512x128xf32>
      %c0_15 = arith.constant 0 : index
      %c0_16 = arith.constant 0 : index
      %17 = vector.load %arg5[%c0_15, %c0_16] : memref<1x128xf32, #tpu.memory_space<vmem>>, vector<1x128xf32>
      %18 = vector.broadcast %17 : vector<1x128xf32> to vector<512x128xf32>
      %19 = arith.addf %16, %18 : vector<512x128xf32>
      %20 = math.tanh %19 : vector<512x128xf32>
      %c0_17 = arith.constant 0 : index
      %c0_18 = arith.constant 0 : index
      %c0_19 = arith.constant 0 : index
      %21 = vector.load %arg6[%c0_17, %c0_18, %c0_19] : memref<1x512x128xf32, #tpu.memory_space<vmem>>, vector<1x512x128xf32>
      %22 = vector.shape_cast %21 : vector<1x512x128xf32> to vector<512x128xf32>
      %23 = vector.shape_cast %20 : vector<512x128xf32> to vector<1x512x128xf32>
      tpu.vector_store %arg6[%c0_17, %c0_18, %c0_19], %23 {strides = array<i32>} : memref<1x512x128xf32, #tpu.memory_space<vmem>>, vector<1x512x128xf32>,
    } else {
    }
    return
  }
  func.func @transform_0(%arg0: i32, %arg1: i32, %arg2: i32) -> (i32, i32, i32) {
    %c0_i32 = arith.constant 0 : i32
    return %arg0, %arg1, %arg2 : i32, i32, i32
  }
  func.func @transform_1(%arg0: i32, %arg1: i32, %arg2: i32) -> (i32, i32, i32) {
    %c0_i32 = arith.constant 0 : i32
    %c0_i32_0 = arith.constant 0 : i32
    %c0_i32_1 = arith.constant 0 : i32
    return %arg0, %c0_i32, %c0_i32_0 : i32, i32, i32
  }
  func.func @transform_2(%arg0: i32, %arg1: i32, %arg2: i32) -> (i32, i32) {
    %c0_i32 = arith.constant 0 : i32
    %c0_i32_0 = arith.constant 0 : i32
    %c0_i32_1 = arith.constant 0 : i32
    return %c0_i32, %c0_i32_0 : i32, i32
  }
  func.func @transform_3(%arg0: i32, %arg1: i32, %arg2: i32) -> (i32, i32, i32) {
    %c0_i32 = arith.constant 0 : i32
    %c0_i32_0 = arith.constant 0 : i32
    return %arg0, %arg1, %c0_i32 : i32, i32, i32
  }
}

</mosaic_0001>

<bundles_post_ra>
// kernel: _lambda_.10
= control target key start
LH: loop header
LB: loop body
LE: loop exit
PB: predicated region body
PF: predicated region fallthrough
CT: control target
= control target key end

     0   :  { %s1452_s12 = smov 0   ;;  %s1454_s13 = smov 0   ;;  %s1589_s0 = inlined_call_operand.vmem [shape: bf16[1,512,128], index: 0, kind: input, shape index: {}]   ;;  %s1590_s1 = inlined_call_operand.vmem [shape: bf16[1,128,128], index: 1, kind: input, shape index: {}]   ;;  %s1591_s2 = inlined_call_operand.vmem [shape: f32[1,128], index: 2, kind: input, shape index: {}]   ;;  %s1592_s3 = inlined_call_operand.vmem [shape: bf16[1,512,128], index: 3, kind: output, shape index: {}]  }
   0x1   :  { %s1456_s14 = smov 0  }
   0x2 LB: > { %s28_s15 = sadd.s32 1, %s1426_s13  ;;  %p1081_p0 = scmp.ge.s32.totalorder %s1430_s14, 1  ;;  %s1430_s14 = sphi %s1456_s14, %s13_s14   ;;  %s1426_s13 = sphi %s1454_s13, %s1594_s13   ;;  %s1422_s12 = sphi %s1452_s12, %s1593_s12  }
   0x3   : > { %p30_p1 = scmp.ge.s32.totalorder %s28_s15, 2  ;;  %p180_p2 = scmp.lt.s32.totalorder %s1430_s14, 3 }
   0x5   : > { %s1596_s15 = smov (%p30_p1, %s28_s15), 0  ;;  %p181_p3 = pnand %p1081_p0, %p180_p2 }
   0x6   : > { %s1082_s18 = sshll.u32 (!%p181_p3), %s1422_s12, 5 }
   0x7   : > { %184 = sbr.rel (%p181_p3) target bundleno = 273 (0x111), region = 32  ;;  %p223_p4 = scmp.lt.s32.totalorder (!%p181_p3), %s1082_s18, 63 }
   0xc   : > { %v1384_v0 = vld [vmem:[%s1590_s1 + $0x38] sm:$0xff]   ;;  %v1385_v1 = vld [vmem:[%s1590_s1 + $0x30] sm:$0xff]   ;;  %s1598_s18 = smov (!%p223_p4, %s1082_s18), 63  ;;  %v1386_v2 = vld [vmem:[%s1590_s1 + $0x28] sm:$0xff]  }
   0xd   : > { %1296 = vmatprep.subr.bf16.mxu0 %v1384_v0  ;;  %1344 = vmatprep.subr.bf16.mxu1 %v1384_v0  ;;  %s1083_s23 = sshll.u32 %s1598_s18, 2  ;;  %v1387_v3 = vld [vmem:[%s1590_s1 + $0x20] sm:$0xff]   ;;  %v1388_v6 = vld [vmem:[%s1590_s1 + $0x18] sm:$0xff]   ;;  %v1389_v7 = vld [vmem:[%s1590_s1 + $0x10] sm:$0xff]  }
   0xe   : > { %1297 = vmatpush3.bf16.msra.mxu0 %v1384_v0  ;;  %1352 = vmatpush3.bf16.msra.mxu1 %v1384_v0  ;;  %s1487_s26 = scalar_lea.vmem %s1589_s0, %s1083_s23  ;;  %v1390_v8 = vld [vmem:[%s1590_s1 + $0x8] sm:$0xff]   ;;  %v1391_v9 = vld [vmem:[%s1590_s1] sm:$0xff]   ;;  %s1536_s17 = scalar_lea.vmem %s1592_s3, %s1083_s23 }
   0xf   : > { %1298 = vmatprep.subr.bf16.mxu0 %v1385_v1  ;;  %1345 = vmatprep.subr.bf16.mxu1 %v1385_v1  ;;  %v1392_v4 = vld [vmem:[%s1487_s26] sm:$0xff]   ;;  %v1394_v10 = vld [vmem:[%s1487_s26 + $0x8] sm:$0xff]   ;;  %v1396_v12 = vld [vmem:[%s1487_s26 + $0x10] sm:$0xff]  }
  0x10   : > { %v1393_v5 = vld [vmem:[%s1487_s26 + $0x40] sm:$0xff]   ;;  %1312 = vmatprep.mubr.bf16.mxu0 %v1392_v4  ;;  %v1395_v11 = vld [vmem:[%s1487_s26 + $0x48] sm:$0xff]   ;;  %v1397_v13 = vld [vmem:[%s1487_s26 + $0x50] sm:$0xff]  }
  0x11   : > { %1328 = vmatprep.mubr.bf16.mxu1 %v1393_v5  ;;  %v1398_v14 = vld [vmem:[%s1487_s26 + $0x18] sm:$0xff]   ;;  %v1400_v16 = vld [vmem:[%s1487_s26 + $0x20] sm:$0xff]   ;;  %v1402_v18 = vld [vmem:[%s1487_s26 + $0x28] sm:$0xff]  }
  0x12   : > { %1299 = vmatpush3.bf16.msra.mxu0 %v1385_v1  ;;  %1353 = vmatpush3.bf16.msra.mxu1 %v1385_v1  ;;  %v1399_v15 = vld [vmem:[%s1487_s26 + $0x58] sm:$0xff]   ;;  %v1401_v17 = vld [vmem:[%s1487_s26 + $0x60] sm:$0xff]   ;;  %v1403_v19 = vld [vmem:[%s1487_s26 + $0x68] sm:$0xff]  }
  0x13   : > { %1300 = vmatprep.subr.bf16.mxu0 %v1386_v2  ;;  %1346 = vmatprep.subr.bf16.mxu1 %v1386_v2  ;;  %v1404_v20 = vld [vmem:[%s1487_s26 + $0x30] sm:$0xff]   ;;  %v1406_v22 = vld [vmem:[%s1487_s26 + $0x38] sm:$0xff]   ;;  %v1523_v26 = vld [vmem:[%s1591_s2] ss:$0 sm:$0xff] }
  0x14   : > { %v1405_v21 = vld [vmem:[%s1487_s26 + $0x70] sm:$0xff]   ;;  %v1407_v23 = vld [vmem:[%s1487_s26 + $0x78] sm:$0xff]  }
  0x16   : > { %1301 = vmatpush3.bf16.msra.mxu0 %v1386_v2  ;;  %1354 = vmatpush3.bf16.msra.mxu1 %v1386_v2 }
  0x17   : > { %1302 = vmatprep.subr.bf16.mxu0 %v1387_v3  ;;  %1347 = vmatprep.subr.bf16.mxu1 %v1387_v3 }
  0x1a   : > { %1303 = vmatpush3.bf16.msra.mxu0 %v1387_v3  ;;  %1355 = vmatpush3.bf16.msra.mxu1 %v1387_v3 }
  0x1b   : > { %1304 = vmatprep.subr.bf16.mxu0 %v1388_v6  ;;  %1348 = vmatprep.subr.bf16.mxu1 %v1388_v6 }
  0x1e   : > { %1305 = vmatpush3.bf16.msra.mxu0 %v1388_v6  ;;  %1356 = vmatpush3.bf16.msra.mxu1 %v1388_v6 }
  0x1f   : > { %1306 = vmatprep.subr.bf16.mxu0 %v1389_v7  ;;  %1349 = vmatprep.subr.bf16.mxu1 %v1389_v7 }
  0x22   : > { %1307 = vmatpush3.bf16.msra.mxu0 %v1389_v7  ;;  %1357 = vmatpush3.bf16.msra.mxu1 %v1389_v7 }
  0x23   : > { %1308 = vmatprep.subr.bf16.mxu0 %v1390_v8  ;;  %1350 = vmatprep.subr.bf16.mxu1 %v1390_v8 }
  0x26   : > { %1309 = vmatpush3.bf16.msra.mxu0 %v1390_v8  ;;  %1358 = vmatpush3.bf16.msra.mxu1 %v1390_v8 }
  0x27   : > { %1310 = vmatprep.subr.bf16.mxu0 %v1391_v9  ;;  %1351 = vmatprep.subr.bf16.mxu1 %v1391_v9 }
  0x2a   : > { %1311 = vmatpush3.bf16.msra.mxu0 %v1391_v9  ;;  %1359 = vmatpush3.bf16.msra.mxu1 %v1391_v9 }
  0x2d   : > { %1313 = vmatmul.mubr.bf16.vlgmr.msra.gmra.mxu0 %v1394_v10  ;;  %1329 = vmatmul.mubr.bf16.vlgmr.msra.gmra.mxu1 %v1395_v11 }
  0x2e   : > { %1316 = vmatprep.mubr.bf16.mxu0 %v1396_v12  ;;  %1332 = vmatprep.mubr.bf16.mxu1 %v1397_v13 }
  0x35   : > { %1317 = vmatmul.mubr.bf16.gmra.mxu0 %v1398_v14  ;;  %1333 = vmatmul.mubr.bf16.gmra.mxu1 %v1399_v15 }
  0x36   : > { %1320 = vmatprep.mubr.bf16.mxu0 %v1400_v16  ;;  %1336 = vmatprep.mubr.bf16.mxu1 %v1401_v17 }
  0x3d   : > { %1321 = vmatmul.mubr.bf16.gmra.mxu0 %v1402_v18  ;;  %1337 = vmatmul.mubr.bf16.gmra.mxu1 %v1403_v19 }
  0x3e   : > { %1324 = vmatprep.mubr.bf16.mxu0 %v1404_v20  ;;  %1340 = vmatprep.mubr.bf16.mxu1 %v1405_v21 }
  0x45   : > { %1325 = vmatmul.mubr.bf16.gmra.mxu0 %v1406_v22  ;;  %1341 = vmatmul.mubr.bf16.gmra.mxu1 %v1407_v23 }
  0xed   : > { %v1314_v24 = vpop.f32.mrf.mxu0  ;;  %v1330_v25 = vpop.f32.mrf.mxu1 }
  0xee   : > { %v778_v31 = vadd.f32 %v1314_v24, %v1523_v26  ;;  %v794_v32 = vadd.f32 %v1330_v25, %v1523_v26 }
  0xef   : > { %v543_v27 = vpop.f32.mrf.mxu0  ;;  %v607_v28 = vpop.f32.mrf.mxu1 }
  0xf0   : > { %v776_v35 = vadd.f32 %v1523_v26, %v543_v27  ;;  %v792_v36 = vadd.f32 %v1523_v26, %v607_v28 }
  0xf1   : > { %v1315_v29 = vpop.f32.mrf.mxu0  ;;  %v1331_v30 = vpop.f32.mrf.mxu1 }
  0xf2   : > { %v779_v33 = vadd.f32 %v1315_v29, %v1523_v26  ;;  %v795_v34 = vadd.f32 %v1331_v30, %v1523_v26 }
  0xf3   : > { %v546_v37 = vpop.f32.mrf.mxu0  ;;  %v610_v38 = vpop.f32.mrf.mxu1 }
  0xf4   : > { %v1185_v39 = vpack.c.bf16 %v779_v33, %v778_v31  ;;  %v1225_v40 = vpack.c.bf16 %v795_v34, %v794_v32  ;;  %v777_v41 = vadd.f32 %v1523_v26, %v546_v37  ;;  %v793_v42 = vadd.f32 %v1523_v26, %v610_v38 }
  0xf5   : > { %v1318_v43 = vpop.f32.mrf.mxu0  ;;  %v1334_v44 = vpop.f32.mrf.mxu1 }
  0xf6   : > { %1257 = vst [vmem:[%s1536_s17 + $0x8] sm:$0xff] %v1185_v39   ;;  %1265 = vst [vmem:[%s1536_s17 + $0x48] sm:$0xff] %v1225_v40   ;;  %v1180_v45 = vpack.c.bf16 %v777_v41, %v776_v35  ;;  %v1220_v46 = vpack.c.bf16 %v793_v42, %v792_v36  ;;  %v782_v51 = vadd.f32 %v1318_v43, %v1523_v26 }
  0xf7   : > { %v559_v47 = vpop.f32.mrf.mxu0  ;;  %v623_v48 = vpop.f32.mrf.mxu1  ;;  %v798_v52 = vadd.f32 %v1334_v44, %v1523_v26 }
  0xf8   : > { %1181 = vst [vmem:[%s1536_s17] sm:$0xff] %v1180_v45   ;;  %1264 = vst [vmem:[%s1536_s17 + $0x40] sm:$0xff] %v1220_v46   ;;  %v780_v55 = vadd.f32 %v1523_v26, %v559_v47  ;;  %v796_v56 = vadd.f32 %v1523_v26, %v623_v48 }
  0xf9   : > { %v1319_v49 = vpop.f32.mrf.mxu0  ;;  %v1335_v50 = vpop.f32.mrf.mxu1 }
  0xfa   : > { %v783_v53 = vadd.f32 %v1319_v49, %v1523_v26  ;;  %v799_v54 = vadd.f32 %v1335_v50, %v1523_v26 }
  0xfb   : > { %v562_v57 = vpop.f32.mrf.mxu0  ;;  %v626_v58 = vpop.f32.mrf.mxu1 }
  0xfc   : > { %v1195_v59 = vpack.c.bf16 %v783_v53, %v782_v51  ;;  %v1235_v60 = vpack.c.bf16 %v799_v54, %v798_v52  ;;  %v781_v61 = vadd.f32 %v1523_v26, %v562_v57  ;;  %v797_v62 = vadd.f32 %v1523_v26, %v626_v58 }
  0xfd   : > { %v1322_v63 = vpop.f32.mrf.mxu0  ;;  %v1338_v0 = vpop.f32.mrf.mxu1 }
  0xfe   : > { %1259 = vst [vmem:[%s1536_s17 + $0x18] sm:$0xff] %v1195_v59   ;;  %1267 = vst [vmem:[%s1536_s17 + $0x58] sm:$0xff] %v1235_v60   ;;  %v1190_v1 = vpack.c.bf16 %v781_v61, %v780_v55  ;;  %v1230_v2 = vpack.c.bf16 %v797_v62, %v796_v56  ;;  %v786_v7 = vadd.f32 %v1322_v63, %v1523_v26 }
  0xff   : > { %v575_v3 = vpop.f32.mrf.mxu0  ;;  %v639_v4 = vpop.f32.mrf.mxu1  ;;  %v802_v8 = vadd.f32 %v1338_v0, %v1523_v26 }
 0x100   : > { %1258 = vst [vmem:[%s1536_s17 + $0x10] sm:$0xff] %v1190_v1   ;;  %1266 = vst [vmem:[%s1536_s17 + $0x50] sm:$0xff] %v1230_v2   ;;  %v784_v11 = vadd.f32 %v1523_v26, %v575_v3  ;;  %v800_v12 = vadd.f32 %v1523_v26, %v639_v4 }
 0x101   : > { %v1323_v5 = vpop.f32.mrf.mxu0  ;;  %v1339_v6 = vpop.f32.mrf.mxu1 }
 0x102   : > { %v787_v9 = vadd.f32 %v1323_v5, %v1523_v26  ;;  %v803_v10 = vadd.f32 %v1339_v6, %v1523_v26 }
 0x103   : > { %v578_v13 = vpop.f32.mrf.mxu0  ;;  %v642_v14 = vpop.f32.mrf.mxu1 }
 0x104   : > { %v1205_v15 = vpack.c.bf16 %v787_v9, %v786_v7  ;;  %v1245_v16 = vpack.c.bf16 %v803_v10, %v802_v8  ;;  %v785_v17 = vadd.f32 %v1523_v26, %v578_v13  ;;  %v801_v18 = vadd.f32 %v1523_v26, %v642_v14 }
 0x105   : > { %v1326_v19 = vpop.f32.mrf.mxu0  ;;  %v1342_v20 = vpop.f32.mrf.mxu1 }
 0x106   : > { %1261 = vst [vmem:[%s1536_s17 + $0x28] sm:$0xff] %v1205_v15   ;;  %1269 = vst [vmem:[%s1536_s17 + $0x68] sm:$0xff] %v1245_v16   ;;  %v1200_v21 = vpack.c.bf16 %v785_v17, %v784_v11  ;;  %v1240_v22 = vpack.c.bf16 %v801_v18, %v800_v12  ;;  %v790_v28 = vadd.f32 %v1326_v19, %v1523_v26 }
 0x107   : > { %v591_v23 = vpop.f32.mrf.mxu0  ;;  %v655_v24 = vpop.f32.mrf.mxu1  ;;  %v806_v29 = vadd.f32 %v1342_v20, %v1523_v26 }
 0x108   : > { %1260 = vst [vmem:[%s1536_s17 + $0x20] sm:$0xff] %v1200_v21   ;;  %1268 = vst [vmem:[%s1536_s17 + $0x60] sm:$0xff] %v1240_v22   ;;  %v788_v32 = vadd.f32 %v1523_v26, %v591_v23  ;;  %v804_v33 = vadd.f32 %v1523_v26, %v655_v24 }
 0x109   : > { %v1327_v25 = vpop.f32.mrf.mxu0  ;;  %v1343_v27 = vpop.f32.mrf.mxu1 }
 0x10a   : > { %v791_v30 = vadd.f32 %v1327_v25, %v1523_v26  ;;  %v807_v31 = vadd.f32 %v1343_v27, %v1523_v26 }
 0x10b   : > { %v594_v34 = vpop.f32.mrf.mxu0  ;;  %v658_v35 = vpop.f32.mrf.mxu1 }
 0x10c   : > { %v1215_v36 = vpack.c.bf16 %v791_v30, %v790_v28  ;;  %v1255_v37 = vpack.c.bf16 %v807_v31, %v806_v29  ;;  %v789_v38 = vadd.f32 %v1523_v26, %v594_v34  ;;  %v805_v39 = vadd.f32 %v1523_v26, %v658_v35 }
 0x10e   : > { %1263 = vst [vmem:[%s1536_s17 + $0x38] sm:$0xff] %v1215_v36   ;;  %1271 = vst [vmem:[%s1536_s17 + $0x78] sm:$0xff] %v1255_v37   ;;  %v1210_v40 = vpack.c.bf16 %v789_v38, %v788_v32  ;;  %v1250_v41 = vpack.c.bf16 %v805_v39, %v804_v33 }
 0x110   : > { %1262 = vst [vmem:[%s1536_s17 + $0x30] sm:$0xff] %v1210_v40   ;;  %1270 = vst [vmem:[%s1536_s17 + $0x70] sm:$0xff] %v1250_v41  }
 0x111 PF: > { %s13_s14 = sadd.s32 1, %s1430_s14   ;;  %s1593_s12 = smov %s1426_s13 }
 0x112   : > { %p10_p5 = scmp.ge.s32.totalorder %s13_s14, 4   ;;  %s1594_s13 = smov %s1596_s15 }
 0x114   :  { %12 = sbr.rel (!%p10_p5) target bundleno = 2 (0x2), region = 73 }

// kernel: _lambda_.11
= control target key start
LH: loop header
LB: loop body
LE: loop exit
PB: predicated region body
PF: predicated region fallthrough
CT: control target
= control target key end

     0   :  { %s837_s12 = smov 0   ;;  %s839_s13 = smov 0   ;;  %s914_s0 = inlined_call_operand.vmem [shape: bf16[1,128,128], index: 0, kind: input, shape index: {}]   ;;  %s915_s1 = inlined_call_operand.vmem [shape: bf16[1,128,128], index: 1, kind: input, shape index: {}]   ;;  %s916_s2 = inlined_call_operand.vmem [shape: f32[1,128], index: 2, kind: input, shape index: {}]   ;;  %s917_s3 = inlined_call_operand.vmem [shape: bf16[1,128,128], index: 3, kind: output, shape index: {}]  }
   0x1   :  { %s841_s14 = smov 0  }
   0x2 LB: > { %s28_s15 = sadd.s32 1, %s811_s13  ;;  %p650_p0 = scmp.ge.s32.totalorder %s815_s14, 1  ;;  %s815_s14 = sphi %s841_s14, %s13_s14   ;;  %s811_s13 = sphi %s839_s13, %s919_s13   ;;  %s807_s12 = sphi %s837_s12, %s918_s12  }
   0x3   : > { %p30_p1 = scmp.ge.s32.totalorder %s28_s15, 2  ;;  %p180_p2 = scmp.lt.s32.totalorder %s815_s14, 3 }
   0x5   : > { %s921_s15 = smov (%p30_p1, %s28_s15), 0  ;;  %p181_p3 = pnand %p650_p0, %p180_p2 }
   0x6   : > { %s651_s18 = sshll.u32 (!%p181_p3), %s807_s12, 3 }
   0x7   : > { %184 = sbr.rel (%p181_p3) target bundleno = 249 (0xf9), region = 32  ;;  %p223_p4 = scmp.lt.s32.totalorder (!%p181_p3), %s651_s18, 15 }
   0xc   : > { %v785_v0 = vld [vmem:[%s915_s1 + $0x38] sm:$0xff]   ;;  %v786_v1 = vld [vmem:[%s915_s1 + $0x30] sm:$0xff]   ;;  %s923_s18 = smov (!%p223_p4, %s651_s18), 15  ;;  %v787_v2 = vld [vmem:[%s915_s1 + $0x28] sm:$0xff]  }
   0xd   : > { %721 = vmatprep.subr.bf16.mxu0 %v785_v0  ;;  %745 = vmatprep.subr.bf16.mxu1 %v785_v0  ;;  %s652_s23 = sshll.u32 %s923_s18, 2  ;;  %v788_v3 = vld [vmem:[%s915_s1 + $0x20] sm:$0xff]   ;;  %v789_v14 = vld [vmem:[%s915_s1 + $0x18] sm:$0xff]   ;;  %v790_v19 = vld [vmem:[%s915_s1 + $0x10] sm:$0xff]  }
   0xe   : > { %722 = vmatpush3.bf16.msra.mxu0 %v785_v0  ;;  %753 = vmatpush3.bf16.msra.mxu1 %v785_v0  ;;  %s872_s26 = scalar_lea.vmem %s914_s0, %s652_s23  ;;  %v791_v20 = vld [vmem:[%s915_s1 + $0x8] sm:$0xff]   ;;  %v792_v29 = vld [vmem:[%s915_s1] sm:$0xff]   ;;  %s246_s17 = scalar_lea.vmem %s917_s3, %s652_s23 }
   0xf   : > { %723 = vmatprep.subr.bf16.mxu0 %v786_v1  ;;  %746 = vmatprep.subr.bf16.mxu1 %v786_v1  ;;  %v262_v4 = vld [vmem:[%s872_s26] sm:$0xf]  ;;  %v263_v5 = vld [vmem:[%s872_s26 + $0x4] sm:$0xf]  ;;  %v266_v6 = vld [vmem:[%s872_s26 + $0x10] sm:$0xf] }
  0x10   : > { %vm270_vm0 = vcmp.gt.bf16.partialorder %v262_v4, 0  ;;  %vm271_vm1 = vcmp.gt.bf16.partialorder %v263_v5, 0  ;;  %v278_v7 = vmul.bf16 1045249613, %v262_v4  ;;  %v279_v8 = vmul.bf16 1045249613, %v263_v5 }
  0x11   : > { %v267_v9 = vld [vmem:[%s872_s26 + $0x14] sm:$0xf]  ;;  %vm274_vm2 = vcmp.gt.bf16.partialorder %v266_v6, 0  ;;  %v282_v10 = vmul.bf16 1045249613, %v266_v6 }
  0x12   : > { %724 = vmatpush3.bf16.msra.mxu0 %v786_v1  ;;  %754 = vmatpush3.bf16.msra.mxu1 %v786_v1  ;;  %v286_v11 = vsel %vm270_vm0, %v262_v4, %v278_v7  ;;  %v287_v12 = vsel %vm271_vm1, %v263_v5, %v279_v8  ;;  %vm275_vm3 = vcmp.gt.bf16.partialorder %v267_v9, 0  ;;  %v283_v13 = vmul.bf16 1045249613, %v267_v9  ;;  %v264_v21 = vld [vmem:[%s872_s26 + $0x8] sm:$0xf] }
  0x13   : > { %725 = vmatprep.subr.bf16.mxu0 %v787_v2  ;;  %747 = vmatprep.subr.bf16.mxu1 %v787_v2  ;;  %v655_v15 = vcombine.low %v286_v11, %v287_v12  ;;  %v290_v16 = vsel %vm274_vm2, %v266_v6, %v282_v10  ;;  %v265_v22 = vld [vmem:[%s872_s26 + $0xc] sm:$0xf]  ;;  %v268_v23 = vld [vmem:[%s872_s26 + $0x18] sm:$0xf]  ;;  %v269_v24 = vld [vmem:[%s872_s26 + $0x1c] sm:$0xf] }
  0x14   : > { %v291_v17 = vsel %vm275_vm3, %v267_v9, %v283_v13  ;;  %vm272_vm4 = vcmp.gt.bf16.partialorder %v264_v21, 0  ;;  %v280_v25 = vmul.bf16 1045249613, %v264_v21  ;;  %v281_v26 = vmul.bf16 1045249613, %v265_v22 }
  0x15   : > { %737 = vmatprep.mubr.bf16.mxu0 %v655_v15  ;;  %v657_v18 = vcombine.low %v290_v16, %v291_v17  ;;  %v284_v27 = vmul.bf16 1045249613, %v268_v23  ;;  %v285_v28 = vmul.bf16 1045249613, %v269_v24  ;;  %vm273_vm5 = vcmp.gt.bf16.partialorder %v265_v22, 0 }
  0x16   : > { %726 = vmatpush3.bf16.msra.mxu0 %v787_v2  ;;  %755 = vmatpush3.bf16.msra.mxu1 %v787_v2  ;;  %vm276_vm6 = vcmp.gt.bf16.partialorder %v268_v23, 0  ;;  %vm277_vm7 = vcmp.gt.bf16.partialorder %v269_v24, 0  ;;  %v288_v30 = vsel %vm272_vm4, %v264_v21, %v280_v25  ;;  %v289_v31 = vsel %vm273_vm5, %v265_v22, %v281_v26  ;;  %v667_v38 = vld [vmem:[%s916_s2] ss:$0 sm:$0xff] }
  0x17   : > { %727 = vmatprep.subr.bf16.mxu0 %v788_v3  ;;  %748 = vmatprep.subr.bf16.mxu1 %v788_v3  ;;  %v292_v32 = vsel %vm276_vm6, %v268_v23, %v284_v27  ;;  %v293_v33 = vsel %vm277_vm7, %v269_v24, %v285_v28  ;;  %v656_v34 = vcombine.low %v288_v30, %v289_v31 }
  0x18   : > { %741 = vmatprep.mubr.bf16.mxu1 %v657_v18  ;;  %v658_v35 = vcombine.low %v292_v32, %v293_v33 }
  0x1a   : > { %728 = vmatpush3.bf16.msra.mxu0 %v788_v3  ;;  %756 = vmatpush3.bf16.msra.mxu1 %v788_v3 }
  0x1b   : > { %729 = vmatprep.subr.bf16.mxu0 %v789_v14  ;;  %749 = vmatprep.subr.bf16.mxu1 %v789_v14 }
  0x1e   : > { %730 = vmatpush3.bf16.msra.mxu0 %v789_v14  ;;  %757 = vmatpush3.bf16.msra.mxu1 %v789_v14 }
  0x1f   : > { %731 = vmatprep.subr.bf16.mxu0 %v790_v19  ;;  %750 = vmatprep.subr.bf16.mxu1 %v790_v19 }
  0x22   : > { %732 = vmatpush3.bf16.msra.mxu0 %v790_v19  ;;  %758 = vmatpush3.bf16.msra.mxu1 %v790_v19 }
  0x23   : > { %733 = vmatprep.subr.bf16.mxu0 %v791_v20  ;;  %751 = vmatprep.subr.bf16.mxu1 %v791_v20 }
  0x26   : > { %734 = vmatpush3.bf16.msra.mxu0 %v791_v20  ;;  %759 = vmatpush3.bf16.msra.mxu1 %v791_v20 }
  0x27   : > { %735 = vmatprep.subr.bf16.mxu0 %v792_v29  ;;  %752 = vmatprep.subr.bf16.mxu1 %v792_v29 }
  0x2a   : > { %736 = vmatpush3.bf16.msra.mxu0 %v792_v29  ;;  %760 = vmatpush3.bf16.msra.mxu1 %v792_v29 }
  0x2d   : > { %738 = vmatmul.mubr.bf16.vlgmr.msra.gmra.mxu0 %v656_v34  ;;  %742 = vmatmul.mubr.bf16.vlgmr.msra.gmra.mxu1 %v658_v35 }
  0xed   : > { %v739_v36 = vpop.f32.mrf.mxu0  ;;  %v743_v37 = vpop.f32.mrf.mxu1 }
  0xee   : > { %v491_v43 = vadd.f32 %v739_v36, %v667_v38  ;;  %v495_v44 = vadd.f32 %v743_v37, %v667_v38 }
  0xef   : > { %v424_v39 = vpop.f32.mrf.mxu0  ;;  %v440_v40 = vpop.f32.mrf.mxu1 }
  0xf0   : > { %v489_v47 = vadd.f32 %v667_v38, %v424_v39  ;;  %v493_v48 = vadd.f32 %v667_v38, %v440_v40 }
  0xf1   : > { %v740_v41 = vpop.f32.mrf.mxu0  ;;  %v744_v42 = vpop.f32.mrf.mxu1 }
  0xf2   : > { %v492_v45 = vadd.f32 %v740_v41, %v667_v38  ;;  %v496_v46 = vadd.f32 %v744_v42, %v667_v38 }
  0xf3   : > { %v427_v49 = vpop.f32.mrf.mxu0  ;;  %v443_v50 = vpop.f32.mrf.mxu1 }
  0xf4   : > { %v694_v51 = vpack.c.bf16 %v492_v45, %v491_v43  ;;  %v704_v52 = vpack.c.bf16 %v496_v46, %v495_v44  ;;  %v490_v53 = vadd.f32 %v667_v38, %v427_v49  ;;  %v494_v54 = vadd.f32 %v667_v38, %v443_v50 }
  0xf6   : > { %706 = vst [vmem:[%s246_s17 + $0x8] sm:$0xff] %v694_v51   ;;  %708 = vst [vmem:[%s246_s17 + $0x18] sm:$0xff] %v704_v52   ;;  %v689_v55 = vpack.c.bf16 %v490_v53, %v489_v47  ;;  %v699_v56 = vpack.c.bf16 %v494_v54, %v493_v48 }
  0xf8   : > { %690 = vst [vmem:[%s246_s17] sm:$0xff] %v689_v55   ;;  %707 = vst [vmem:[%s246_s17 + $0x10] sm:$0xff] %v699_v56  }
  0xf9 PF: > { %s13_s14 = sadd.s32 1, %s815_s14   ;;  %s918_s12 = smov %s811_s13 }
  0xfa   : > { %p10_p5 = scmp.ge.s32.totalorder %s13_s14, 4   ;;  %s919_s13 = smov %s921_s15 }
  0xfc   :  { %12 = sbr.rel (!%p10_p5) target bundleno = 2 (0x2), region = 73 }

// kernel: _lambda_.12
= control target key start
LH: loop header
LB: loop body
LE: loop exit
PB: predicated region body
PF: predicated region fallthrough
CT: control target
= control target key end

     0   :  { %s740_s12 = smov 0   ;;  %s742_s13 = smov 0   ;;  %s828_s0 = inlined_call_operand.vmem [shape: bf16[1,32,256], index: 0, kind: input, shape index: {}]   ;;  %s829_s1 = inlined_call_operand.vmem [shape: bf16[1,256,128], index: 1, kind: input, shape index: {}]   ;;  %s830_s2 = inlined_call_operand.vmem [shape: f32[1,128], index: 2, kind: input, shape index: {}]   ;;  %s831_s3 = inlined_call_operand.vmem [shape: bf16[1,32,128], index: 3, kind: output, shape index: {}]  }
   0x1   :  { %s744_s14 = smov 0  }
   0x2 LB: > { %s28_s15 = sadd.s32 1, %s714_s13  ;;  %p597_p0 = scmp.ge.s32.totalorder %s718_s14, 1  ;;  %s718_s14 = sphi %s744_s14, %s13_s14   ;;  %s714_s13 = sphi %s742_s13, %s833_s13   ;;  %s710_s12 = sphi %s740_s12, %s832_s12  }
   0x3   : > { %p30_p1 = scmp.ge.s32.totalorder %s28_s15, 2  ;;  %p183_p2 = scmp.lt.s32.totalorder %s718_s14, 3 }
   0x5   : > { %s835_s15 = smov (%p30_p1, %s28_s15), 0  ;;  %p184_p3 = pnand %p597_p0, %p183_p2 }
   0x6   : > { %s598_s18 = sshll.u32 (!%p184_p3), %s710_s12, 1 }
   0x7   : > { %187 = sbr.rel (%p184_p3) target bundleno = 251 (0xfb), region = 32  ;;  %p229_p4 = scmp.lt.s32.totalorder (!%p184_p3), %s598_s18, 3 }
   0xc   : > { %v680_v0 = vld [vmem:[%s829_s1 + $0x78] sm:$0xff]   ;;  %v682_v2 = vld [vmem:[%s829_s1 + $0x70] sm:$0xff]   ;;  %v684_v4 = vld [vmem:[%s829_s1 + $0x68] sm:$0xff]   ;;  %s837_s18 = smov (!%p229_p4, %s598_s18), 3 }
   0xd   : > { %v681_v1 = vld [vmem:[%s829_s1 + $0x38] sm:$0xff]   ;;  %634 = vmatprep.subr.bf16.mxu0 %v680_v0  ;;  %v683_v3 = vld [vmem:[%s829_s1 + $0x30] sm:$0xff]   ;;  %v685_v5 = vld [vmem:[%s829_s1 + $0x28] sm:$0xff]   ;;  %s626_s4 = sshll.u32 %s837_s18, 3  ;;  %s602_s5 = sshll.u32 %s837_s18, 2 }
   0xe   : > { %635 = vmatpush3.bf16.msra.mxu0 %v681_v1  ;;  %v686_v6 = vld [vmem:[%s829_s1 + $0x60] sm:$0xff]   ;;  %v688_v8 = vld [vmem:[%s829_s1 + $0x58] sm:$0xff]   ;;  %s238_s11 = scalar_lea.vmem %s828_s0, %s626_s4  ;;  %v690_v10 = vld [vmem:[%s829_s1 + $0x50] sm:$0xff]   ;;  %s254_s8 = scalar_lea.vmem %s831_s3, %s602_s5 }
   0xf   : > { %636 = vmatprep.subr.bf16.mxu0 %v682_v2  ;;  %v687_v7 = vld [vmem:[%s829_s1 + $0x20] sm:$0xff]   ;;  %v689_v9 = vld [vmem:[%s829_s1 + $0x18] sm:$0xff]   ;;  %v265_v12 = vld [vmem:[%s238_s11 + $0x8] sm:$0xff] }
  0x10   : > { %v264_v11 = vld [vmem:[%s238_s11] sm:$0xff]  ;;  %vm267_vm1 = vcmp.gt.bf16.partialorder %v265_v12, 0  ;;  %v269_v14 = vmul.bf16 1045249613, %v265_v12  ;;  %v691_v15 = vld [vmem:[%s829_s1 + $0x10] sm:$0xff]   ;;  %v692_v18 = vld [vmem:[%s829_s1 + $0x48] sm:$0xff]  }
  0x11   : > { %vm266_vm0 = vcmp.gt.bf16.partialorder %v264_v11, 0  ;;  %v268_v13 = vmul.bf16 1045249613, %v264_v11  ;;  %v693_v20 = vld [vmem:[%s829_s1 + $0x8] sm:$0xff]   ;;  %v694_v21 = vld [vmem:[%s829_s1 + $0x40] sm:$0xff]  }
  0x12   : > { %637 = vmatpush3.bf16.msra.mxu0 %v683_v3  ;;  %v271_v17 = vsel %vm267_vm1, %v265_v12, %v269_v14  ;;  %v695_v22 = vld [vmem:[%s829_s1] sm:$0xff]  }
  0x13   : > { %638 = vmatprep.subr.bf16.mxu0 %v684_v4  ;;  %v270_v16 = vsel %vm266_vm0, %v264_v11, %v268_v13  ;;  %v621_v28 = vld [vmem:[%s830_s2] ss:$0 sm:$0xff] }
  0x14   : > { %v604_v19 = vcombine.high %v270_v16, %v271_v17  ;;  %v603_v23 = vcombine.low %v270_v16, %v271_v17 }
  0x16   : > { %639 = vmatpush3.bf16.msra.mxu0 %v685_v5  ;;  %444 = vmatprep.mubr.bf16.mxu0 %v604_v19 }
  0x17   : > { %640 = vmatprep.subr.bf16.mxu0 %v686_v6 }
  0x1a   : > { %641 = vmatpush3.bf16.msra.mxu0 %v687_v7 }
  0x1b   : > { %642 = vmatprep.subr.bf16.mxu0 %v688_v8 }
  0x1e   : > { %643 = vmatpush3.bf16.msra.mxu0 %v689_v9 }
  0x1f   : > { %644 = vmatprep.subr.bf16.mxu0 %v690_v10 }
  0x22   : > { %645 = vmatpush3.bf16.msra.mxu0 %v691_v15 }
  0x23   : > { %646 = vmatprep.subr.bf16.mxu0 %v692_v18 }
  0x26   : > { %647 = vmatpush3.bf16.msra.mxu0 %v693_v20 }
  0x27   : > { %648 = vmatprep.subr.bf16.mxu0 %v694_v21 }
  0x2a   : > { %649 = vmatpush3.bf16.msra.mxu0 %v695_v22 }
  0x2d   : > { %445 = vmatmul.mubr.bf16.vlgmr.msra.gmra.mxu0 %v603_v23 }
  0xed   : > { %v650_v24 = vpop.f32.mrf.mxu0 }
  0xef   : > { %v651_v25 = vpop.f32.mrf.mxu0 }
  0xf0   : > { %v652_v27 = vadd.f32 %v651_v25, %v650_v24 }
  0xf1   : > { %v653_v26 = vpop.f32.mrf.mxu0 }
  0xf2   : > { %v469_v31 = vadd.f32 %v652_v27, %v621_v28 }
  0xf3   : > { %v654_v29 = vpop.f32.mrf.mxu0 }
  0xf4   : > { %v655_v30 = vadd.f32 %v654_v29, %v653_v26 }
  0xf6   : > { %v470_v32 = vadd.f32 %v655_v30, %v621_v28 }
  0xf8   : > { %v632_v33 = vpack.c.bf16 %v470_v32, %v469_v31 }
  0xfa   : > { %633 = vst [vmem:[%s254_s8] sm:$0xff] %v632_v33  }
  0xfb PF: > { %s13_s14 = sadd.s32 1, %s718_s14   ;;  %s832_s12 = smov %s714_s13 }
  0xfc   : > { %p10_p5 = scmp.ge.s32.totalorder %s13_s14, 4   ;;  %s833_s13 = smov %s835_s15 }
  0xfe   :  { %12 = sbr.rel (!%p10_p5) target bundleno = 2 (0x2), region = 73 }

// kernel: _lambda_.13
= control target key start
LH: loop header
LB: loop body
LE: loop exit
PB: predicated region body
PF: predicated region fallthrough
CT: control target
= control target key end

     0   :  { %s641_s1 = inlined_call_operand.vmem [shape: bf16[1,512,128], index: 1, kind: input, shape index: {}]   ;;  %s642_s0 = inlined_call_operand.vmem [shape: bf16[1,8,512], index: 0, kind: input, shape index: {}]   ;;  %s643_s2 = inlined_call_operand.vmem [shape: f32[1,128], index: 2, kind: input, shape index: {}]   ;;  %s644_s3 = inlined_call_operand.vmem [shape: bf16[1,8,128], index: 3, kind: output, shape index: {}]  }
   0x1   :  { %v481_v0 = vld [vmem:[%s641_s1 + $0x78] sm:$0xff]   ;;  %v485_v4 = vld [vmem:[%s641_s1 + $0x70] sm:$0xff]   ;;  %v489_v8 = vld [vmem:[%s641_s1 + $0x68] sm:$0xff]  }
   0x2   :  { %v482_v1 = vld [vmem:[%s641_s1 + $0xf8] sm:$0xff]   ;;  %437 = vmatprep.subr.bf16.mxu0 %v481_v0  ;;  %v486_v5 = vld [vmem:[%s641_s1 + $0xf0] sm:$0xff]   ;;  %v490_v9 = vld [vmem:[%s641_s1 + $0xe8] sm:$0xff]  }
   0x3   :  { %v483_v2 = vld [vmem:[%s641_s1 + $0x38] sm:$0xff]   ;;  %459 = vmatprep.subr.bf16.mxu1 %v482_v1  ;;  %v487_v6 = vld [vmem:[%s641_s1 + $0x30] sm:$0xff]   ;;  %v491_v10 = vld [vmem:[%s641_s1 + $0x28] sm:$0xff]  }
   0x4   :  { %v484_v3 = vld [vmem:[%s641_s1 + $0xb8] sm:$0xff]   ;;  %438 = vmatpush3.bf16.msra.mxu0 %v483_v2  ;;  %v488_v7 = vld [vmem:[%s641_s1 + $0xb0] sm:$0xff]   ;;  %v492_v11 = vld [vmem:[%s641_s1 + $0xa8] sm:$0xff]  }
   0x5   :  { %460 = vmatpush3.bf16.msra.mxu1 %v484_v3  ;;  %439 = vmatprep.subr.bf16.mxu0 %v485_v4  ;;  %v493_v12 = vld [vmem:[%s641_s1 + $0x60] sm:$0xff]   ;;  %v497_v16 = vld [vmem:[%s641_s1 + $0x58] sm:$0xff]   ;;  %v501_v20 = vld [vmem:[%s641_s1 + $0x50] sm:$0xff]  }
   0x6   :  { %461 = vmatprep.subr.bf16.mxu1 %v486_v5  ;;  %v494_v13 = vld [vmem:[%s641_s1 + $0xe0] sm:$0xff]   ;;  %v498_v17 = vld [vmem:[%s641_s1 + $0xd8] sm:$0xff]   ;;  %v502_v21 = vld [vmem:[%s641_s1 + $0xd0] sm:$0xff]  }
   0x7   :  { %v495_v14 = vld [vmem:[%s641_s1 + $0x20] sm:$0xff]   ;;  %v499_v18 = vld [vmem:[%s641_s1 + $0x18] sm:$0xff]   ;;  %v503_v22 = vld [vmem:[%s641_s1 + $0x10] sm:$0xff]  }
   0x8   :  { %440 = vmatpush3.bf16.msra.mxu0 %v487_v6  ;;  %v496_v15 = vld [vmem:[%s641_s1 + $0xa0] sm:$0xff]   ;;  %v500_v19 = vld [vmem:[%s641_s1 + $0x98] sm:$0xff]   ;;  %v504_v23 = vld [vmem:[%s641_s1 + $0x90] sm:$0xff]  }
   0x9   :  { %462 = vmatpush3.bf16.msra.mxu1 %v488_v7  ;;  %441 = vmatprep.subr.bf16.mxu0 %v489_v8  ;;  %v505_v24 = vld [vmem:[%s641_s1 + $0x48] sm:$0xff]   ;;  %v509_v28 = vld [vmem:[%s641_s1 + $0x40] sm:$0xff]  }
   0xa   :  { %463 = vmatprep.subr.bf16.mxu1 %v490_v9  ;;  %v506_v25 = vld [vmem:[%s641_s1 + $0xc8] sm:$0xff]   ;;  %v510_v29 = vld [vmem:[%s641_s1 + $0xc0] sm:$0xff]  }
   0xb   :  { %v507_v26 = vld [vmem:[%s641_s1 + $0x8] sm:$0xff]   ;;  %v511_v30 = vld [vmem:[%s641_s1] sm:$0xff]  }
   0xc   :  { %442 = vmatpush3.bf16.msra.mxu0 %v491_v10  ;;  %v508_v27 = vld [vmem:[%s641_s1 + $0x88] sm:$0xff]   ;;  %v512_v31 = vld [vmem:[%s641_s1 + $0x80] sm:$0xff]  }
   0xd   :  { %464 = vmatpush3.bf16.msra.mxu1 %v492_v11  ;;  %443 = vmatprep.subr.bf16.mxu0 %v493_v12  ;;  %v21_v32 = vld [vmem:[%s642_s0] sm:$0xff]  ;;  %v22_v33 = vld [vmem:[%s642_s0 + $0x8] sm:$0xff] }
   0xe   :  { %465 = vmatprep.subr.bf16.mxu1 %v494_v13  ;;  %vm23_vm0 = vcmp.gt.bf16.partialorder %v21_v32, 0  ;;  %v25_v34 = vmul.bf16 1045249613, %v21_v32  ;;  %vm24_vm1 = vcmp.gt.bf16.partialorder %v22_v33, 0  ;;  %v26_v35 = vmul.bf16 1045249613, %v22_v33 }
   0xf   :  { %v436_v48 = vld [vmem:[%s643_s2] ss:$0 sm:$0xff] }
  0x10   :  { %444 = vmatpush3.bf16.msra.mxu0 %v495_v14  ;;  %v27_v36 = vsel %vm23_vm0, %v21_v32, %v25_v34  ;;  %v28_v37 = vsel %vm24_vm1, %v22_v33, %v26_v35 }
  0x11   :  { %466 = vmatpush3.bf16.msra.mxu1 %v496_v15  ;;  %445 = vmatprep.subr.bf16.mxu0 %v497_v16  ;;  %v400_v38 = vcombine.low %v27_v36, %v27_v36  ;;  %v401_v39 = vcombine.high %v27_v36, %v27_v36  ;;  %v402_v40 = vcombine.low %v28_v37, %v28_v37 }
  0x12   :  { %467 = vmatprep.subr.bf16.mxu1 %v498_v17  ;;  %v403_v41 = vcombine.high %v28_v37, %v28_v37 }
  0x13   :  { %332 = vmatprep.mubr.bf16.mxu0 %v401_v39 }
  0x14   :  { %446 = vmatpush3.bf16.msra.mxu0 %v499_v18  ;;  %372 = vmatprep.mubr.bf16.mxu1 %v403_v41 }
  0x15   :  { %468 = vmatpush3.bf16.msra.mxu1 %v500_v19  ;;  %447 = vmatprep.subr.bf16.mxu0 %v501_v20 }
  0x16   :  { %469 = vmatprep.subr.bf16.mxu1 %v502_v21 }
  0x18   :  { %448 = vmatpush3.bf16.msra.mxu0 %v503_v22 }
  0x19   :  { %470 = vmatpush3.bf16.msra.mxu1 %v504_v23  ;;  %449 = vmatprep.subr.bf16.mxu0 %v505_v24 }
  0x1a   :  { %471 = vmatprep.subr.bf16.mxu1 %v506_v25 }
  0x1c   :  { %450 = vmatpush3.bf16.msra.mxu0 %v507_v26 }
  0x1d   :  { %472 = vmatpush3.bf16.msra.mxu1 %v508_v27  ;;  %451 = vmatprep.subr.bf16.mxu0 %v509_v28 }
  0x1e   :  { %473 = vmatprep.subr.bf16.mxu1 %v510_v29 }
  0x20   :  { %452 = vmatpush3.bf16.msra.mxu0 %v511_v30 }
  0x21   :  { %474 = vmatpush3.bf16.msra.mxu1 %v512_v31 }
  0x23   :  { %333 = vmatmul.mubr.bf16.vlgmr.msra.gmra.mxu0 %v400_v38 }
  0x24   :  { %373 = vmatmul.mubr.bf16.vlgmr.msra.gmra.mxu1 %v402_v40 }
  0xe3   :  { %v453_v42 = vpop.f32.mrf.mxu0 }
  0xe4   :  { %v475_v43 = vpop.f32.mrf.mxu1 }
  0xe5   :  { %v454_v44 = vpop.f32.mrf.mxu0 }
  0xe6   :  { %v476_v45 = vpop.f32.mrf.mxu1  ;;  %v455_v46 = vadd.f32 %v454_v44, %v453_v42 }
  0xe7   :  { %v477_v47 = vadd.f32 %v476_v45, %v475_v43  ;;  %v456_v49 = vpop.f32.mrf.mxu0 }
  0xe8   :  { %v478_v50 = vpop.f32.mrf.mxu1 }
  0xe9   :  { %v375_v51 = vadd.f32 %v477_v47, %v455_v46  ;;  %v457_v52 = vpop.f32.mrf.mxu0 }
  0xea   :  { %v479_v53 = vpop.f32.mrf.mxu1 }
  0xeb   :  { %v393_v54 = vadd.f32 %v436_v48, %v375_v51 }
  0xed   :  { %v394_v55 = vpack.c.bf16 %v393_v54, %v393_v54 }
  0xef   :  { %395 = vst [vmem:[%s644_s3] sm:$0xf] %v394_v55 }

// kernel: _lambda_.14
= control target key start
LH: loop header
LB: loop body
LE: loop exit
PB: predicated region body
PF: predicated region fallthrough
CT: control target
= control target key end

     0   :  { %s1213_s1 = inlined_call_operand.vmem [shape: bf16[1,1024,128], index: 1, kind: input, shape index: {}]   ;;  %s1214_s0 = inlined_call_operand.vmem [shape: bf16[1,8,1024], index: 0, kind: input, shape index: {}]   ;;  %s1215_s2 = inlined_call_operand.vmem [shape: f32[1,128], index: 2, kind: input, shape index: {}]   ;;  %s1216_s3 = inlined_call_operand.vmem [shape: bf16[1,8,128], index: 3, kind: output, shape index: {}]  }
   0x1   :  { %v919_v0 = vld [vmem:[%s1213_s1 + $0x78] sm:$0xff]   ;;  %v923_v4 = vld [vmem:[%s1213_s1 + $0x70] sm:$0xff]   ;;  %v927_v8 = vld [vmem:[%s1213_s1 + $0x68] sm:$0xff]  }
   0x2   :  { %v920_v1 = vld [vmem:[%s1213_s1 + $0xf8] sm:$0xff]   ;;  %831 = vmatprep.subr.bf16.mxu0 %v919_v0  ;;  %v924_v5 = vld [vmem:[%s1213_s1 + $0xf0] sm:$0xff]   ;;  %v928_v9 = vld [vmem:[%s1213_s1 + $0xe8] sm:$0xff]  }
   0x3   :  { %v921_v2 = vld [vmem:[%s1213_s1 + $0x38] sm:$0xff]   ;;  %853 = vmatprep.subr.bf16.mxu1 %v920_v1  ;;  %v925_v6 = vld [vmem:[%s1213_s1 + $0x30] sm:$0xff]   ;;  %v929_v10 = vld [vmem:[%s1213_s1 + $0x28] sm:$0xff]  }
   0x4   :  { %v922_v3 = vld [vmem:[%s1213_s1 + $0xb8] sm:$0xff]   ;;  %832 = vmatpush3.bf16.msra.mxu0 %v921_v2  ;;  %v926_v7 = vld [vmem:[%s1213_s1 + $0xb0] sm:$0xff]   ;;  %v930_v11 = vld [vmem:[%s1213_s1 + $0xa8] sm:$0xff]  }
   0x5   :  { %854 = vmatpush3.bf16.msra.mxu1 %v922_v3  ;;  %833 = vmatprep.subr.bf16.mxu0 %v923_v4  ;;  %v931_v12 = vld [vmem:[%s1213_s1 + $0x60] sm:$0xff]   ;;  %v935_v16 = vld [vmem:[%s1213_s1 + $0x58] sm:$0xff]   ;;  %v939_v20 = vld [vmem:[%s1213_s1 + $0x50] sm:$0xff]  }
   0x6   :  { %855 = vmatprep.subr.bf16.mxu1 %v924_v5  ;;  %v932_v13 = vld [vmem:[%s1213_s1 + $0xe0] sm:$0xff]   ;;  %v936_v17 = vld [vmem:[%s1213_s1 + $0xd8] sm:$0xff]   ;;  %v940_v21 = vld [vmem:[%s1213_s1 + $0xd0] sm:$0xff]  }
   0x7   :  { %v933_v14 = vld [vmem:[%s1213_s1 + $0x20] sm:$0xff]   ;;  %v937_v18 = vld [vmem:[%s1213_s1 + $0x18] sm:$0xff]   ;;  %v941_v22 = vld [vmem:[%s1213_s1 + $0x10] sm:$0xff]  }
   0x8   :  { %834 = vmatpush3.bf16.msra.mxu0 %v925_v6  ;;  %v934_v15 = vld [vmem:[%s1213_s1 + $0xa0] sm:$0xff]   ;;  %v938_v19 = vld [vmem:[%s1213_s1 + $0x98] sm:$0xff]   ;;  %v942_v23 = vld [vmem:[%s1213_s1 + $0x90] sm:$0xff]  }
   0x9   :  { %856 = vmatpush3.bf16.msra.mxu1 %v926_v7  ;;  %835 = vmatprep.subr.bf16.mxu0 %v927_v8  ;;  %v943_v24 = vld [vmem:[%s1213_s1 + $0x48] sm:$0xff]   ;;  %v947_v28 = vld [vmem:[%s1213_s1 + $0x40] sm:$0xff]   ;;  %v951_v36 = vld [vmem:[%s1213_s1 + $0x178] sm:$0xff]  }
   0xa   :  { %857 = vmatprep.subr.bf16.mxu1 %v928_v9  ;;  %v944_v25 = vld [vmem:[%s1213_s1 + $0xc8] sm:$0xff]   ;;  %v948_v29 = vld [vmem:[%s1213_s1 + $0xc0] sm:$0xff]   ;;  %v952_v39 = vld [vmem:[%s1213_s1 + $0x1f8] sm:$0xff]  }
   0xb   :  { %v945_v26 = vld [vmem:[%s1213_s1 + $0x8] sm:$0xff]   ;;  %v949_v30 = vld [vmem:[%s1213_s1] sm:$0xff]   ;;  %v953_v44 = vld [vmem:[%s1213_s1 + $0x138] sm:$0xff]  }
   0xc   :  { %836 = vmatpush3.bf16.msra.mxu0 %v929_v10  ;;  %v946_v27 = vld [vmem:[%s1213_s1 + $0x88] sm:$0xff]   ;;  %v950_v31 = vld [vmem:[%s1213_s1 + $0x80] sm:$0xff]   ;;  %v954_v45 = vld [vmem:[%s1213_s1 + $0x1b8] sm:$0xff]  }
   0xd   :  { %858 = vmatpush3.bf16.msra.mxu1 %v930_v11  ;;  %837 = vmatprep.subr.bf16.mxu0 %v931_v12  ;;  %v21_v32 = vld [vmem:[%s1214_s0] sm:$0xff]  ;;  %v22_v33 = vld [vmem:[%s1214_s0 + $0x8] sm:$0xff]  ;;  %v955_v46 = vld [vmem:[%s1213_s1 + $0x170] sm:$0xff]  }
   0xe   :  { %859 = vmatprep.subr.bf16.mxu1 %v932_v13  ;;  %vm25_vm0 = vcmp.gt.bf16.partialorder %v21_v32, 0  ;;  %v29_v34 = vmul.bf16 1045249613, %v21_v32  ;;  %vm26_vm1 = vcmp.gt.bf16.partialorder %v22_v33, 0  ;;  %v30_v35 = vmul.bf16 1045249613, %v22_v33 }
   0xf   :  { %v956_v47 = vld [vmem:[%s1213_s1 + $0x1f0] sm:$0xff]   ;;  %v959_v50 = vld [vmem:[%s1213_s1 + $0x168] sm:$0xff]   ;;  %v963_v54 = vld [vmem:[%s1213_s1 + $0x160] sm:$0xff]  }
  0x10   :  { %838 = vmatpush3.bf16.msra.mxu0 %v933_v14  ;;  %v33_v37 = vsel %vm25_vm0, %v21_v32, %v29_v34  ;;  %v34_v38 = vsel %vm26_vm1, %v22_v33, %v30_v35  ;;  %v957_v48 = vld [vmem:[%s1213_s1 + $0x130] sm:$0xff]   ;;  %v960_v51 = vld [vmem:[%s1213_s1 + $0x1e8] sm:$0xff]   ;;  %v964_v55 = vld [vmem:[%s1213_s1 + $0x1e0] sm:$0xff]  }
  0x11   :  { %860 = vmatpush3.bf16.msra.mxu1 %v934_v15  ;;  %839 = vmatprep.subr.bf16.mxu0 %v935_v16  ;;  %v758_v40 = vcombine.low %v33_v37, %v33_v37  ;;  %v759_v41 = vcombine.high %v33_v37, %v33_v37  ;;  %v760_v42 = vcombine.low %v34_v38, %v34_v38  ;;  %v958_v49 = vld [vmem:[%s1213_s1 + $0x1b0] sm:$0xff]   ;;  %v961_v52 = vld [vmem:[%s1213_s1 + $0x128] sm:$0xff]   ;;  %v965_v56 = vld [vmem:[%s1213_s1 + $0x120] sm:$0xff]  }
  0x12   :  { %861 = vmatprep.subr.bf16.mxu1 %v936_v17  ;;  %v761_v43 = vcombine.high %v34_v38, %v34_v38  ;;  %v962_v53 = vld [vmem:[%s1213_s1 + $0x1a8] sm:$0xff]   ;;  %v966_v57 = vld [vmem:[%s1213_s1 + $0x1a0] sm:$0xff]   ;;  %v967_v58 = vld [vmem:[%s1213_s1 + $0x158] sm:$0xff]  }
  0x13   :  { %610 = vmatprep.mubr.bf16.mxu0 %v759_v41  ;;  %v968_v59 = vld [vmem:[%s1213_s1 + $0x1d8] sm:$0xff]   ;;  %v971_v62 = vld [vmem:[%s1213_s1 + $0x150] sm:$0xff]   ;;  %v975_v2 = vld [vmem:[%s1213_s1 + $0x148] sm:$0xff]  }
  0x14   :  { %840 = vmatpush3.bf16.msra.mxu0 %v937_v18  ;;  %650 = vmatprep.mubr.bf16.mxu1 %v761_v43  ;;  %v969_v60 = vld [vmem:[%s1213_s1 + $0x118] sm:$0xff]   ;;  %v972_v63 = vld [vmem:[%s1213_s1 + $0x1d0] sm:$0xff]   ;;  %v976_v3 = vld [vmem:[%s1213_s1 + $0x1c8] sm:$0xff]  }
  0x15   :  { %862 = vmatpush3.bf16.msra.mxu1 %v938_v19  ;;  %841 = vmatprep.subr.bf16.mxu0 %v939_v20  ;;  %v970_v61 = vld [vmem:[%s1213_s1 + $0x198] sm:$0xff]   ;;  %v973_v0 = vld [vmem:[%s1213_s1 + $0x110] sm:$0xff]   ;;  %v977_v4 = vld [vmem:[%s1213_s1 + $0x108] sm:$0xff]  }
  0x16   :  { %863 = vmatprep.subr.bf16.mxu1 %v940_v21  ;;  %v974_v1 = vld [vmem:[%s1213_s1 + $0x190] sm:$0xff]   ;;  %v978_v5 = vld [vmem:[%s1213_s1 + $0x188] sm:$0xff]   ;;  %v979_v6 = vld [vmem:[%s1213_s1 + $0x140] sm:$0xff]  }
  0x17   :  { %v980_v7 = vld [vmem:[%s1213_s1 + $0x1c0] sm:$0xff]   ;;  %v23_v10 = vld [vmem:[%s1214_s0 + $0x10] sm:$0xff]  ;;  %v24_v12 = vld [vmem:[%s1214_s0 + $0x18] sm:$0xff] }
  0x18   :  { %842 = vmatpush3.bf16.msra.mxu0 %v941_v22  ;;  %v981_v8 = vld [vmem:[%s1213_s1 + $0x100] sm:$0xff]   ;;  %vm27_vm2 = vcmp.gt.bf16.partialorder %v23_v10, 0  ;;  %v31_v11 = vmul.bf16 1045249613, %v23_v10  ;;  %vm28_vm3 = vcmp.gt.bf16.partialorder %v24_v12, 0 }
  0x19   :  { %864 = vmatpush3.bf16.msra.mxu1 %v942_v23  ;;  %843 = vmatprep.subr.bf16.mxu0 %v943_v24  ;;  %v982_v9 = vld [vmem:[%s1213_s1 + $0x180] sm:$0xff]   ;;  %v32_v13 = vmul.bf16 1045249613, %v24_v12 }
  0x1a   :  { %865 = vmatprep.subr.bf16.mxu1 %v944_v25  ;;  %v35_v14 = vsel %vm27_vm2, %v23_v10, %v31_v11 }
  0x1b   :  { %v762_v15 = vcombine.low %v35_v14, %v35_v14  ;;  %v763_v16 = vcombine.high %v35_v14, %v35_v14  ;;  %v36_v17 = vsel %vm28_vm3, %v24_v12, %v32_v13 }
  0x1c   :  { %844 = vmatpush3.bf16.msra.mxu0 %v945_v26  ;;  %v764_v18 = vcombine.low %v36_v17, %v36_v17  ;;  %v765_v19 = vcombine.high %v36_v17, %v36_v17 }
  0x1d   :  { %866 = vmatpush3.bf16.msra.mxu1 %v946_v27  ;;  %845 = vmatprep.subr.bf16.mxu0 %v947_v28 }
  0x1e   :  { %867 = vmatprep.subr.bf16.mxu1 %v948_v29 }
  0x20   :  { %846 = vmatpush3.bf16.msra.mxu0 %v949_v30 }
  0x21   :  { %868 = vmatpush3.bf16.msra.mxu1 %v950_v31  ;;  %875 = vmatprep.subr.bf16.mxu0 %v951_v36 }
  0x22   :  { %897 = vmatprep.subr.bf16.mxu1 %v952_v39 }
  0x23   :  { %611 = vmatmul.mubr.bf16.vlgmr.msra.gmra.mxu0 %v758_v40  ;;  %v830_v40 = vld [vmem:[%s1215_s2] ss:$0 sm:$0xff] }
  0x24   :  { %651 = vmatmul.mubr.bf16.vlgmr.msra.gmra.mxu1 %v760_v42  ;;  %876 = vmatpush3.bf16.msra.mxu0 %v953_v44 }
  0x25   :  { %898 = vmatpush3.bf16.msra.mxu1 %v954_v45  ;;  %877 = vmatprep.subr.bf16.mxu0 %v955_v46 }
  0x26   :  { %899 = vmatprep.subr.bf16.mxu1 %v956_v47  ;;  %690 = vmatprep.mubr.bf16.mxu0 %v763_v16 }
  0x27   :  { %730 = vmatprep.mubr.bf16.mxu1 %v765_v19 }
  0x28   :  { %878 = vmatpush3.bf16.msra.mxu0 %v957_v48 }
  0x29   :  { %900 = vmatpush3.bf16.msra.mxu1 %v958_v49  ;;  %879 = vmatprep.subr.bf16.mxu0 %v959_v50 }
  0x2a   :  { %901 = vmatprep.subr.bf16.mxu1 %v960_v51 }
  0x2c   :  { %880 = vmatpush3.bf16.msra.mxu0 %v961_v52 }
  0x2d   :  { %902 = vmatpush3.bf16.msra.mxu1 %v962_v53  ;;  %881 = vmatprep.subr.bf16.mxu0 %v963_v54 }
  0x2e   :  { %903 = vmatprep.subr.bf16.mxu1 %v964_v55 }
  0x30   :  { %882 = vmatpush3.bf16.msra.mxu0 %v965_v56 }
  0x31   :  { %904 = vmatpush3.bf16.msra.mxu1 %v966_v57  ;;  %883 = vmatprep.subr.bf16.mxu0 %v967_v58 }
  0x32   :  { %905 = vmatprep.subr.bf16.mxu1 %v968_v59 }
  0x34   :  { %884 = vmatpush3.bf16.msra.mxu0 %v969_v60 }
  0x35   :  { %906 = vmatpush3.bf16.msra.mxu1 %v970_v61  ;;  %885 = vmatprep.subr.bf16.mxu0 %v971_v62 }
  0x36   :  { %907 = vmatprep.subr.bf16.mxu1 %v972_v63 }
  0x38   :  { %886 = vmatpush3.bf16.msra.mxu0 %v973_v0 }
  0x39   :  { %908 = vmatpush3.bf16.msra.mxu1 %v974_v1  ;;  %887 = vmatprep.subr.bf16.mxu0 %v975_v2 }
  0x3a   :  { %909 = vmatprep.subr.bf16.mxu1 %v976_v3 }
  0x3c   :  { %888 = vmatpush3.bf16.msra.mxu0 %v977_v4 }
  0x3d   :  { %910 = vmatpush3.bf16.msra.mxu1 %v978_v5  ;;  %889 = vmatprep.subr.bf16.mxu0 %v979_v6 }
  0x3e   :  { %911 = vmatprep.subr.bf16.mxu1 %v980_v7 }
  0x40   :  { %890 = vmatpush3.bf16.msra.mxu0 %v981_v8 }
  0x41   :  { %912 = vmatpush3.bf16.msra.mxu1 %v982_v9 }
  0x43   :  { %691 = vmatmul.mubr.bf16.vlgmr.msra.gmra.mxu0 %v762_v15 }
  0x44   :  { %731 = vmatmul.mubr.bf16.vlgmr.msra.gmra.mxu1 %v764_v18 }
  0xe3   :  { %v847_v20 = vpop.f32.mrf.mxu0 }
  0xe4   :  { %v869_v21 = vpop.f32.mrf.mxu1 }
  0xe5   :  { %v848_v22 = vpop.f32.mrf.mxu0 }
  0xe6   :  { %v870_v23 = vpop.f32.mrf.mxu1  ;;  %v849_v28 = vadd.f32 %v848_v22, %v847_v20 }
  0xe7   :  { %v850_v24 = vpop.f32.mrf.mxu0  ;;  %v871_v29 = vadd.f32 %v870_v23, %v869_v21 }
  0xe8   :  { %v872_v25 = vpop.f32.mrf.mxu1 }
  0xe9   :  { %v851_v26 = vpop.f32.mrf.mxu0  ;;  %v653_v33 = vadd.f32 %v871_v29, %v849_v28 }
  0xea   :  { %v873_v27 = vpop.f32.mrf.mxu1 }
 0x103   :  { %v891_v30 = vpop.f32.mrf.mxu0 }
 0x104   :  { %v913_v31 = vpop.f32.mrf.mxu1 }
 0x105   :  { %v892_v32 = vpop.f32.mrf.mxu0 }
 0x106   :  { %v893_v34 = vadd.f32 %v892_v32, %v891_v30  ;;  %v914_v35 = vpop.f32.mrf.mxu1 }
 0x107   :  { %v894_v36 = vpop.f32.mrf.mxu0  ;;  %v915_v38 = vadd.f32 %v914_v35, %v913_v31 }
 0x108   :  { %v693_v37 = vadd.f32 %v893_v34, %v653_v33  ;;  %v916_v39 = vpop.f32.mrf.mxu1 }
 0x109   :  { %v895_v41 = vpop.f32.mrf.mxu0 }
 0x10a   :  { %v733_v42 = vadd.f32 %v915_v38, %v693_v37  ;;  %v917_v43 = vpop.f32.mrf.mxu1 }
 0x10c   :  { %v751_v44 = vadd.f32 %v830_v40, %v733_v42 }
 0x10e   :  { %v752_v45 = vpack.c.bf16 %v751_v44, %v751_v44 }
 0x110   :  { %753 = vst [vmem:[%s1216_s3] sm:$0xf] %v752_v45 }

// kernel: _lambda_.15
= control target key start
LH: loop header
LB: loop body
LE: loop exit
PB: predicated region body
PF: predicated region fallthrough
CT: control target
= control target key end

     0   :  { %s685_s12 = smov 0   ;;  %s687_s13 = smov 0   ;;  %s747_s0 = inlined_call_operand.vmem [shape: bf16[4,8,256], index: 0, kind: input, shape index: {}]   ;;  %s748_s1 = inlined_call_operand.vmem [shape: bf16[4,256,128], index: 1, kind: input, shape index: {}]   ;;  %s749_s2 = inlined_call_operand.vmem [shape: f32[1,128], index: 2, kind: input, shape index: {}]   ;;  %s750_s3 = inlined_call_operand.vmem [shape: bf16[4,8,128], index: 3, kind: output, shape index: {}]  }
   0x1   :  { %s689_s14 = smov 0  }
   0x2 LB: > { %s32_s15 = sadd.s32 1, %s658_s13  ;;  %p548_p0 = scmp.ge.s32.totalorder %s662_s14, 1  ;;  %s662_s14 = sphi %s689_s14, %s13_s14   ;;  %s658_s13 = sphi %s687_s13, %s752_s13   ;;  %s654_s12 = sphi %s685_s12, %s751_s12  }
   0x3   : > { %p34_p1 = scmp.ge.s32.totalorder %s32_s15, 4  ;;  %p181_p2 = scmp.lt.s32.totalorder %s662_s14, 5 }
   0x5   : > { %s754_s15 = smov (%p34_p1, %s32_s15), 0  ;;  %p182_p3 = pnand %p548_p0, %p181_p2 }
   0x6   : > { %p221_p4 = scmp.lt.s32.totalorder (!%p182_p3), %s654_s12, 3 }
   0x7   : > { %185 = sbr.rel (%p182_p3) target bundleno = 250 (0xfa), region = 32 }
   0xc   : > { %s756_s12 = smov (!%p221_p4, %s654_s12), 3  ;;  %v664_v12 = vmov 0   ;;  %v572_v23 = vld [vmem:[%s749_s2] ss:$0 sm:$0xff] }
   0xd   : > { %s576_s16 = sshll.u32 %s756_s12, 7  ;;  %s575_s20 = sshll.u32 %s756_s12, 3 }
   0xe   : > { %s709_s19 = scalar_lea.vmem %s748_s1, %s576_s16  ;;  %s232_s23 = scalar_lea.vmem %s747_s0, %s575_s20 }
   0xf   : > { %v624_v0 = vld [vmem:[%s709_s19 + $0x78] sm:$0xff]   ;;  %v626_v2 = vld [vmem:[%s709_s19 + $0x70] sm:$0xff]   ;;  %v628_v4 = vld [vmem:[%s709_s19 + $0x68] sm:$0xff]   ;;  %s553_s26 = sshll.u32 %s756_s12, 2 }
  0x10   : > { %v625_v1 = vld [vmem:[%s709_s19 + $0x38] sm:$0xff]   ;;  %577 = vmatprep.subr.bf16.mxu0 %v624_v0  ;;  %v627_v3 = vld [vmem:[%s709_s19 + $0x30] sm:$0xff]   ;;  %v629_v5 = vld [vmem:[%s709_s19 + $0x28] sm:$0xff]   ;;  %s245_s29 = scalar_lea.vmem %s750_s3, %s553_s26 }
  0x11   : > { %578 = vmatpush3.bf16.msra.mxu0 %v625_v1  ;;  %v630_v6 = vld [vmem:[%s709_s19 + $0x60] sm:$0xff]   ;;  %v632_v8 = vld [vmem:[%s709_s19 + $0x58] sm:$0xff]   ;;  %v634_v10 = vld [vmem:[%s709_s19 + $0x50] sm:$0xff]  }
  0x12   : > { %579 = vmatprep.subr.bf16.mxu0 %v626_v2  ;;  %v631_v7 = vld [vmem:[%s709_s19 + $0x20] sm:$0xff]   ;;  %v633_v9 = vld [vmem:[%s709_s19 + $0x18] sm:$0xff]   ;;  %v635_v14 = vld [vmem:[%s709_s19 + $0x10] sm:$0xff]  }
  0x13   : > { %v252_v11 = vld [vmem:[%s232_s23] sm:$0xff]  ;;  %v636_v16 = vld [vmem:[%s709_s19 + $0x48] sm:$0xff]  }
  0x14   : > { %v253_v13 = vmax.bf16 %v664_v12, %v252_v11  ;;  %v637_v17 = vld [vmem:[%s709_s19 + $0x8] sm:$0xff]   ;;  %v638_v18 = vld [vmem:[%s709_s19 + $0x40] sm:$0xff]  }
  0x15   : > { %580 = vmatpush3.bf16.msra.mxu0 %v627_v3  ;;  %v639_v19 = vld [vmem:[%s709_s19] sm:$0xff]  }
  0x16   : > { %581 = vmatprep.subr.bf16.mxu0 %v628_v4  ;;  %v555_v15 = vcombine.high %v253_v13, %v253_v13  ;;  %v554_v20 = vcombine.low %v253_v13, %v253_v13 }
  0x18   : > { %422 = vmatprep.mubr.bf16.mxu0 %v555_v15 }
  0x19   : > { %582 = vmatpush3.bf16.msra.mxu0 %v629_v5 }
  0x1a   : > { %583 = vmatprep.subr.bf16.mxu0 %v630_v6 }
  0x1d   : > { %584 = vmatpush3.bf16.msra.mxu0 %v631_v7 }
  0x1e   : > { %585 = vmatprep.subr.bf16.mxu0 %v632_v8 }
  0x21   : > { %586 = vmatpush3.bf16.msra.mxu0 %v633_v9 }
  0x22   : > { %587 = vmatprep.subr.bf16.mxu0 %v634_v10 }
  0x25   : > { %588 = vmatpush3.bf16.msra.mxu0 %v635_v14 }
  0x26   : > { %589 = vmatprep.subr.bf16.mxu0 %v636_v16 }
  0x29   : > { %590 = vmatpush3.bf16.msra.mxu0 %v637_v17 }
  0x2a   : > { %591 = vmatprep.subr.bf16.mxu0 %v638_v18 }
  0x2d   : > { %592 = vmatpush3.bf16.msra.mxu0 %v639_v19 }
  0x30   : > { %423 = vmatmul.mubr.bf16.vlgmr.msra.gmra.mxu0 %v554_v20 }
  0xf0   : > { %v593_v21 = vpop.f32.mrf.mxu0 }
  0xf2   : > { %v594_v22 = vpop.f32.mrf.mxu0 }
  0xf3   : > { %v595_v24 = vadd.f32 %v594_v22, %v593_v21 }
  0xf4   : > { %v596_v25 = vpop.f32.mrf.mxu0 }
  0xf5   : > { %v443_v26 = vadd.f32 %v595_v24, %v572_v23 }
  0xf6   : > { %v597_v27 = vpop.f32.mrf.mxu0 }
  0xf7   : > { %v444_v28 = vpack.c.bf16 %v443_v26, %v443_v26 }
  0xf9   : > { %445 = vst [vmem:[%s245_s29] sm:$0xf] %v444_v28 }
  0xfa PF: > { %s13_s14 = sadd.s32 1, %s662_s14   ;;  %s751_s12 = smov %s658_s13 }
  0xfb   : > { %p10_p5 = scmp.ge.s32.totalorder %s13_s14, 6   ;;  %s752_s13 = smov %s754_s15 }
  0xfd   :  { %12 = sbr.rel (!%p10_p5) target bundleno = 2 (0x2), region = 73 }

// kernel: _lambda_.16
= control target key start
LH: loop header
LB: loop body
LE: loop exit
PB: predicated region body
PF: predicated region fallthrough
CT: control target
= control target key end

     0   :  { %s918_s12 = smov 0   ;;  %s920_s13 = smov 0   ;;  %s996_s0 = inlined_call_operand.vmem [shape: bf16[4,8,512], index: 0, kind: input, shape index: {}]   ;;  %s997_s1 = inlined_call_operand.vmem [shape: bf16[4,512,128], index: 1, kind: input, shape index: {}]   ;;  %s998_s2 = inlined_call_operand.vmem [shape: f32[1,128], index: 2, kind: input, shape index: {}]   ;;  %s999_s3 = inlined_call_operand.vmem [shape: bf16[4,8,128], index: 3, kind: output, shape index: {}]  }
   0x1   :  { %s922_s14 = smov 0  }
   0x2 LB: > { %s32_s15 = sadd.s32 1, %s891_s13  ;;  %p725_p0 = scmp.ge.s32.totalorder %s895_s14, 1  ;;  %s895_s14 = sphi %s922_s14, %s13_s14   ;;  %s891_s13 = sphi %s920_s13, %s1001_s13   ;;  %s887_s12 = sphi %s918_s12, %s1000_s12  }
   0x3   : > { %p34_p1 = scmp.ge.s32.totalorder %s32_s15, 4  ;;  %p181_p2 = scmp.lt.s32.totalorder %s895_s14, 5 }
   0x5   : > { %s1003_s15 = smov (%p34_p1, %s32_s15), 0  ;;  %p182_p3 = pnand %p725_p0, %p181_p2 }
   0x6   : > { %p221_p4 = scmp.lt.s32.totalorder (!%p182_p3), %s887_s12, 3 }
   0x7   : > { %185 = sbr.rel (%p182_p3) target bundleno = 254 (0xfe), region = 32 }
   0xc   : > { %s1005_s12 = smov (!%p221_p4, %s887_s12), 3  ;;  %v897_v34 = vmov 0   ;;  %v767_v47 = vld [vmem:[%s998_s2] ss:$0 sm:$0xff] }
   0xd   : > { %s771_s16 = sshll.u32 %s1005_s12, 8  ;;  %s770_s20 = sshll.u32 %s1005_s12, 4 }
   0xe   : > { %s942_s19 = scalar_lea.vmem %s997_s1, %s771_s16  ;;  %s232_s23 = scalar_lea.vmem %s996_s0, %s770_s20 }
   0xf   : > { %v841_v0 = vld [vmem:[%s942_s19 + $0x78] sm:$0xff]   ;;  %v845_v4 = vld [vmem:[%s942_s19 + $0x70] sm:$0xff]   ;;  %v849_v8 = vld [vmem:[%s942_s19 + $0x68] sm:$0xff]   ;;  %s730_s26 = sshll.u32 %s1005_s12, 2 }
  0x10   : > { %v842_v1 = vld [vmem:[%s942_s19 + $0xf8] sm:$0xff]   ;;  %772 = vmatprep.subr.bf16.mxu0 %v841_v0  ;;  %v846_v5 = vld [vmem:[%s942_s19 + $0xf0] sm:$0xff]   ;;  %v850_v9 = vld [vmem:[%s942_s19 + $0xe8] sm:$0xff]   ;;  %s245_s29 = scalar_lea.vmem %s999_s3, %s730_s26 }
  0x11   : > { %v843_v2 = vld [vmem:[%s942_s19 + $0x38] sm:$0xff]   ;;  %794 = vmatprep.subr.bf16.mxu1 %v842_v1  ;;  %v847_v6 = vld [vmem:[%s942_s19 + $0x30] sm:$0xff]   ;;  %v851_v10 = vld [vmem:[%s942_s19 + $0x28] sm:$0xff]  }
  0x12   : > { %v844_v3 = vld [vmem:[%s942_s19 + $0xb8] sm:$0xff]   ;;  %773 = vmatpush3.bf16.msra.mxu0 %v843_v2  ;;  %v848_v7 = vld [vmem:[%s942_s19 + $0xb0] sm:$0xff]   ;;  %v852_v11 = vld [vmem:[%s942_s19 + $0xa8] sm:$0xff]  }
  0x13   : > { %795 = vmatpush3.bf16.msra.mxu1 %v844_v3  ;;  %774 = vmatprep.subr.bf16.mxu0 %v845_v4  ;;  %v853_v12 = vld [vmem:[%s942_s19 + $0x60] sm:$0xff]   ;;  %v857_v16 = vld [vmem:[%s942_s19 + $0x58] sm:$0xff]   ;;  %v861_v20 = vld [vmem:[%s942_s19 + $0x50] sm:$0xff]  }
  0x14   : > { %796 = vmatprep.subr.bf16.mxu1 %v846_v5  ;;  %v854_v13 = vld [vmem:[%s942_s19 + $0xe0] sm:$0xff]   ;;  %v858_v17 = vld [vmem:[%s942_s19 + $0xd8] sm:$0xff]   ;;  %v862_v21 = vld [vmem:[%s942_s19 + $0xd0] sm:$0xff]  }
  0x15   : > { %v855_v14 = vld [vmem:[%s942_s19 + $0x20] sm:$0xff]   ;;  %v859_v18 = vld [vmem:[%s942_s19 + $0x18] sm:$0xff]   ;;  %v863_v22 = vld [vmem:[%s942_s19 + $0x10] sm:$0xff]  }
  0x16   : > { %775 = vmatpush3.bf16.msra.mxu0 %v847_v6  ;;  %v856_v15 = vld [vmem:[%s942_s19 + $0xa0] sm:$0xff]   ;;  %v860_v19 = vld [vmem:[%s942_s19 + $0x98] sm:$0xff]   ;;  %v864_v23 = vld [vmem:[%s942_s19 + $0x90] sm:$0xff]  }
  0x17   : > { %797 = vmatpush3.bf16.msra.mxu1 %v848_v7  ;;  %776 = vmatprep.subr.bf16.mxu0 %v849_v8  ;;  %v865_v24 = vld [vmem:[%s942_s19 + $0x48] sm:$0xff]   ;;  %v869_v28 = vld [vmem:[%s942_s19 + $0x40] sm:$0xff]  }
  0x18   : > { %798 = vmatprep.subr.bf16.mxu1 %v850_v9  ;;  %v866_v25 = vld [vmem:[%s942_s19 + $0xc8] sm:$0xff]   ;;  %v870_v29 = vld [vmem:[%s942_s19 + $0xc0] sm:$0xff]  }
  0x19   : > { %v867_v26 = vld [vmem:[%s942_s19 + $0x8] sm:$0xff]   ;;  %v871_v30 = vld [vmem:[%s942_s19] sm:$0xff]  }
  0x1a   : > { %777 = vmatpush3.bf16.msra.mxu0 %v851_v10  ;;  %v868_v27 = vld [vmem:[%s942_s19 + $0x88] sm:$0xff]   ;;  %v872_v31 = vld [vmem:[%s942_s19 + $0x80] sm:$0xff]  }
  0x1b   : > { %799 = vmatpush3.bf16.msra.mxu1 %v852_v11  ;;  %778 = vmatprep.subr.bf16.mxu0 %v853_v12  ;;  %v252_v32 = vld [vmem:[%s232_s23] sm:$0xff]  ;;  %v253_v33 = vld [vmem:[%s232_s23 + $0x8] sm:$0xff] }
  0x1c   : > { %800 = vmatprep.subr.bf16.mxu1 %v854_v13  ;;  %v254_v35 = vmax.bf16 %v897_v34, %v252_v32  ;;  %v255_v36 = vmax.bf16 %v897_v34, %v253_v33 }
  0x1e   : > { %779 = vmatpush3.bf16.msra.mxu0 %v855_v14  ;;  %v732_v37 = vcombine.high %v254_v35, %v254_v35  ;;  %v734_v38 = vcombine.high %v255_v36, %v255_v36  ;;  %v731_v39 = vcombine.low %v254_v35, %v254_v35  ;;  %v733_v40 = vcombine.low %v255_v36, %v255_v36 }
  0x1f   : > { %801 = vmatpush3.bf16.msra.mxu1 %v856_v15  ;;  %780 = vmatprep.subr.bf16.mxu0 %v857_v16 }
  0x20   : > { %802 = vmatprep.subr.bf16.mxu1 %v858_v17  ;;  %559 = vmatprep.mubr.bf16.mxu0 %v732_v37 }
  0x21   : > { %599 = vmatprep.mubr.bf16.mxu1 %v734_v38 }
  0x22   : > { %781 = vmatpush3.bf16.msra.mxu0 %v859_v18 }
  0x23   : > { %803 = vmatpush3.bf16.msra.mxu1 %v860_v19  ;;  %782 = vmatprep.subr.bf16.mxu0 %v861_v20 }
  0x24   : > { %804 = vmatprep.subr.bf16.mxu1 %v862_v21 }
  0x26   : > { %783 = vmatpush3.bf16.msra.mxu0 %v863_v22 }
  0x27   : > { %805 = vmatpush3.bf16.msra.mxu1 %v864_v23  ;;  %784 = vmatprep.subr.bf16.mxu0 %v865_v24 }
  0x28   : > { %806 = vmatprep.subr.bf16.mxu1 %v866_v25 }
  0x2a   : > { %785 = vmatpush3.bf16.msra.mxu0 %v867_v26 }
  0x2b   : > { %807 = vmatpush3.bf16.msra.mxu1 %v868_v27  ;;  %786 = vmatprep.subr.bf16.mxu0 %v869_v28 }
  0x2c   : > { %808 = vmatprep.subr.bf16.mxu1 %v870_v29 }
  0x2e   : > { %787 = vmatpush3.bf16.msra.mxu0 %v871_v30 }
  0x2f   : > { %809 = vmatpush3.bf16.msra.mxu1 %v872_v31 }
  0x31   : > { %560 = vmatmul.mubr.bf16.vlgmr.msra.gmra.mxu0 %v731_v39 }
  0x32   : > { %600 = vmatmul.mubr.bf16.vlgmr.msra.gmra.mxu1 %v733_v40 }
  0xf1   : > { %v788_v41 = vpop.f32.mrf.mxu0 }
  0xf2   : > { %v810_v42 = vpop.f32.mrf.mxu1 }
  0xf3   : > { %v789_v43 = vpop.f32.mrf.mxu0 }
  0xf4   : > { %v811_v44 = vpop.f32.mrf.mxu1  ;;  %v790_v45 = vadd.f32 %v789_v43, %v788_v41 }
  0xf5   : > { %v812_v46 = vadd.f32 %v811_v44, %v810_v42  ;;  %v791_v48 = vpop.f32.mrf.mxu0 }
  0xf6   : > { %v813_v49 = vpop.f32.mrf.mxu1 }
  0xf7   : > { %v602_v50 = vadd.f32 %v812_v46, %v790_v45  ;;  %v792_v51 = vpop.f32.mrf.mxu0 }
  0xf8   : > { %v814_v52 = vpop.f32.mrf.mxu1 }
  0xf9   : > { %v620_v53 = vadd.f32 %v767_v47, %v602_v50 }
  0xfb   : > { %v621_v54 = vpack.c.bf16 %v620_v53, %v620_v53 }
  0xfd   : > { %622 = vst [vmem:[%s245_s29] sm:$0xf] %v621_v54 }
  0xfe PF: > { %s13_s14 = sadd.s32 1, %s895_s14   ;;  %s1000_s12 = smov %s891_s13 }
  0xff   : > { %p10_p5 = scmp.ge.s32.totalorder %s13_s14, 6   ;;  %s1001_s13 = smov %s1003_s15 }
 0x101   :  { %12 = sbr.rel (!%p10_p5) target bundleno = 2 (0x2), region = 73 }

// kernel: _lambda_.17
= control target key start
LH: loop header
LB: loop body
LE: loop exit
PB: predicated region body
PF: predicated region fallthrough
CT: control target
= control target key end

     0   :  { %s814_s12 = smov 0   ;;  %s816_s13 = smov 0   ;;  %s876_s0 = inlined_call_operand.vmem [shape: bf16[4,32,256], index: 0, kind: input, shape index: {}]   ;;  %s877_s1 = inlined_call_operand.vmem [shape: bf16[4,256,128], index: 1, kind: input, shape index: {}]   ;;  %s878_s2 = inlined_call_operand.vmem [shape: f32[1,128], index: 2, kind: input, shape index: {}]   ;;  %s879_s3 = inlined_call_operand.vmem [shape: bf16[4,32,128], index: 3, kind: output, shape index: {}]  }
   0x1   :  { %s818_s14 = smov 0  }
   0x2 LB: > { %s32_s15 = sadd.s32 1, %s787_s13  ;;  %p632_p0 = scmp.ge.s32.totalorder %s791_s14, 1  ;;  %s791_s14 = sphi %s818_s14, %s13_s14   ;;  %s787_s13 = sphi %s816_s13, %s881_s13   ;;  %s783_s12 = sphi %s814_s12, %s880_s12  }
   0x3   : > { %p34_p1 = scmp.ge.s32.totalorder %s32_s15, 4  ;;  %p183_p2 = scmp.lt.s32.totalorder %s791_s14, 5 }
   0x5   : > { %s883_s15 = smov (%p34_p1, %s32_s15), 0  ;;  %p184_p3 = pnand %p632_p0, %p183_p2 }
   0x6   : > { %p227_p4 = scmp.lt.s32.totalorder (!%p184_p3), %s783_s12, 3 }
   0x7   : > { %187 = sbr.rel (%p184_p3) target bundleno = 254 (0xfe), region = 32 }
   0xc   : > { %s885_s12 = smov (!%p227_p4, %s783_s12), 3  ;;  %v793_v14 = vmov 0   ;;  %v659_v37 = vld [vmem:[%s878_s2] ss:$0 sm:$0xff] }
   0xd   : > { %s667_s16 = sshll.u32 %s885_s12, 7  ;;  %s666_s20 = sshll.u32 %s885_s12, 5 }
   0xe   : > { %s838_s19 = scalar_lea.vmem %s877_s1, %s667_s16  ;;  %s238_s23 = scalar_lea.vmem %s876_s0, %s666_s20 }
   0xf   : > { %v753_v0 = vld [vmem:[%s838_s19 + $0x78] sm:$0xff]   ;;  %v755_v2 = vld [vmem:[%s838_s19 + $0x70] sm:$0xff]   ;;  %v757_v4 = vld [vmem:[%s838_s19 + $0x68] sm:$0xff]   ;;  %s668_s26 = sshll.u32 %s885_s12, 4 }
  0x10   : > { %v754_v1 = vld [vmem:[%s838_s19 + $0x38] sm:$0xff]   ;;  %684 = vmatprep.subr.bf16.mxu0 %v753_v0  ;;  %712 = vmatprep.subr.bf16.mxu1 %v753_v0  ;;  %v756_v3 = vld [vmem:[%s838_s19 + $0x30] sm:$0xff]   ;;  %v758_v5 = vld [vmem:[%s838_s19 + $0x28] sm:$0xff]   ;;  %s254_s29 = scalar_lea.vmem %s879_s3, %s668_s26 }
  0x11   : > { %685 = vmatpush3.bf16.msra.mxu0 %v754_v1  ;;  %720 = vmatpush3.bf16.msra.mxu1 %v754_v1  ;;  %v759_v6 = vld [vmem:[%s838_s19 + $0x60] sm:$0xff]   ;;  %v761_v8 = vld [vmem:[%s838_s19 + $0x58] sm:$0xff]   ;;  %v763_v10 = vld [vmem:[%s838_s19 + $0x50] sm:$0xff]  }
  0x12   : > { %686 = vmatprep.subr.bf16.mxu0 %v755_v2  ;;  %713 = vmatprep.subr.bf16.mxu1 %v755_v2  ;;  %v760_v7 = vld [vmem:[%s838_s19 + $0x20] sm:$0xff]   ;;  %v762_v9 = vld [vmem:[%s838_s19 + $0x18] sm:$0xff]   ;;  %v266_v12 = vld [vmem:[%s238_s23 + $0x8] sm:$0xff] }
  0x13   : > { %v265_v11 = vld [vmem:[%s238_s23] sm:$0xff]  ;;  %v267_v13 = vld [vmem:[%s238_s23 + $0x10] sm:$0xff]  ;;  %v270_v16 = vmax.bf16 %v793_v14, %v266_v12  ;;  %v268_v17 = vld [vmem:[%s238_s23 + $0x18] sm:$0xff] }
  0x14   : > { %v269_v15 = vmax.bf16 %v793_v14, %v265_v11  ;;  %v271_v18 = vmax.bf16 %v793_v14, %v267_v13  ;;  %v272_v19 = vmax.bf16 %v793_v14, %v268_v17  ;;  %v764_v20 = vld [vmem:[%s838_s19 + $0x10] sm:$0xff]   ;;  %v765_v22 = vld [vmem:[%s838_s19 + $0x48] sm:$0xff]   ;;  %v767_v25 = vld [vmem:[%s838_s19 + $0x40] sm:$0xff]  }
  0x15   : > { %687 = vmatpush3.bf16.msra.mxu0 %v756_v3  ;;  %721 = vmatpush3.bf16.msra.mxu1 %v756_v3  ;;  %v766_v24 = vld [vmem:[%s838_s19 + $0x8] sm:$0xff]   ;;  %v768_v26 = vld [vmem:[%s838_s19] sm:$0xff]  }
  0x16   : > { %688 = vmatprep.subr.bf16.mxu0 %v757_v4  ;;  %714 = vmatprep.subr.bf16.mxu1 %v757_v4  ;;  %v640_v21 = vcombine.high %v269_v15, %v270_v16  ;;  %v642_v23 = vcombine.high %v271_v18, %v272_v19  ;;  %v639_v27 = vcombine.low %v269_v15, %v270_v16 }
  0x17   : > { %v641_v28 = vcombine.low %v271_v18, %v272_v19 }
  0x18   : > { %457 = vmatprep.mubr.bf16.mxu0 %v640_v21  ;;  %465 = vmatprep.mubr.bf16.mxu1 %v642_v23 }
  0x19   : > { %689 = vmatpush3.bf16.msra.mxu0 %v758_v5  ;;  %722 = vmatpush3.bf16.msra.mxu1 %v758_v5 }
  0x1a   : > { %690 = vmatprep.subr.bf16.mxu0 %v759_v6  ;;  %715 = vmatprep.subr.bf16.mxu1 %v759_v6 }
  0x1d   : > { %691 = vmatpush3.bf16.msra.mxu0 %v760_v7  ;;  %723 = vmatpush3.bf16.msra.mxu1 %v760_v7 }
  0x1e   : > { %692 = vmatprep.subr.bf16.mxu0 %v761_v8  ;;  %716 = vmatprep.subr.bf16.mxu1 %v761_v8 }
  0x21   : > { %693 = vmatpush3.bf16.msra.mxu0 %v762_v9  ;;  %724 = vmatpush3.bf16.msra.mxu1 %v762_v9 }
  0x22   : > { %694 = vmatprep.subr.bf16.mxu0 %v763_v10  ;;  %717 = vmatprep.subr.bf16.mxu1 %v763_v10 }
  0x25   : > { %695 = vmatpush3.bf16.msra.mxu0 %v764_v20  ;;  %725 = vmatpush3.bf16.msra.mxu1 %v764_v20 }
  0x26   : > { %696 = vmatprep.subr.bf16.mxu0 %v765_v22  ;;  %718 = vmatprep.subr.bf16.mxu1 %v765_v22 }
  0x29   : > { %697 = vmatpush3.bf16.msra.mxu0 %v766_v24  ;;  %726 = vmatpush3.bf16.msra.mxu1 %v766_v24 }
  0x2a   : > { %698 = vmatprep.subr.bf16.mxu0 %v767_v25  ;;  %719 = vmatprep.subr.bf16.mxu1 %v767_v25 }
  0x2d   : > { %699 = vmatpush3.bf16.msra.mxu0 %v768_v26  ;;  %727 = vmatpush3.bf16.msra.mxu1 %v768_v26 }
  0x30   : > { %458 = vmatmul.mubr.bf16.vlgmr.msra.gmra.mxu0 %v639_v27  ;;  %466 = vmatmul.mubr.bf16.vlgmr.msra.gmra.mxu1 %v641_v28 }
  0xf0   : > { %v700_v29 = vpop.f32.mrf.mxu0  ;;  %v706_v30 = vpop.f32.mrf.mxu1 }
  0xf2   : > { %v701_v31 = vpop.f32.mrf.mxu0  ;;  %v707_v32 = vpop.f32.mrf.mxu1 }
  0xf3   : > { %v702_v35 = vadd.f32 %v701_v31, %v700_v29  ;;  %v708_v36 = vadd.f32 %v707_v32, %v706_v30 }
  0xf4   : > { %v703_v33 = vpop.f32.mrf.mxu0  ;;  %v709_v34 = vpop.f32.mrf.mxu1 }
  0xf5   : > { %v496_v42 = vadd.f32 %v702_v35, %v659_v37  ;;  %v498_v43 = vadd.f32 %v708_v36, %v659_v37 }
  0xf6   : > { %v704_v38 = vpop.f32.mrf.mxu0  ;;  %v710_v39 = vpop.f32.mrf.mxu1 }
  0xf7   : > { %v705_v40 = vadd.f32 %v704_v38, %v703_v33  ;;  %v711_v41 = vadd.f32 %v710_v39, %v709_v34 }
  0xf9   : > { %v497_v44 = vadd.f32 %v705_v40, %v659_v37  ;;  %v499_v45 = vadd.f32 %v711_v41, %v659_v37 }
  0xfb   : > { %v676_v46 = vpack.c.bf16 %v497_v44, %v496_v42  ;;  %v681_v47 = vpack.c.bf16 %v499_v45, %v498_v43 }
  0xfd   : > { %677 = vst [vmem:[%s254_s29] sm:$0xff] %v676_v46   ;;  %683 = vst [vmem:[%s254_s29 + $0x8] sm:$0xff] %v681_v47  }
  0xfe PF: > { %s13_s14 = sadd.s32 1, %s791_s14   ;;  %s880_s12 = smov %s787_s13 }
  0xff   : > { %p10_p5 = scmp.ge.s32.totalorder %s13_s14, 6   ;;  %s881_s13 = smov %s883_s15 }
 0x101   :  { %12 = sbr.rel (!%p10_p5) target bundleno = 2 (0x2), region = 73 }

// kernel: _lambda_.18
= control target key start
LH: loop header
LB: loop body
LE: loop exit
PB: predicated region body
PF: predicated region fallthrough
CT: control target
= control target key end

     0   :  { %s1039_s12 = smov 0   ;;  %s1041_s13 = smov 0   ;;  %s1137_s0 = inlined_call_operand.vmem [shape: bf16[4,128,128], index: 0, kind: input, shape index: {}]   ;;  %s1138_s1 = inlined_call_operand.vmem [shape: bf16[4,128,128], index: 1, kind: input, shape index: {}]   ;;  %s1139_s2 = inlined_call_operand.vmem [shape: f32[1,128], index: 2, kind: input, shape index: {}]   ;;  %s1140_s3 = inlined_call_operand.vmem [shape: bf16[4,128,128], index: 3, kind: output, shape index: {}]  }
   0x1   :  { %s1043_s14 = smov 0  }
   0x2 LB: > { %s32_s15 = sadd.s32 1, %s1012_s13  ;;  %p789_p0 = scmp.ge.s32.totalorder %s1016_s14, 1  ;;  %s1016_s14 = sphi %s1043_s14, %s13_s14   ;;  %s1012_s13 = sphi %s1041_s13, %s1142_s13   ;;  %s1008_s12 = sphi %s1039_s12, %s1141_s12  }
   0x3   : > { %p34_p1 = scmp.ge.s32.totalorder %s32_s15, 4  ;;  %p180_p2 = scmp.lt.s32.totalorder %s1016_s14, 5 }
   0x5   : > { %s1144_s15 = smov (%p34_p1, %s32_s15), 0  ;;  %p181_p3 = pnand %p789_p0, %p180_p2 }
   0x6   : > { %p221_p4 = scmp.lt.s32.totalorder (!%p181_p3), %s1008_s12, 3 }
   0x7   : > { %184 = sbr.rel (%p181_p3) target bundleno = 260 (0x104), region = 32 }
   0xc   : > { %s1146_s12 = smov (!%p221_p4, %s1008_s12), 3  ;;  %v1018_v7 = vmov 0   ;;  %v812_v51 = vld [vmem:[%s1139_s2] ss:$0 sm:$0xff] }
   0xd   : > { %s1057_s16 = sshll.u32 %s1146_s12, 6 }
   0xe   : > { %s1063_s19 = scalar_lea.vmem %s1138_s1, %s1057_s16  ;;  %s1072_s22 = scalar_lea.vmem %s1137_s0, %s1057_s16 }
   0xf   : > { %v986_v0 = vld [vmem:[%s1063_s19 + $0x38] sm:$0xff]   ;;  %v987_v1 = vld [vmem:[%s1063_s19 + $0x30] sm:$0xff]   ;;  %v988_v2 = vld [vmem:[%s1063_s19 + $0x28] sm:$0xff]   ;;  %s1118_s27 = scalar_lea.vmem %s1140_s3, %s1057_s16 }
  0x10   : > { %913 = vmatprep.subr.bf16.mxu0 %v986_v0  ;;  %945 = vmatprep.subr.bf16.mxu1 %v986_v0  ;;  %v989_v3 = vld [vmem:[%s1063_s19 + $0x20] sm:$0xff]   ;;  %v990_v14 = vld [vmem:[%s1063_s19 + $0x18] sm:$0xff]   ;;  %v991_v16 = vld [vmem:[%s1063_s19 + $0x10] sm:$0xff]  }
  0x11   : > { %914 = vmatpush3.bf16.msra.mxu0 %v986_v0  ;;  %953 = vmatpush3.bf16.msra.mxu1 %v986_v0  ;;  %v269_v4 = vld [vmem:[%s1072_s22] sm:$0xf]  ;;  %v270_v5 = vld [vmem:[%s1072_s22 + $0x4] sm:$0xf]  ;;  %v992_v17 = vld [vmem:[%s1063_s19 + $0x8] sm:$0xff]  }
  0x12   : > { %915 = vmatprep.subr.bf16.mxu0 %v987_v1  ;;  %946 = vmatprep.subr.bf16.mxu1 %v987_v1  ;;  %v277_v6 = vld [vmem:[%s1072_s22 + $0x20] sm:$0xf]  ;;  %v285_v8 = vmax.bf16 %v1018_v7, %v269_v4  ;;  %v286_v9 = vmax.bf16 %v1018_v7, %v270_v5  ;;  %v278_v10 = vld [vmem:[%s1072_s22 + $0x24] sm:$0xf]  ;;  %v271_v19 = vld [vmem:[%s1072_s22 + $0x8] sm:$0xf] }
  0x13   : > { %v293_v11 = vmax.bf16 %v1018_v7, %v277_v6  ;;  %v294_v12 = vmax.bf16 %v1018_v7, %v278_v10  ;;  %v993_v18 = vld [vmem:[%s1063_s19] sm:$0xff]   ;;  %v272_v20 = vld [vmem:[%s1072_s22 + $0xc] sm:$0xf]  ;;  %v279_v21 = vld [vmem:[%s1072_s22 + $0x28] sm:$0xf]  ;;  %v287_v27 = vmax.bf16 %v1018_v7, %v271_v19 }
  0x14   : > { %v796_v13 = vcombine.low %v285_v8, %v286_v9  ;;  %v280_v22 = vld [vmem:[%s1072_s22 + $0x2c] sm:$0xf]  ;;  %v273_v23 = vld [vmem:[%s1072_s22 + $0x10] sm:$0xf]  ;;  %v274_v24 = vld [vmem:[%s1072_s22 + $0x14] sm:$0xf]  ;;  %v288_v28 = vmax.bf16 %v1018_v7, %v272_v20  ;;  %v295_v29 = vmax.bf16 %v1018_v7, %v279_v21 }
  0x15   : > { %916 = vmatpush3.bf16.msra.mxu0 %v987_v1  ;;  %954 = vmatpush3.bf16.msra.mxu1 %v987_v1  ;;  %v800_v15 = vcombine.low %v293_v11, %v294_v12  ;;  %v281_v25 = vld [vmem:[%s1072_s22 + $0x30] sm:$0xf]  ;;  %v282_v26 = vld [vmem:[%s1072_s22 + $0x34] sm:$0xf]  ;;  %v296_v30 = vmax.bf16 %v1018_v7, %v280_v22  ;;  %v289_v31 = vmax.bf16 %v1018_v7, %v273_v23  ;;  %v275_v37 = vld [vmem:[%s1072_s22 + $0x18] sm:$0xf] }
  0x16   : > { %917 = vmatprep.subr.bf16.mxu0 %v988_v2  ;;  %947 = vmatprep.subr.bf16.mxu1 %v988_v2  ;;  %v290_v32 = vmax.bf16 %v1018_v7, %v274_v24  ;;  %v297_v33 = vmax.bf16 %v1018_v7, %v281_v25  ;;  %v298_v34 = vmax.bf16 %v1018_v7, %v282_v26  ;;  %v276_v40 = vld [vmem:[%s1072_s22 + $0x1c] sm:$0xf]  ;;  %v283_v41 = vld [vmem:[%s1072_s22 + $0x38] sm:$0xf] }
  0x17   : > { %929 = vmatprep.mubr.bf16.mxu0 %v796_v13  ;;  %937 = vmatprep.mubr.bf16.mxu1 %v800_v15  ;;  %v797_v35 = vcombine.low %v287_v27, %v288_v28  ;;  %v801_v36 = vcombine.low %v295_v29, %v296_v30  ;;  %v284_v42 = vld [vmem:[%s1072_s22 + $0x3c] sm:$0xf]  ;;  %v291_v43 = vmax.bf16 %v1018_v7, %v275_v37 }
  0x18   : > { %v798_v38 = vcombine.low %v289_v31, %v290_v32  ;;  %v802_v39 = vcombine.low %v297_v33, %v298_v34  ;;  %v292_v44 = vmax.bf16 %v1018_v7, %v276_v40  ;;  %v299_v45 = vmax.bf16 %v1018_v7, %v283_v41 }
  0x19   : > { %918 = vmatpush3.bf16.msra.mxu0 %v988_v2  ;;  %955 = vmatpush3.bf16.msra.mxu1 %v988_v2  ;;  %v300_v46 = vmax.bf16 %v1018_v7, %v284_v42 }
  0x1a   : > { %919 = vmatprep.subr.bf16.mxu0 %v989_v3  ;;  %948 = vmatprep.subr.bf16.mxu1 %v989_v3  ;;  %v799_v47 = vcombine.low %v291_v43, %v292_v44 }
  0x1b   : > { %v803_v48 = vcombine.low %v299_v45, %v300_v46 }
  0x1d   : > { %920 = vmatpush3.bf16.msra.mxu0 %v989_v3  ;;  %956 = vmatpush3.bf16.msra.mxu1 %v989_v3 }
  0x1e   : > { %921 = vmatprep.subr.bf16.mxu0 %v990_v14  ;;  %949 = vmatprep.subr.bf16.mxu1 %v990_v14 }
  0x21   : > { %922 = vmatpush3.bf16.msra.mxu0 %v990_v14  ;;  %957 = vmatpush3.bf16.msra.mxu1 %v990_v14 }
  0x22   : > { %923 = vmatprep.subr.bf16.mxu0 %v991_v16  ;;  %950 = vmatprep.subr.bf16.mxu1 %v991_v16 }
  0x25   : > { %924 = vmatpush3.bf16.msra.mxu0 %v991_v16  ;;  %958 = vmatpush3.bf16.msra.mxu1 %v991_v16 }
  0x26   : > { %925 = vmatprep.subr.bf16.mxu0 %v992_v17  ;;  %951 = vmatprep.subr.bf16.mxu1 %v992_v17 }
  0x29   : > { %926 = vmatpush3.bf16.msra.mxu0 %v992_v17  ;;  %959 = vmatpush3.bf16.msra.mxu1 %v992_v17 }
  0x2a   : > { %927 = vmatprep.subr.bf16.mxu0 %v993_v18  ;;  %952 = vmatprep.subr.bf16.mxu1 %v993_v18 }
  0x2d   : > { %928 = vmatpush3.bf16.msra.mxu0 %v993_v18  ;;  %960 = vmatpush3.bf16.msra.mxu1 %v993_v18 }
  0x30   : > { %930 = vmatmul.mubr.bf16.vlgmr.msra.gmra.mxu0 %v797_v35  ;;  %938 = vmatmul.mubr.bf16.vlgmr.msra.gmra.mxu1 %v801_v36 }
  0x31   : > { %933 = vmatprep.mubr.bf16.mxu0 %v798_v38  ;;  %941 = vmatprep.mubr.bf16.mxu1 %v802_v39 }
  0x38   : > { %934 = vmatmul.mubr.bf16.gmra.mxu0 %v799_v47  ;;  %942 = vmatmul.mubr.bf16.gmra.mxu1 %v803_v48 }
  0xf0   : > { %v931_v49 = vpop.f32.mrf.mxu0  ;;  %v939_v50 = vpop.f32.mrf.mxu1 }
  0xf1   : > { %v586_v56 = vadd.f32 %v931_v49, %v812_v51  ;;  %v594_v57 = vadd.f32 %v939_v50, %v812_v51 }
  0xf2   : > { %v463_v52 = vpop.f32.mrf.mxu0  ;;  %v495_v53 = vpop.f32.mrf.mxu1 }
  0xf3   : > { %v584_v60 = vadd.f32 %v812_v51, %v463_v52  ;;  %v592_v61 = vadd.f32 %v812_v51, %v495_v53 }
  0xf4   : > { %v932_v54 = vpop.f32.mrf.mxu0  ;;  %v940_v55 = vpop.f32.mrf.mxu1 }
  0xf5   : > { %v587_v58 = vadd.f32 %v932_v54, %v812_v51  ;;  %v595_v59 = vadd.f32 %v940_v55, %v812_v51 }
  0xf6   : > { %v466_v62 = vpop.f32.mrf.mxu0  ;;  %v498_v63 = vpop.f32.mrf.mxu1 }
  0xf7   : > { %v858_v0 = vpack.c.bf16 %v587_v58, %v586_v56  ;;  %v878_v1 = vpack.c.bf16 %v595_v59, %v594_v57  ;;  %v585_v2 = vadd.f32 %v812_v51, %v466_v62  ;;  %v593_v3 = vadd.f32 %v812_v51, %v498_v63 }
  0xf8   : > { %v935_v4 = vpop.f32.mrf.mxu0  ;;  %v943_v5 = vpop.f32.mrf.mxu1 }
  0xf9   : > { %890 = vst [vmem:[%s1118_s27 + $0x8] sm:$0xff] %v858_v0   ;;  %894 = vst [vmem:[%s1118_s27 + $0x28] sm:$0xff] %v878_v1   ;;  %v853_v6 = vpack.c.bf16 %v585_v2, %v584_v60  ;;  %v873_v7 = vpack.c.bf16 %v593_v3, %v592_v61  ;;  %v590_v12 = vadd.f32 %v935_v4, %v812_v51 }
  0xfa   : > { %v479_v8 = vpop.f32.mrf.mxu0  ;;  %v511_v9 = vpop.f32.mrf.mxu1  ;;  %v598_v13 = vadd.f32 %v943_v5, %v812_v51 }
  0xfb   : > { %854 = vst [vmem:[%s1118_s27] sm:$0xff] %v853_v6   ;;  %893 = vst [vmem:[%s1118_s27 + $0x20] sm:$0xff] %v873_v7   ;;  %v588_v16 = vadd.f32 %v812_v51, %v479_v8  ;;  %v596_v17 = vadd.f32 %v812_v51, %v511_v9 }
  0xfc   : > { %v936_v10 = vpop.f32.mrf.mxu0  ;;  %v944_v11 = vpop.f32.mrf.mxu1 }
  0xfd   : > { %v591_v14 = vadd.f32 %v936_v10, %v812_v51  ;;  %v599_v15 = vadd.f32 %v944_v11, %v812_v51 }
  0xfe   : > { %v482_v18 = vpop.f32.mrf.mxu0  ;;  %v514_v19 = vpop.f32.mrf.mxu1 }
  0xff   : > { %v868_v20 = vpack.c.bf16 %v591_v14, %v590_v12  ;;  %v888_v21 = vpack.c.bf16 %v599_v15, %v598_v13  ;;  %v589_v22 = vadd.f32 %v812_v51, %v482_v18  ;;  %v597_v23 = vadd.f32 %v812_v51, %v514_v19 }
 0x101   : > { %892 = vst [vmem:[%s1118_s27 + $0x18] sm:$0xff] %v868_v20   ;;  %896 = vst [vmem:[%s1118_s27 + $0x38] sm:$0xff] %v888_v21   ;;  %v863_v24 = vpack.c.bf16 %v589_v22, %v588_v16  ;;  %v883_v25 = vpack.c.bf16 %v597_v23, %v596_v17 }
 0x103   : > { %891 = vst [vmem:[%s1118_s27 + $0x10] sm:$0xff] %v863_v24   ;;  %895 = vst [vmem:[%s1118_s27 + $0x30] sm:$0xff] %v883_v25  }
 0x104 PF: > { %s13_s14 = sadd.s32 1, %s1016_s14   ;;  %s1141_s12 = smov %s1012_s13 }
 0x105   : > { %p10_p5 = scmp.ge.s32.totalorder %s13_s14, 6   ;;  %s1142_s13 = smov %s1144_s15 }
 0x107   :  { %12 = sbr.rel (!%p10_p5) target bundleno = 2 (0x2), region = 73 }

// kernel: _lambda_.19
= control target key start
LH: loop header
LB: loop body
LE: loop exit
PB: predicated region body
PF: predicated region fallthrough
CT: control target
= control target key end

     0   :  { %s1952_s12 = smov 0   ;;  %s1954_s13 = smov 0   ;;  %s2322_s0 = inlined_call_operand.vmem [shape: bf16[4,512,128], index: 0, kind: input, shape index: {}]   ;;  %s2323_s1 = inlined_call_operand.vmem [shape: bf16[4,128,128], index: 1, kind: input, shape index: {}]   ;;  %s2324_s2 = inlined_call_operand.vmem [shape: f32[1,128], index: 2, kind: input, shape index: {}]   ;;  %s2325_s3 = inlined_call_operand.vmem [shape: f32[4,512,128], index: 3, kind: output, shape index: {}]  }
   0x1   :  { %s1956_s14 = smov 0  }
   0x2 LB: > { %s32_s15 = sadd.s32 1, %s1925_s13  ;;  %p1557_p0 = scmp.ge.s32.totalorder %s1929_s14, 1  ;;  %s1929_s14 = sphi %s1956_s14, %s13_s14   ;;  %s1925_s13 = sphi %s1954_s13, %s2327_s13   ;;  %s1921_s12 = sphi %s1952_s12, %s2326_s12  }
   0x3   : > { %p34_p1 = scmp.ge.s32.totalorder %s32_s15, 4  ;;  %p180_p2 = scmp.lt.s32.totalorder %s1929_s14, 5 }
   0x5   : > { %s2329_s15 = smov (%p34_p1, %s32_s15), 0  ;;  %p181_p3 = pnand %p1557_p0, %p180_p2 }
   0x6   : > { %p221_p4 = scmp.lt.s32.totalorder (!%p181_p3), %s1921_s12, 3 }
   0x7   : > { %184 = sbr.rel (%p181_p3) target bundleno = 321 (0x141), region = 32 }
   0xc   : > { %s2331_s12 = smov (!%p221_p4, %s1921_s12), 3  ;;  %v1931_v7 = vmov 0  }
   0xd   : > { %s1608_s16 = sshll.u32 %s2331_s12, 6  ;;  %s1607_s20 = sshll.u32 %s2331_s12, 8 }
   0xe   : > { %s1976_s19 = scalar_lea.vmem %s2323_s1, %s1608_s16  ;;  %s1985_s23 = scalar_lea.vmem %s2322_s0, %s1607_s20 }
   0xf   : > { %v1771_v0 = vld [vmem:[%s1976_s19 + $0x38] sm:$0xff]   ;;  %v1772_v1 = vld [vmem:[%s1976_s19 + $0x30] sm:$0xff]   ;;  %v1773_v2 = vld [vmem:[%s1976_s19 + $0x28] sm:$0xff]   ;;  %s1609_s26 = sshll.u32 %s2331_s12, 9 }
  0x10   : > { %1650 = vmatprep.subr.bf16.mxu0 %v1771_v0  ;;  %1730 = vmatprep.subr.bf16.mxu1 %v1771_v0  ;;  %v1774_v3 = vld [vmem:[%s1976_s19 + $0x20] sm:$0xff]   ;;  %v1775_v14 = vld [vmem:[%s1976_s19 + $0x18] sm:$0xff]   ;;  %v1776_v16 = vld [vmem:[%s1976_s19 + $0x10] sm:$0xff]   ;;  %s2197_s29 = scalar_lea.vmem %s2325_s3, %s1609_s26 }
  0x11   : > { %1651 = vmatpush3.bf16.msra.mxu0 %v1771_v0  ;;  %1738 = vmatpush3.bf16.msra.mxu1 %v1771_v0  ;;  %v317_v4 = vld [vmem:[%s1985_s23] sm:$0xf]  ;;  %v318_v5 = vld [vmem:[%s1985_s23 + $0x4] sm:$0xf]  ;;  %v1777_v17 = vld [vmem:[%s1976_s19 + $0x8] sm:$0xff]  }
  0x12   : > { %1652 = vmatprep.subr.bf16.mxu0 %v1772_v1  ;;  %1731 = vmatprep.subr.bf16.mxu1 %v1772_v1  ;;  %v349_v6 = vld [vmem:[%s1985_s23 + $0x80] sm:$0xf]  ;;  %v381_v8 = vmax.bf16 %v1931_v7, %v317_v4  ;;  %v382_v9 = vmax.bf16 %v1931_v7, %v318_v5  ;;  %v350_v10 = vld [vmem:[%s1985_s23 + $0x84] sm:$0xf]  ;;  %v319_v18 = vld [vmem:[%s1985_s23 + $0x8] sm:$0xf] }
  0x13   : > { %v413_v11 = vmax.bf16 %v1931_v7, %v349_v6  ;;  %v414_v12 = vmax.bf16 %v1931_v7, %v350_v10  ;;  %v320_v19 = vld [vmem:[%s1985_s23 + $0xc] sm:$0xf]  ;;  %v351_v20 = vld [vmem:[%s1985_s23 + $0x88] sm:$0xf]  ;;  %v321_v22 = vld [vmem:[%s1985_s23 + $0x10] sm:$0xf]  ;;  %v383_v23 = vmax.bf16 %v1931_v7, %v319_v18 }
  0x14   : > { %v1564_v13 = vcombine.low %v381_v8, %v382_v9  ;;  %v352_v21 = vld [vmem:[%s1985_s23 + $0x8c] sm:$0xf]  ;;  %v322_v24 = vld [vmem:[%s1985_s23 + $0x14] sm:$0xf]  ;;  %v353_v25 = vld [vmem:[%s1985_s23 + $0x90] sm:$0xf]  ;;  %v384_v28 = vmax.bf16 %v1931_v7, %v320_v19  ;;  %v415_v29 = vmax.bf16 %v1931_v7, %v351_v20  ;;  %v385_v32 = vmax.bf16 %v1931_v7, %v321_v22 }
  0x15   : > { %1653 = vmatpush3.bf16.msra.mxu0 %v1772_v1  ;;  %1739 = vmatpush3.bf16.msra.mxu1 %v1772_v1  ;;  %v1580_v15 = vcombine.low %v413_v11, %v414_v12  ;;  %v354_v26 = vld [vmem:[%s1985_s23 + $0x94] sm:$0xf]  ;;  %v1778_v27 = vld [vmem:[%s1976_s19] sm:$0xff]   ;;  %v416_v30 = vmax.bf16 %v1931_v7, %v352_v21  ;;  %v323_v31 = vld [vmem:[%s1985_s23 + $0x18] sm:$0xf]  ;;  %v386_v33 = vmax.bf16 %v1931_v7, %v322_v24 }
  0x16   : > { %1654 = vmatprep.subr.bf16.mxu0 %v1773_v2  ;;  %1732 = vmatprep.subr.bf16.mxu1 %v1773_v2  ;;  %v417_v34 = vmax.bf16 %v1931_v7, %v353_v25  ;;  %v418_v35 = vmax.bf16 %v1931_v7, %v354_v26  ;;  %v324_v36 = vld [vmem:[%s1985_s23 + $0x1c] sm:$0xf]  ;;  %v355_v37 = vld [vmem:[%s1985_s23 + $0x98] sm:$0xf]  ;;  %v325_v39 = vld [vmem:[%s1985_s23 + $0x20] sm:$0xf]  ;;  %v1565_v42 = vcombine.low %v383_v23, %v384_v28 }
  0x17   : > { %1666 = vmatprep.mubr.bf16.mxu0 %v1564_v13  ;;  %1698 = vmatprep.mubr.bf16.mxu1 %v1580_v15  ;;  %v356_v38 = vld [vmem:[%s1985_s23 + $0x9c] sm:$0xf]  ;;  %v326_v40 = vld [vmem:[%s1985_s23 + $0x24] sm:$0xf]  ;;  %v343_v41 = vld [vmem:[%s1985_s23 + $0x68] sm:$0xf]  ;;  %v1581_v43 = vcombine.low %v415_v29, %v416_v30  ;;  %v387_v47 = vmax.bf16 %v1931_v7, %v323_v31  ;;  %v388_v48 = vmax.bf16 %v1931_v7, %v324_v36 }
  0x18   : > { %v357_v44 = vld [vmem:[%s1985_s23 + $0xa0] sm:$0xf]  ;;  %v358_v45 = vld [vmem:[%s1985_s23 + $0xa4] sm:$0xf]  ;;  %v344_v46 = vld [vmem:[%s1985_s23 + $0x6c] sm:$0xf]  ;;  %v419_v49 = vmax.bf16 %v1931_v7, %v355_v37  ;;  %v420_v50 = vmax.bf16 %v1931_v7, %v356_v38  ;;  %v1566_v54 = vcombine.low %v385_v32, %v386_v33  ;;  %v1582_v55 = vcombine.low %v417_v34, %v418_v35 }
  0x19   : > { %1655 = vmatpush3.bf16.msra.mxu0 %v1773_v2  ;;  %1740 = vmatpush3.bf16.msra.mxu1 %v1773_v2  ;;  %v375_v51 = vld [vmem:[%s1985_s23 + $0xe8] sm:$0xf]  ;;  %v376_v52 = vld [vmem:[%s1985_s23 + $0xec] sm:$0xf]  ;;  %v345_v53 = vld [vmem:[%s1985_s23 + $0x70] sm:$0xf]  ;;  %v389_v56 = vmax.bf16 %v1931_v7, %v325_v39  ;;  %v2035_v57 = vmax.bf16 %v1931_v7, %v343_v41  ;;  %v390_v61 = vmax.bf16 %v1931_v7, %v326_v40 }
  0x1a   : > { %1656 = vmatprep.subr.bf16.mxu0 %v1774_v3  ;;  %1733 = vmatprep.subr.bf16.mxu1 %v1774_v3  ;;  %v346_v58 = vld [vmem:[%s1985_s23 + $0x74] sm:$0xf]  ;;  %v377_v59 = vld [vmem:[%s1985_s23 + $0xf0] sm:$0xf]  ;;  %v421_v62 = vmax.bf16 %v1931_v7, %v357_v44  ;;  %v2043_v63 = vmax.bf16 %v1931_v7, %v344_v46  ;;  %v347_v0 = vld [vmem:[%s1985_s23 + $0x78] sm:$0xf]  ;;  %v422_v2 = vmax.bf16 %v1931_v7, %v358_v45 }
  0x1b   : > { %v378_v60 = vld [vmem:[%s1985_s23 + $0xf4] sm:$0xf]  ;;  %v348_v1 = vld [vmem:[%s1985_s23 + $0x7c] sm:$0xf]  ;;  %v2052_v4 = vmax.bf16 %v1931_v7, %v376_v52  ;;  %v2055_v5 = vmax.bf16 %v1931_v7, %v345_v53  ;;  %v379_v6 = vld [vmem:[%s1985_s23 + $0xf8] sm:$0xf]  ;;  %v2061_v9 = vmax.bf16 %v1931_v7, %v346_v58  ;;  %v2064_v10 = vmax.bf16 %v1931_v7, %v377_v59 }
  0x1c   : > { %v1577_v8 = vcombine.low %v2035_v57, %v2043_v63  ;;  %v2067_v11 = vmax.bf16 %v1931_v7, %v378_v60  ;;  %v380_v12 = vld [vmem:[%s1985_s23 + $0xfc] sm:$0xf]  ;;  %v2076_v15 = vmax.bf16 %v1931_v7, %v348_v1  ;;  %v2083_v18 = vmax.bf16 %v1931_v7, %v379_v6  ;;  %v327_v23 = vld [vmem:[%s1985_s23 + $0x28] sm:$0xf]  ;;  %v328_v24 = vld [vmem:[%s1985_s23 + $0x2c] sm:$0xf] }
  0x1d   : > { %1657 = vmatpush3.bf16.msra.mxu0 %v1774_v3  ;;  %1741 = vmatpush3.bf16.msra.mxu1 %v1774_v3  ;;  %v2049_v3 = vmax.bf16 %v1931_v7, %v375_v51  ;;  %v2088_v20 = vmax.bf16 %v1931_v7, %v380_v12  ;;  %v1567_v21 = vcombine.low %v387_v47, %v388_v48  ;;  %v359_v28 = vld [vmem:[%s1985_s23 + $0xa8] sm:$0xf]  ;;  %v360_v29 = vld [vmem:[%s1985_s23 + $0xac] sm:$0xf]  ;;  %v329_v30 = vld [vmem:[%s1985_s23 + $0x30] sm:$0xf] }
  0x1e   : > { %1658 = vmatprep.subr.bf16.mxu0 %v1775_v14  ;;  %1734 = vmatprep.subr.bf16.mxu1 %v1775_v14  ;;  %v1583_v22 = vcombine.low %v419_v49, %v420_v50  ;;  %v1568_v26 = vcombine.low %v389_v56, %v390_v61  ;;  %v330_v31 = vld [vmem:[%s1985_s23 + $0x34] sm:$0xf]  ;;  %v361_v32 = vld [vmem:[%s1985_s23 + $0xb0] sm:$0xf]  ;;  %v391_v34 = vmax.bf16 %v1931_v7, %v327_v23  ;;  %v331_v44 = vld [vmem:[%s1985_s23 + $0x38] sm:$0xf] }
  0x1f   : > { %v1593_v13 = vcombine.low %v2049_v3, %v2052_v4  ;;  %v1595_v25 = vcombine.low %v2083_v18, %v2088_v20  ;;  %v362_v33 = vld [vmem:[%s1985_s23 + $0xb4] sm:$0xf]  ;;  %v392_v35 = vmax.bf16 %v1931_v7, %v328_v24  ;;  %v423_v36 = vmax.bf16 %v1931_v7, %v359_v28  ;;  %v332_v45 = vld [vmem:[%s1985_s23 + $0x3c] sm:$0xf]  ;;  %v363_v48 = vld [vmem:[%s1985_s23 + $0xb8] sm:$0xf] }
  0x20   : > { %v424_v37 = vmax.bf16 %v1931_v7, %v360_v29  ;;  %v393_v38 = vmax.bf16 %v1931_v7, %v329_v30  ;;  %v394_v39 = vmax.bf16 %v1931_v7, %v330_v31  ;;  %v425_v40 = vmax.bf16 %v1931_v7, %v361_v32  ;;  %v364_v49 = vld [vmem:[%s1985_s23 + $0xbc] sm:$0xf]  ;;  %v333_v50 = vld [vmem:[%s1985_s23 + $0x40] sm:$0xf]  ;;  %v334_v51 = vld [vmem:[%s1985_s23 + $0x44] sm:$0xf] }
  0x21   : > { %1659 = vmatpush3.bf16.msra.mxu0 %v1775_v14  ;;  %1742 = vmatpush3.bf16.msra.mxu1 %v1775_v14  ;;  %v2073_v14 = vmax.bf16 %v1931_v7, %v347_v0  ;;  %v426_v41 = vmax.bf16 %v1931_v7, %v362_v33  ;;  %v365_v52 = vld [vmem:[%s1985_s23 + $0xc0] sm:$0xf]  ;;  %v366_v53 = vld [vmem:[%s1985_s23 + $0xc4] sm:$0xf]  ;;  %v427_v56 = vmax.bf16 %v1931_v7, %v363_v48  ;;  %v336_v6 = vld [vmem:[%s1985_s23 + $0x4c] sm:$0xf] }
  0x22   : > { %1660 = vmatprep.subr.bf16.mxu0 %v1776_v16  ;;  %1735 = vmatprep.subr.bf16.mxu1 %v1776_v16  ;;  %v1570_v46 = vcombine.low %v393_v38, %v394_v39  ;;  %v428_v58 = vmax.bf16 %v1931_v7, %v364_v49  ;;  %v397_v59 = vmax.bf16 %v1931_v7, %v333_v50  ;;  %v368_v23 = vld [vmem:[%s1985_s23 + $0xcc] sm:$0xf]  ;;  %v337_v24 = vld [vmem:[%s1985_s23 + $0x50] sm:$0xf]  ;;  %v370_v28 = vld [vmem:[%s1985_s23 + $0xd4] sm:$0xf] }
  0x23   : > { %v1579_v19 = vcombine.low %v2073_v14, %v2076_v15  ;;  %v1586_v47 = vcombine.low %v425_v40, %v426_v41  ;;  %v398_v60 = vmax.bf16 %v1931_v7, %v334_v51  ;;  %v429_v61 = vmax.bf16 %v1931_v7, %v365_v52  ;;  %v339_v39 = vld [vmem:[%s1985_s23 + $0x58] sm:$0xf]  ;;  %v340_v40 = vld [vmem:[%s1985_s23 + $0x5c] sm:$0xf]  ;;  %v374_v48 = vld [vmem:[%s1985_s23 + $0xe4] sm:$0xf] }
  0x24   : > { %v1587_v1 = vcombine.low %v427_v56, %v428_v58  ;;  %v400_v30 = vmax.bf16 %v1931_v7, %v336_v6  ;;  %v432_v32 = vmax.bf16 %v1931_v7, %v368_v23  ;;  %v401_v33 = vmax.bf16 %v1931_v7, %v337_v24 }
  0x25   : > { %1661 = vmatpush3.bf16.msra.mxu0 %v1776_v16  ;;  %1743 = vmatpush3.bf16.msra.mxu1 %v1776_v16  ;;  %v1578_v16 = vcombine.low %v2055_v5, %v2061_v9  ;;  %v1572_v12 = vcombine.low %v397_v59, %v398_v60  ;;  %v403_v49 = vmax.bf16 %v1931_v7, %v339_v39 }
  0x26   : > { %1662 = vmatprep.subr.bf16.mxu0 %v1777_v17  ;;  %1736 = vmatprep.subr.bf16.mxu1 %v1777_v17  ;;  %v404_v50 = vmax.bf16 %v1931_v7, %v340_v40  ;;  %v438_v56 = vmax.bf16 %v1931_v7, %v374_v48 }
  0x28   : > { %v1575_v58 = vcombine.low %v403_v49, %v404_v50 }
  0x29   : > { %1663 = vmatpush3.bf16.msra.mxu0 %v1777_v17  ;;  %1744 = vmatpush3.bf16.msra.mxu1 %v1777_v17  ;;  %v1594_v17 = vcombine.low %v2064_v10, %v2067_v11 }
  0x2a   : > { %1664 = vmatprep.subr.bf16.mxu0 %v1778_v27  ;;  %1737 = vmatprep.subr.bf16.mxu1 %v1778_v27 }
  0x2d   : > { %1665 = vmatpush3.bf16.msra.mxu0 %v1778_v27  ;;  %1745 = vmatpush3.bf16.msra.mxu1 %v1778_v27  ;;  %v1584_v27 = vcombine.low %v421_v62, %v422_v2  ;;  %v430_v62 = vmax.bf16 %v1931_v7, %v366_v53  ;;  %v335_v2 = vld [vmem:[%s1985_s23 + $0x48] sm:$0xf] }
  0x2e   : > { %v399_v29 = vmax.bf16 %v1931_v7, %v335_v2 }
  0x30   : > { %1667 = vmatmul.mubr.bf16.vlgmr.msra.gmra.mxu0 %v1565_v42  ;;  %1699 = vmatmul.mubr.bf16.vlgmr.msra.gmra.mxu1 %v1581_v43  ;;  %v1569_v42 = vcombine.low %v391_v34, %v392_v35  ;;  %v1585_v43 = vcombine.low %v423_v36, %v424_v37  ;;  %v434_v36 = vmax.bf16 %v1931_v7, %v370_v28 }
  0x31   : > { %1670 = vmatprep.mubr.bf16.mxu0 %v1566_v54  ;;  %1702 = vmatprep.mubr.bf16.mxu1 %v1582_v55  ;;  %v395_v54 = vmax.bf16 %v1931_v7, %v331_v44  ;;  %v396_v55 = vmax.bf16 %v1931_v7, %v332_v45  ;;  %v1573_v37 = vcombine.low %v399_v29, %v400_v30  ;;  %v372_v44 = vld [vmem:[%s1985_s23 + $0xdc] sm:$0xf]  ;;  %v341_v45 = vld [vmem:[%s1985_s23 + $0x60] sm:$0xf] }
  0x32   : > { %v436_v52 = vmax.bf16 %v1931_v7, %v372_v44  ;;  %v405_v53 = vmax.bf16 %v1931_v7, %v341_v45 }
  0x33   : > { %v1571_v0 = vcombine.low %v395_v54, %v396_v55 }
  0x38   : > { %1671 = vmatmul.mubr.bf16.gmra.mxu0 %v1567_v21  ;;  %1703 = vmatmul.mubr.bf16.gmra.mxu1 %v1583_v22  ;;  %v1588_v21 = vcombine.low %v429_v61, %v430_v62  ;;  %v367_v22 = vld [vmem:[%s1985_s23 + $0xc8] sm:$0xf] }
  0x39   : > { %1674 = vmatprep.mubr.bf16.mxu0 %v1568_v26  ;;  %1706 = vmatprep.mubr.bf16.mxu1 %v1584_v27  ;;  %v338_v26 = vld [vmem:[%s1985_s23 + $0x54] sm:$0xf]  ;;  %v369_v27 = vld [vmem:[%s1985_s23 + $0xd0] sm:$0xf]  ;;  %v431_v31 = vmax.bf16 %v1931_v7, %v367_v22 }
  0x3a   : > { %v402_v34 = vmax.bf16 %v1931_v7, %v338_v26  ;;  %v433_v35 = vmax.bf16 %v1931_v7, %v369_v27 }
  0x3b   : > { %v1589_v38 = vcombine.low %v431_v31, %v432_v32 }
  0x3c   : > { %v1574_v41 = vcombine.low %v401_v33, %v402_v34 }
  0x40   : > { %1675 = vmatmul.mubr.bf16.gmra.mxu0 %v1569_v42  ;;  %1707 = vmatmul.mubr.bf16.gmra.mxu1 %v1585_v43  ;;  %v1590_v42 = vcombine.low %v433_v35, %v434_v36  ;;  %v371_v43 = vld [vmem:[%s1985_s23 + $0xd8] sm:$0xf] }
  0x41   : > { %1678 = vmatprep.mubr.bf16.mxu0 %v1570_v46  ;;  %1710 = vmatprep.mubr.bf16.mxu1 %v1586_v47  ;;  %v342_v46 = vld [vmem:[%s1985_s23 + $0x64] sm:$0xf]  ;;  %v373_v47 = vld [vmem:[%s1985_s23 + $0xe0] sm:$0xf]  ;;  %v435_v51 = vmax.bf16 %v1931_v7, %v371_v43 }
  0x42   : > { %v406_v54 = vmax.bf16 %v1931_v7, %v342_v46  ;;  %v437_v55 = vmax.bf16 %v1931_v7, %v373_v47  ;;  %v2177_v7 = vld [vmem:[%s2324_s2] ss:$0 sm:$0xff] }
  0x43   : > { %v1591_v59 = vcombine.low %v435_v51, %v436_v52 }
  0x44   : > { %v1576_v60 = vcombine.low %v405_v53, %v406_v54  ;;  %v1592_v61 = vcombine.low %v437_v55, %v438_v56 }
  0x48   : > { %1679 = vmatmul.mubr.bf16.gmra.mxu0 %v1571_v0  ;;  %1711 = vmatmul.mubr.bf16.gmra.mxu1 %v1587_v1 }
  0x49   : > { %1682 = vmatprep.mubr.bf16.mxu0 %v1572_v12  ;;  %1714 = vmatprep.mubr.bf16.mxu1 %v1588_v21 }
  0x50   : > { %1683 = vmatmul.mubr.bf16.gmra.mxu0 %v1573_v37  ;;  %1715 = vmatmul.mubr.bf16.gmra.mxu1 %v1589_v38 }
  0x51   : > { %1686 = vmatprep.mubr.bf16.mxu0 %v1574_v41  ;;  %1718 = vmatprep.mubr.bf16.mxu1 %v1590_v42 }
  0x58   : > { %1687 = vmatmul.mubr.bf16.gmra.mxu0 %v1575_v58  ;;  %1719 = vmatmul.mubr.bf16.gmra.mxu1 %v1591_v59 }
  0x59   : > { %1690 = vmatprep.mubr.bf16.mxu0 %v1576_v60  ;;  %1722 = vmatprep.mubr.bf16.mxu1 %v1592_v61 }
  0x60   : > { %1691 = vmatmul.mubr.bf16.gmra.mxu0 %v1577_v8  ;;  %1723 = vmatmul.mubr.bf16.gmra.mxu1 %v1593_v13 }
  0x61   : > { %1694 = vmatprep.mubr.bf16.mxu0 %v1578_v16  ;;  %1726 = vmatprep.mubr.bf16.mxu1 %v1594_v17 }
  0x68   : > { %1695 = vmatmul.mubr.bf16.gmra.mxu0 %v1579_v19  ;;  %1727 = vmatmul.mubr.bf16.gmra.mxu1 %v1595_v25 }
  0xf0   : > { %v1668_v57 = vpop.f32.mrf.mxu0  ;;  %v1700_v63 = vpop.f32.mrf.mxu1 }
  0xf1   : > { %v1258_v3 = vadd.f32 %v1668_v57, %v2177_v7  ;;  %v1290_v4 = vadd.f32 %v1700_v63, %v2177_v7 }
  0xf2   : > { %v799_v5 = vpop.f32.mrf.mxu0  ;;  %v927_v8 = vpop.f32.mrf.mxu1 }
  0xf3   : > { %1779 = vtanh.f32 %v1258_v3  ;;  %v1256_v9 = vadd.f32 %v2177_v7, %v799_v5  ;;  %v1288_v10 = vadd.f32 %v2177_v7, %v927_v8 }
  0xf4   : > { %1781 = vtanh.f32 %v1290_v4  ;;  %v1669_v11 = vpop.f32.mrf.mxu0  ;;  %v1701_v13 = vpop.f32.mrf.mxu1 }
  0xf5   : > { %1783 = vtanh.f32 %v1256_v9  ;;  %v1259_v14 = vadd.f32 %v1669_v11, %v2177_v7  ;;  %v1291_v15 = vadd.f32 %v1701_v13, %v2177_v7 }
  0xf6   : > { %1785 = vtanh.f32 %v1288_v10  ;;  %v802_v16 = vpop.f32.mrf.mxu0  ;;  %v930_v17 = vpop.f32.mrf.mxu1 }
  0xf7   : > { %1787 = vtanh.f32 %v1259_v14  ;;  %v1257_v18 = vadd.f32 %v2177_v7, %v802_v16  ;;  %v1289_v19 = vadd.f32 %v2177_v7, %v930_v17 }
  0xf8   : > { %1789 = vtanh.f32 %v1291_v15  ;;  %v1672_v20 = vpop.f32.mrf.mxu0  ;;  %v1704_v25 = vpop.f32.mrf.mxu1 }
  0xf9   : > { %1791 = vtanh.f32 %v1257_v18  ;;  %v1262_v62 = vadd.f32 %v1672_v20, %v2177_v7  ;;  %v1294_v0 = vadd.f32 %v1704_v25, %v2177_v7 }
  0xfa   : > { %1793 = vtanh.f32 %v1289_v19  ;;  %v815_v1 = vpop.f32.mrf.mxu0  ;;  %v943_v2 = vpop.f32.mrf.mxu1 }
  0xfb   : > { %1795 = vtanh.f32 %v1262_v62  ;;  %v1260_v6 = vadd.f32 %v2177_v7, %v815_v1  ;;  %v1292_v12 = vadd.f32 %v2177_v7, %v943_v2 }
  0xfc   : > { %1797 = vtanh.f32 %v1294_v0  ;;  %v1673_v21 = vpop.f32.mrf.mxu0  ;;  %v1705_v22 = vpop.f32.mrf.mxu1 }
  0xfd   : > { %1799 = vtanh.f32 %v1260_v6  ;;  %v1263_v23 = vadd.f32 %v1673_v21, %v2177_v7  ;;  %v1295_v24 = vadd.f32 %v1705_v22, %v2177_v7 }
  0xfe   : > { %1801 = vtanh.f32 %v1292_v12  ;;  %v818_v26 = vpop.f32.mrf.mxu0  ;;  %v946_v27 = vpop.f32.mrf.mxu1 }
  0xff   : > { %1803 = vtanh.f32 %v1263_v23  ;;  %v1261_v28 = vadd.f32 %v2177_v7, %v818_v26  ;;  %v1293_v29 = vadd.f32 %v2177_v7, %v946_v27 }
 0x100   : > { %v1780_v30 = vpop.eup %1779  ;;  %1805 = vtanh.f32 %v1295_v24  ;;  %v1676_v31 = vpop.f32.mrf.mxu0 }
 0x101   : > { %v1708_v32 = vpop.f32.mrf.mxu1  ;;  %v1782_v33 = vpop.eup %1781  ;;  %1386 = vst [vmem:[%s2197_s29 + $0x10] sm:$0xff] %v1780_v30  ;;  %1807 = vtanh.f32 %v1261_v28  ;;  %v1266_v34 = vadd.f32 %v1676_v31, %v2177_v7 }
 0x102   : > { %v1298_v35 = vadd.f32 %v1708_v32, %v2177_v7  ;;  %v1784_v36 = vpop.eup %1783  ;;  %1418 = vst [vmem:[%s2197_s29 + $0x110] sm:$0xff] %v1782_v33  ;;  %1809 = vtanh.f32 %v1293_v29  ;;  %v831_v37 = vpop.f32.mrf.mxu0 }
 0x103   : > { %v959_v38 = vpop.f32.mrf.mxu1  ;;  %v1786_v39 = vpop.eup %1785  ;;  %1384 = vst [vmem:[%s2197_s29] sm:$0xff] %v1784_v36  ;;  %1811 = vtanh.f32 %v1266_v34  ;;  %v1264_v40 = vadd.f32 %v2177_v7, %v831_v37 }
 0x104   : > { %v1296_v41 = vadd.f32 %v2177_v7, %v959_v38  ;;  %v1788_v42 = vpop.eup %1787  ;;  %1416 = vst [vmem:[%s2197_s29 + $0x100] sm:$0xff] %v1786_v39  ;;  %1813 = vtanh.f32 %v1298_v35  ;;  %v1677_v43 = vpop.f32.mrf.mxu0 }
 0x105   : > { %v1709_v44 = vpop.f32.mrf.mxu1  ;;  %v1790_v45 = vpop.eup %1789  ;;  %1387 = vst [vmem:[%s2197_s29 + $0x18] sm:$0xff] %v1788_v42  ;;  %1815 = vtanh.f32 %v1264_v40  ;;  %v1267_v46 = vadd.f32 %v1677_v43, %v2177_v7 }
 0x106   : > { %v1299_v47 = vadd.f32 %v1709_v44, %v2177_v7  ;;  %v1792_v48 = vpop.eup %1791  ;;  %1419 = vst [vmem:[%s2197_s29 + $0x118] sm:$0xff] %v1790_v45  ;;  %1817 = vtanh.f32 %v1296_v41  ;;  %v834_v49 = vpop.f32.mrf.mxu0 }
 0x107   : > { %v962_v50 = vpop.f32.mrf.mxu1  ;;  %v1794_v51 = vpop.eup %1793  ;;  %1385 = vst [vmem:[%s2197_s29 + $0x8] sm:$0xff] %v1792_v48  ;;  %1819 = vtanh.f32 %v1267_v46  ;;  %v1265_v52 = vadd.f32 %v2177_v7, %v834_v49 }
 0x108   : > { %v1297_v53 = vadd.f32 %v2177_v7, %v962_v50  ;;  %v1796_v54 = vpop.eup %1795  ;;  %1417 = vst [vmem:[%s2197_s29 + $0x108] sm:$0xff] %v1794_v51  ;;  %1821 = vtanh.f32 %v1299_v47  ;;  %v1680_v55 = vpop.f32.mrf.mxu0 }
 0x109   : > { %v1712_v56 = vpop.f32.mrf.mxu1  ;;  %v1798_v58 = vpop.eup %1797  ;;  %1390 = vst [vmem:[%s2197_s29 + $0x30] sm:$0xff] %v1796_v54  ;;  %1823 = vtanh.f32 %v1265_v52  ;;  %v1270_v59 = vadd.f32 %v1680_v55, %v2177_v7 }
 0x10a   : > { %v1302_v60 = vadd.f32 %v1712_v56, %v2177_v7  ;;  %v1800_v61 = vpop.eup %1799  ;;  %1422 = vst [vmem:[%s2197_s29 + $0x130] sm:$0xff] %v1798_v58  ;;  %1825 = vtanh.f32 %v1297_v53  ;;  %v847_v57 = vpop.f32.mrf.mxu0 }
 0x10b   : > { %v975_v63 = vpop.f32.mrf.mxu1  ;;  %v1802_v3 = vpop.eup %1801  ;;  %1388 = vst [vmem:[%s2197_s29 + $0x20] sm:$0xff] %v1800_v61  ;;  %1827 = vtanh.f32 %v1270_v59  ;;  %v1268_v4 = vadd.f32 %v2177_v7, %v847_v57 }
 0x10c   : > { %v1300_v5 = vadd.f32 %v2177_v7, %v975_v63  ;;  %v1804_v8 = vpop.eup %1803  ;;  %1420 = vst [vmem:[%s2197_s29 + $0x120] sm:$0xff] %v1802_v3  ;;  %1829 = vtanh.f32 %v1302_v60  ;;  %v1681_v9 = vpop.f32.mrf.mxu0 }
 0x10d   : > { %v1713_v10 = vpop.f32.mrf.mxu1  ;;  %v1806_v11 = vpop.eup %1805  ;;  %1391 = vst [vmem:[%s2197_s29 + $0x38] sm:$0xff] %v1804_v8  ;;  %1831 = vtanh.f32 %v1268_v4  ;;  %v1271_v13 = vadd.f32 %v1681_v9, %v2177_v7 }
 0x10e   : > { %v1303_v14 = vadd.f32 %v1713_v10, %v2177_v7  ;;  %v1808_v15 = vpop.eup %1807  ;;  %1423 = vst [vmem:[%s2197_s29 + $0x138] sm:$0xff] %v1806_v11  ;;  %1833 = vtanh.f32 %v1300_v5  ;;  %v850_v16 = vpop.f32.mrf.mxu0 }
 0x10f   : > { %v978_v17 = vpop.f32.mrf.mxu1  ;;  %v1810_v18 = vpop.eup %1809  ;;  %1389 = vst [vmem:[%s2197_s29 + $0x28] sm:$0xff] %v1808_v15  ;;  %1835 = vtanh.f32 %v1271_v13  ;;  %v1269_v19 = vadd.f32 %v2177_v7, %v850_v16 }
 0x110   : > { %v1301_v20 = vadd.f32 %v2177_v7, %v978_v17  ;;  %v1812_v25 = vpop.eup %1811  ;;  %1421 = vst [vmem:[%s2197_s29 + $0x128] sm:$0xff] %v1810_v18  ;;  %1837 = vtanh.f32 %v1303_v14  ;;  %v1684_v62 = vpop.f32.mrf.mxu0 }
 0x111   : > { %v1716_v0 = vpop.f32.mrf.mxu1  ;;  %v1814_v1 = vpop.eup %1813  ;;  %1394 = vst [vmem:[%s2197_s29 + $0x50] sm:$0xff] %v1812_v25  ;;  %1839 = vtanh.f32 %v1269_v19  ;;  %v1274_v2 = vadd.f32 %v1684_v62, %v2177_v7 }
 0x112   : > { %v1306_v6 = vadd.f32 %v1716_v0, %v2177_v7  ;;  %v1816_v12 = vpop.eup %1815  ;;  %1426 = vst [vmem:[%s2197_s29 + $0x150] sm:$0xff] %v1814_v1  ;;  %1841 = vtanh.f32 %v1301_v20  ;;  %v863_v21 = vpop.f32.mrf.mxu0 }
 0x113   : > { %v991_v22 = vpop.f32.mrf.mxu1  ;;  %v1818_v23 = vpop.eup %1817  ;;  %1392 = vst [vmem:[%s2197_s29 + $0x40] sm:$0xff] %v1816_v12  ;;  %1843 = vtanh.f32 %v1274_v2  ;;  %v1272_v24 = vadd.f32 %v2177_v7, %v863_v21 }
 0x114   : > { %v1304_v26 = vadd.f32 %v2177_v7, %v991_v22  ;;  %v1820_v27 = vpop.eup %1819  ;;  %1424 = vst [vmem:[%s2197_s29 + $0x140] sm:$0xff] %v1818_v23  ;;  %1845 = vtanh.f32 %v1306_v6  ;;  %v1685_v28 = vpop.f32.mrf.mxu0 }
 0x115   : > { %v1717_v29 = vpop.f32.mrf.mxu1  ;;  %v1822_v30 = vpop.eup %1821  ;;  %1395 = vst [vmem:[%s2197_s29 + $0x58] sm:$0xff] %v1820_v27  ;;  %1847 = vtanh.f32 %v1272_v24  ;;  %v1275_v31 = vadd.f32 %v1685_v28, %v2177_v7 }
 0x116   : > { %v1307_v32 = vadd.f32 %v1717_v29, %v2177_v7  ;;  %v1824_v33 = vpop.eup %1823  ;;  %1427 = vst [vmem:[%s2197_s29 + $0x158] sm:$0xff] %v1822_v30  ;;  %1849 = vtanh.f32 %v1304_v26  ;;  %v866_v34 = vpop.f32.mrf.mxu0 }
 0x117   : > { %v994_v35 = vpop.f32.mrf.mxu1  ;;  %v1826_v36 = vpop.eup %1825  ;;  %1393 = vst [vmem:[%s2197_s29 + $0x48] sm:$0xff] %v1824_v33  ;;  %1851 = vtanh.f32 %v1275_v31  ;;  %v1273_v37 = vadd.f32 %v2177_v7, %v866_v34 }
 0x118   : > { %v1305_v38 = vadd.f32 %v2177_v7, %v994_v35  ;;  %v1828_v39 = vpop.eup %1827  ;;  %1425 = vst [vmem:[%s2197_s29 + $0x148] sm:$0xff] %v1826_v36  ;;  %1853 = vtanh.f32 %v1307_v32  ;;  %v1688_v40 = vpop.f32.mrf.mxu0 }
 0x119   : > { %v1720_v41 = vpop.f32.mrf.mxu1  ;;  %v1830_v42 = vpop.eup %1829  ;;  %1398 = vst [vmem:[%s2197_s29 + $0x70] sm:$0xff] %v1828_v39  ;;  %1855 = vtanh.f32 %v1273_v37  ;;  %v1278_v43 = vadd.f32 %v1688_v40, %v2177_v7 }
 0x11a   : > { %v1310_v44 = vadd.f32 %v1720_v41, %v2177_v7  ;;  %v1832_v45 = vpop.eup %1831  ;;  %1430 = vst [vmem:[%s2197_s29 + $0x170] sm:$0xff] %v1830_v42  ;;  %1857 = vtanh.f32 %v1305_v38  ;;  %v879_v46 = vpop.f32.mrf.mxu0 }
 0x11b   : > { %v1007_v47 = vpop.f32.mrf.mxu1  ;;  %v1834_v48 = vpop.eup %1833  ;;  %1396 = vst [vmem:[%s2197_s29 + $0x60] sm:$0xff] %v1832_v45  ;;  %1859 = vtanh.f32 %v1278_v43  ;;  %v1276_v49 = vadd.f32 %v2177_v7, %v879_v46 }
 0x11c   : > { %v1308_v50 = vadd.f32 %v2177_v7, %v1007_v47  ;;  %v1836_v51 = vpop.eup %1835  ;;  %1428 = vst [vmem:[%s2197_s29 + $0x160] sm:$0xff] %v1834_v48  ;;  %1861 = vtanh.f32 %v1310_v44  ;;  %v1689_v52 = vpop.f32.mrf.mxu0 }
 0x11d   : > { %v1721_v53 = vpop.f32.mrf.mxu1  ;;  %v1838_v54 = vpop.eup %1837  ;;  %1399 = vst [vmem:[%s2197_s29 + $0x78] sm:$0xff] %v1836_v51  ;;  %1863 = vtanh.f32 %v1276_v49  ;;  %v1279_v55 = vadd.f32 %v1689_v52, %v2177_v7 }
 0x11e   : > { %v1311_v56 = vadd.f32 %v1721_v53, %v2177_v7  ;;  %v1840_v58 = vpop.eup %1839  ;;  %1431 = vst [vmem:[%s2197_s29 + $0x178] sm:$0xff] %v1838_v54  ;;  %1865 = vtanh.f32 %v1308_v50  ;;  %v882_v59 = vpop.f32.mrf.mxu0 }
 0x11f   : > { %v1010_v60 = vpop.f32.mrf.mxu1  ;;  %v1842_v61 = vpop.eup %1841  ;;  %1397 = vst [vmem:[%s2197_s29 + $0x68] sm:$0xff] %v1840_v58  ;;  %1867 = vtanh.f32 %v1279_v55  ;;  %v1277_v57 = vadd.f32 %v2177_v7, %v882_v59 }
 0x120   : > { %v1309_v63 = vadd.f32 %v2177_v7, %v1010_v60  ;;  %v1844_v3 = vpop.eup %1843  ;;  %1429 = vst [vmem:[%s2197_s29 + $0x168] sm:$0xff] %v1842_v61  ;;  %1869 = vtanh.f32 %v1311_v56  ;;  %v1692_v4 = vpop.f32.mrf.mxu0 }
 0x121   : > { %v1724_v5 = vpop.f32.mrf.mxu1  ;;  %v1846_v8 = vpop.eup %1845  ;;  %1402 = vst [vmem:[%s2197_s29 + $0x90] sm:$0xff] %v1844_v3  ;;  %1871 = vtanh.f32 %v1277_v57  ;;  %v1282_v9 = vadd.f32 %v1692_v4, %v2177_v7 }
 0x122   : > { %v1314_v10 = vadd.f32 %v1724_v5, %v2177_v7  ;;  %v1848_v11 = vpop.eup %1847  ;;  %1434 = vst [vmem:[%s2197_s29 + $0x190] sm:$0xff] %v1846_v8  ;;  %1873 = vtanh.f32 %v1309_v63  ;;  %v895_v13 = vpop.f32.mrf.mxu0 }
 0x123   : > { %v1023_v14 = vpop.f32.mrf.mxu1  ;;  %v1850_v15 = vpop.eup %1849  ;;  %1400 = vst [vmem:[%s2197_s29 + $0x80] sm:$0xff] %v1848_v11  ;;  %1875 = vtanh.f32 %v1282_v9  ;;  %v1280_v16 = vadd.f32 %v2177_v7, %v895_v13 }
 0x124   : > { %v1312_v17 = vadd.f32 %v2177_v7, %v1023_v14  ;;  %v1852_v18 = vpop.eup %1851  ;;  %1432 = vst [vmem:[%s2197_s29 + $0x180] sm:$0xff] %v1850_v15  ;;  %1877 = vtanh.f32 %v1314_v10  ;;  %v1693_v19 = vpop.f32.mrf.mxu0 }
 0x125   : > { %v1725_v20 = vpop.f32.mrf.mxu1  ;;  %v1854_v25 = vpop.eup %1853  ;;  %1403 = vst [vmem:[%s2197_s29 + $0x98] sm:$0xff] %v1852_v18  ;;  %1879 = vtanh.f32 %v1280_v16  ;;  %v1283_v62 = vadd.f32 %v1693_v19, %v2177_v7 }
 0x126   : > { %v1315_v0 = vadd.f32 %v1725_v20, %v2177_v7  ;;  %v1856_v1 = vpop.eup %1855  ;;  %1435 = vst [vmem:[%s2197_s29 + $0x198] sm:$0xff] %v1854_v25  ;;  %1881 = vtanh.f32 %v1312_v17  ;;  %v898_v2 = vpop.f32.mrf.mxu0 }
 0x127   : > { %v1026_v6 = vpop.f32.mrf.mxu1  ;;  %v1858_v12 = vpop.eup %1857  ;;  %1401 = vst [vmem:[%s2197_s29 + $0x88] sm:$0xff] %v1856_v1  ;;  %1883 = vtanh.f32 %v1283_v62  ;;  %v1281_v21 = vadd.f32 %v2177_v7, %v898_v2 }
 0x128   : > { %v1313_v22 = vadd.f32 %v2177_v7, %v1026_v6  ;;  %v1860_v23 = vpop.eup %1859  ;;  %1433 = vst [vmem:[%s2197_s29 + $0x188] sm:$0xff] %v1858_v12  ;;  %1885 = vtanh.f32 %v1315_v0  ;;  %v1696_v24 = vpop.f32.mrf.mxu0 }
 0x129   : > { %v1728_v26 = vpop.f32.mrf.mxu1  ;;  %v1862_v27 = vpop.eup %1861  ;;  %1406 = vst [vmem:[%s2197_s29 + $0xb0] sm:$0xff] %v1860_v23  ;;  %1887 = vtanh.f32 %v1281_v21  ;;  %v1286_v28 = vadd.f32 %v1696_v24, %v2177_v7 }
 0x12a   : > { %v1318_v29 = vadd.f32 %v1728_v26, %v2177_v7  ;;  %v1864_v30 = vpop.eup %1863  ;;  %1438 = vst [vmem:[%s2197_s29 + $0x1b0] sm:$0xff] %v1862_v27  ;;  %1889 = vtanh.f32 %v1313_v22  ;;  %v911_v31 = vpop.f32.mrf.mxu0 }
 0x12b   : > { %v1039_v32 = vpop.f32.mrf.mxu1  ;;  %v1866_v33 = vpop.eup %1865  ;;  %1404 = vst [vmem:[%s2197_s29 + $0xa0] sm:$0xff] %v1864_v30  ;;  %1891 = vtanh.f32 %v1286_v28  ;;  %v1284_v34 = vadd.f32 %v2177_v7, %v911_v31 }
 0x12c   : > { %v1316_v35 = vadd.f32 %v2177_v7, %v1039_v32  ;;  %v1868_v36 = vpop.eup %1867  ;;  %1436 = vst [vmem:[%s2197_s29 + $0x1a0] sm:$0xff] %v1866_v33  ;;  %1893 = vtanh.f32 %v1318_v29  ;;  %v1697_v37 = vpop.f32.mrf.mxu0 }
 0x12d   : > { %v1729_v38 = vpop.f32.mrf.mxu1  ;;  %v1870_v39 = vpop.eup %1869  ;;  %1407 = vst [vmem:[%s2197_s29 + $0xb8] sm:$0xff] %v1868_v36  ;;  %1895 = vtanh.f32 %v1284_v34  ;;  %v1287_v40 = vadd.f32 %v1697_v37, %v2177_v7 }
 0x12e   : > { %v1319_v41 = vadd.f32 %v1729_v38, %v2177_v7  ;;  %v1872_v42 = vpop.eup %1871  ;;  %1439 = vst [vmem:[%s2197_s29 + $0x1b8] sm:$0xff] %v1870_v39  ;;  %1897 = vtanh.f32 %v1316_v35  ;;  %v914_v43 = vpop.f32.mrf.mxu0 }
 0x12f   : > { %v1042_v44 = vpop.f32.mrf.mxu1  ;;  %v1874_v45 = vpop.eup %1873  ;;  %1405 = vst [vmem:[%s2197_s29 + $0xa8] sm:$0xff] %v1872_v42  ;;  %1899 = vtanh.f32 %v1287_v40  ;;  %v1285_v46 = vadd.f32 %v2177_v7, %v914_v43 }
 0x130   : > { %v1317_v47 = vadd.f32 %v2177_v7, %v1042_v44  ;;  %v1876_v48 = vpop.eup %1875  ;;  %1437 = vst [vmem:[%s2197_s29 + $0x1a8] sm:$0xff] %v1874_v45  ;;  %1901 = vtanh.f32 %v1319_v41 }
 0x131   : > { %v1878_v49 = vpop.eup %1877  ;;  %1410 = vst [vmem:[%s2197_s29 + $0xd0] sm:$0xff] %v1876_v48  ;;  %1903 = vtanh.f32 %v1285_v46 }
 0x132   : > { %v1880_v50 = vpop.eup %1879  ;;  %1442 = vst [vmem:[%s2197_s29 + $0x1d0] sm:$0xff] %v1878_v49  ;;  %1905 = vtanh.f32 %v1317_v47 }
 0x133   : > { %v1882_v51 = vpop.eup %1881  ;;  %1408 = vst [vmem:[%s2197_s29 + $0xc0] sm:$0xff] %v1880_v50 }
 0x134   : > { %v1884_v52 = vpop.eup %1883  ;;  %1440 = vst [vmem:[%s2197_s29 + $0x1c0] sm:$0xff] %v1882_v51 }
 0x135   : > { %v1886_v7 = vpop.eup %1885  ;;  %1411 = vst [vmem:[%s2197_s29 + $0xd8] sm:$0xff] %v1884_v52 }
 0x136   : > { %v1888_v53 = vpop.eup %1887  ;;  %1443 = vst [vmem:[%s2197_s29 + $0x1d8] sm:$0xff] %v1886_v7 }
 0x137   : > { %v1890_v54 = vpop.eup %1889  ;;  %1409 = vst [vmem:[%s2197_s29 + $0xc8] sm:$0xff] %v1888_v53 }
 0x138   : > { %v1892_v55 = vpop.eup %1891  ;;  %1441 = vst [vmem:[%s2197_s29 + $0x1c8] sm:$0xff] %v1890_v54 }
 0x139   : > { %v1894_v56 = vpop.eup %1893  ;;  %1414 = vst [vmem:[%s2197_s29 + $0xf0] sm:$0xff] %v1892_v55 }
 0x13a   : > { %v1896_v58 = vpop.eup %1895  ;;  %1446 = vst [vmem:[%s2197_s29 + $0x1f0] sm:$0xff] %v1894_v56 }
 0x13b   : > { %v1898_v59 = vpop.eup %1897  ;;  %1412 = vst [vmem:[%s2197_s29 + $0xe0] sm:$0xff] %v1896_v58 }
 0x13c   : > { %v1900_v60 = vpop.eup %1899  ;;  %1444 = vst [vmem:[%s2197_s29 + $0x1e0] sm:$0xff] %v1898_v59 }
 0x13d   : > { %v1902_v61 = vpop.eup %1901  ;;  %1415 = vst [vmem:[%s2197_s29 + $0xf8] sm:$0xff] %v1900_v60 }
 0x13e   : > { %v1904_v57 = vpop.eup %1903  ;;  %1447 = vst [vmem:[%s2197_s29 + $0x1f8] sm:$0xff] %v1902_v61 }
 0x13f   : > { %v1906_v63 = vpop.eup %1905  ;;  %1413 = vst [vmem:[%s2197_s29 + $0xe8] sm:$0xff] %v1904_v57 }
 0x140   : > { %1445 = vst [vmem:[%s2197_s29 + $0x1e8] sm:$0xff] %v1906_v63 }
 0x141 PF: > { %s13_s14 = sadd.s32 1, %s1929_s14   ;;  %s2326_s12 = smov %s1925_s13 }
 0x142   : > { %p10_p5 = scmp.ge.s32.totalorder %s13_s14, 6   ;;  %s2327_s13 = smov %s2329_s15 }
 0x144   :  { %12 = sbr.rel (!%p10_p5) target bundleno = 2 (0x2), region = 73 }

</bundles_post_ra>
